<compile_context>
chip_gen: v5e
topology: v5e:2x2
jax: 0.10.0
libtpu: 0.0.40
codegen_flags: <defaults>
</compile_context>

<pallas_src>
import functools
import math

import jax
import jax.numpy as jnp
import numpy as np
from jax.experimental import pallas as pl
from jax.experimental.pallas import tpu as pltpu


def _flash_qkv_kernel(q_ref, k_ref, v_ref, o_ref, m_sc, l_sc, acc_sc, *, scale):
    """One (batch, query-tile, key-tile) grid step; attention for ALL heads.

    Block shapes:
      q_ref: (1, H, ch, Tq)   k_ref / v_ref: (1, H, ch, Tk)   o_ref: (1, H, ch, Tq)
    Scratch (carried across the innermost / "arbitrary" key-tile axis):
      m_sc, l_sc: (H, 1, Tq) f32    acc_sc: (H, ch, Tq) f32
    """
    kt = pl.program_id(2)

    @pl.when(kt == 0)
    def _():
        m_sc[...] = jnp.full_like(m_sc, -jnp.inf)
        l_sc[...] = jnp.zeros_like(l_sc)
        acc_sc[...] = jnp.zeros_like(acc_sc)

    # Full 1/sqrt(ch) scale on q only; k is fed to the MXU untouched.
    q = q_ref[0] * scale                        # (H, ch, Tq)
    k = k_ref[0]                                # (H, ch, Tk)
    v = v_ref[0]                                # (H, ch, Tk)

    # sim[h, s, t] = sum_c k[h, c, s] * q[h, c, t]
    # Contraction on dim 1 of BOTH operands (transposed-LHS MXU path, no
    # materialized transposes).  Keys land on the sublane axis, so the softmax
    # statistics below are (H, 1, Tq) lane rows that broadcast over the
    # (H, ch, Tq) accumulator with no alpha / l transposes.
    sim = jax.lax.dot_general(
        k, q,
        dimension_numbers=(((1,), (1,)), ((0,), (0,))),
        preferred_element_type=jnp.float32)     # (H, Tk, Tq), f32

    # Online softmax over keys, in f32 (matches th.softmax(weight.float(), -1)).
    m_prev = m_sc[...]
    m_new = jnp.maximum(m_prev, jnp.max(sim, axis=1, keepdims=True))   # (H,1,Tq)
    alpha = jnp.exp(m_prev - m_new)                                    # (H,1,Tq)
    e = jnp.exp(sim - m_new)                                           # (H,Tk,Tq)
    l_sc[...] = alpha * l_sc[...] + jnp.sum(e, axis=1, keepdims=True)
    m_sc[...] = m_new

    # Deferred normalization: un-normalized exp straight into the MXU against V
    # (canonical 'hcs,hst->hct' batched matmul, f32 accumulation).
    part = jax.lax.dot_general(
        v, e.astype(v.dtype),
        dimension_numbers=(((2,), (1,)), ((0,), (0,))),
        preferred_element_type=jnp.float32)     # (H, ch, Tq), f32

    acc_sc[...] = alpha * acc_sc[...] + part

    @pl.when(kt == pl.num_programs(2) - 1)
    def _():
        inv_l = pl.reciprocal(l_sc[...], approx=True)                  # (H,1,Tq)
        o_ref[0] = (acc_sc[...] * inv_l).astype(o_ref.dtype)


def _tile_candidates(T, cap):
    """Valid Pallas tiles for a length-T axis, largest first.

    A tile is valid if it equals T or is a multiple of 128 that divides T
    (keeps the (8,128) block rule and avoids padded key tiles that would
    corrupt the softmax max/sum).
    """
    cands = set()
    if T <= cap:
        cands.add(T)
    t = (min(cap, T) // 128) * 128
    while t >= 128:
        if T % t == 0:
            cands.add(t)
        t -= 128
    if not cands:
        cands.add(T)   # T > cap and not a multiple of 128: forced full extent.
    return sorted(cands, reverse=True)


def _vmem_estimate_bytes(H, ch, q_tile, k_tile, itemsize):
    """Rough per-step VMEM footprint: double-buffered blocks + scratch + f32 temps."""
    blk_q = H * ch * q_tile * itemsize
    blk_kv = H * ch * k_tile * itemsize
    blk_o = H * ch * q_tile * itemsize
    pipelined = 2 * (blk_q + 2 * blk_kv + blk_o)               # default double buffering
    scratch = H * ch * q_tile * 4 + 2 * (H * 8 * q_tile * 4)   # acc + (m, l padded to 8 sublanes)
    interm = 2 * (H * k_tile * q_tile * 4) + H * ch * q_tile * 4 + blk_kv  # sim, e, part, e cast
    return pipelined + scratch + interm


def qkv_attention(qkv, n_heads, *, q_tile=None, k_tile=None,
                  vmem_budget_bytes=None, vmem_limit_bytes=None):
    """Pallas forward of QKVAttention.

    qkv: (B, 3 * n_heads * ch, T)  ->  (B, n_heads * ch, T), same dtype as qkv.
    """
    B, W, T = qkv.shape
    assert W % (3 * n_heads) == 0, "width must be divisible by 3 * n_heads"
    H = n_heads
    ch = W // (3 * H)
    # Full scale applied to q only (== (1/ch**0.25)**2 of the PyTorch module).
    scale = 1.0 / math.sqrt(ch)

    itemsize = jnp.dtype(qkv.dtype).itemsize
    # Conservative tile budget so the per-step footprint also fits v7x (64 MiB
    # physical VMEM) with headroom; overridable.
    budget = 40 * 1024 * 1024 if vmem_budget_bytes is None else int(vmem_budget_bytes)

    q_cands = _tile_candidates(T, 512) if q_tile is None else [int(q_tile)]
    k_cands = _tile_candidates(T, 1024) if k_tile is None else [int(k_tile)]
    chosen = None
    for qt_ in q_cands:                 # prefer the biggest query tile (MXU N dim),
        for kt_ in k_cands:             # shrink the key tile first.
            if _vmem_estimate_bytes(H, ch, qt_, kt_, itemsize) <= budget:
                chosen = (qt_, kt_)
                break
        if chosen is not None:
            break
    if chosen is None:
        chosen = (q_cands[-1], k_cands[-1])
    q_tile, k_tile = chosen
    assert q_tile == T or (T % q_tile == 0 and q_tile % 128 == 0)
    assert k_tile == T or (T % k_tile == 0 and k_tile % 128 == 0)
    n_qt = T // q_tile
    n_kt = T // k_tile

    est = _vmem_estimate_bytes(H, ch, q_tile, k_tile, itemsize)
    if vmem_limit_bytes is None:
        vmem_limit_bytes = int(min(max(1.5 * est, 32 * 1024 * 1024), 96 * 1024 * 1024))

    # Free row-major reshape: (B, 3*H, ch, T).  q heads are rows [0, H),
    # k rows [H, 2H), v rows [2H, 3H) -- exactly chunk(3, dim=1) + view of the
    # PyTorch module.  No transposes / repacking in the wrapper; the SAME tensor
    # is passed three times with three BlockSpec windows.
    qkv4 = qkv.reshape(B, 3 * H, ch, T)

    kernel = functools.partial(_flash_qkv_kernel, scale=scale)

    # v7x megacore: when B >= 2 split cores on batch only, so K/V tiles are not
    # fetched once per core per query tile.  Key axis is a reduction -> arbitrary.
    if B >= 2:
        dims = ("parallel", "arbitrary", "arbitrary")
    else:
        dims = ("parallel", "parallel", "arbitrary")

    out = pl.pallas_call(
        kernel,
        out_shape=jax.ShapeDtypeStruct((B, H, ch, T), qkv.dtype),
        grid_spec=pltpu.PrefetchScalarGridSpec(
            num_scalar_prefetch=0,
            grid=(B, n_qt, n_kt),
            in_specs=[
                # q: per-(batch, query-tile) window; constant across key tiles.
                pl.BlockSpec((1, H, ch, q_tile), lambda b, qt, kt: (b, 0, 0, qt)),
                # k / v: per-(batch, key-tile) windows; block index along dim 1
                # is 1 / 2 (row offsets H / 2H in the chunk(3) layout).
                pl.BlockSpec((1, H, ch, k_tile), lambda b, qt, kt: (b, 1, 0, kt)),
                pl.BlockSpec((1, H, ch, k_tile), lambda b, qt, kt: (b, 2, 0, kt)),
            ],
            # Output block is independent of kt -> stays resident across the
            # reduction axis; written once at the last key tile.
            out_specs=pl.BlockSpec((1, H, ch, q_tile), lambda b, qt, kt: (b, 0, 0, qt)),
            scratch_shapes=[
                pltpu.VMEM((H, 1, q_tile), jnp.float32),   # running max m
                pltpu.VMEM((H, 1, q_tile), jnp.float32),   # running sum l
                pltpu.VMEM((H, ch, q_tile), jnp.float32),  # running output acc
            ],
        ),
        compiler_params=pltpu.CompilerParams(
            dimension_semantics=dims,
            vmem_limit_bytes=vmem_limit_bytes),
    )(qkv4, qkv4, qkv4)

    # Free reshape back to the module's (B, H*ch, T) output layout.
    return out.reshape(B, H * ch, T)


def qkv_attention_reference(qkv, n_heads):
    """Plain-JAX mirror of the PyTorch QKVAttention.forward."""
    bs, width, length = qkv.shape
    assert width % (3 * n_heads) == 0
    ch = width // (3 * n_heads)
    q, k, v = jnp.split(qkv, 3, axis=1)
    scale = 1.0 / math.sqrt(math.sqrt(ch))
    q = (q * scale).reshape(bs * n_heads, ch, length)
    k = (k * scale).reshape(bs * n_heads, ch, length)
    v = v.reshape(bs * n_heads, ch, length)
    weight = jnp.einsum('bct,bcs->bts', q, k,
                        precision=jax.lax.Precision.HIGHEST)
    weight = jax.nn.softmax(weight.astype(jnp.float32), axis=-1).astype(qkv.dtype)
    a = jnp.einsum('bts,bcs->bct', weight, v,
                   precision=jax.lax.Precision.HIGHEST)
    return a.reshape(bs, -1, length)


if __name__ == "__main__":
    # Shapes consistent with a UNet attention block: batch=2, 4 heads of 16
    # channels (width = 3*4*16 = 192), length = 16*16 = 256 spatial tokens.
    B, n_heads, ch, length = 2, 4, 16, 256
    width = 3 * n_heads * ch

    qkv = jax.random.normal(jax.random.PRNGKey(0), (B, width, length),
                            dtype=jnp.float32)

    out = qkv_attention(qkv, n_heads)
    out = jax.block_until_ready(out)
    assert out.shape == (B, n_heads * ch, length)

    ref = qkv_attention_reference(qkv, n_heads)
    # Tolerance covers the MXU f32 multi-pass path vs. the HIGHEST-precision XLA
    # reference, the one-sided q scaling, deferred normalization, and the
    # approximate (EUP) softmax reciprocal.
    np.testing.assert_allclose(np.asarray(out), np.asarray(ref),
                               rtol=2e-2, atol=2e-3)
    print("KERNEL_OK")
</pallas_src>

<mosaic_0001>
module attributes {stable_mosaic.version = 11 : i64} {
  func.func @_flash_qkv_kernel(%arg0: i32, %arg1: i32, %arg2: i32, %arg3: memref<1x4x16x256xf32, #tpu.memory_space<vmem>>, %arg4: memref<1x4x16x256xf32, #tpu.memory_space<vmem>>, %arg5: memref<1x4x16x256xf32, #tpu.memory_space<vmem>>, %arg6: memref<1x4x16x256xf32, #tpu.memory_space<vmem>>, %arg7: memref<4x1x256xf32, #tpu.memory_space<vmem>>, %arg8: memref<4x1x256xf32, #tpu.memory_space<vmem>>, %arg9: memref<4x16x256xf32, #tpu.memory_space<vmem>>) attributes {dimension_semantics = [#tpu.dimension_semantics<parallel>, #tpu.dimension_semantics<arbitrary>, #tpu.dimension_semantics<arbitrary>], iteration_bounds = array<i64: 2, 1, 1>, scalar_prefetch = 0 : i64, scratch_operands = 3 : i64, tpu.core_type = #tpu.core_type<tc>, window_params = [{transform_indices = @transform_0, window_bounds = array<i64: 1, 4, 16, 256>}, {transform_indices = @transform_1, window_bounds = array<i64: 1, 4, 16, 256>}, {transform_indices = @transform_2, window_bounds = array<i64: 1, 4, 16, 256>}, {transform_indices = @transform_3, window_bounds = array<i64: 1, 4, 16, 256>}]} {
    %c0_i32 = arith.constant 0 : i32
    %0 = arith.cmpi eq, %arg2, %c0_i32 : i32
    %1 = arith.extui %0 : i1 to i32
    %c0_i32_0 = arith.constant 0 : i32
    %2 = arith.cmpi ne, %1, %c0_i32_0 : i32
    scf.if %2 {
      %cst_36 = arith.constant 0xFF800000 : f32
      %37 = vector.broadcast %cst_36 : f32 to vector<4x1x256xf32>
      %c0_37 = arith.constant 0 : index
      %c0_38 = arith.constant 0 : index
      %c0_39 = arith.constant 0 : index
      %38 = vector.load %arg7[%c0_37, %c0_38, %c0_39] : memref<4x1x256xf32, #tpu.memory_space<vmem>>, vector<4x1x256xf32>
      tpu.vector_store %arg7[%c0_37, %c0_38, %c0_39], %37 {strides = array<i32>} : memref<4x1x256xf32, #tpu.memory_space<vmem>>, vector<4x1x256xf32>,
      %cst_40 = arith.constant 0.000000e+00 : f32
      %39 = vector.broadcast %cst_40 : f32 to vector<4x1x256xf32>
      %c0_41 = arith.constant 0 : index
      %c0_42 = arith.constant 0 : index
      %c0_43 = arith.constant 0 : index
      %40 = vector.load %arg8[%c0_41, %c0_42, %c0_43] : memref<4x1x256xf32, #tpu.memory_space<vmem>>, vector<4x1x256xf32>
      tpu.vector_store %arg8[%c0_41, %c0_42, %c0_43], %39 {strides = array<i32>} : memref<4x1x256xf32, #tpu.memory_space<vmem>>, vector<4x1x256xf32>,
      %cst_44 = arith.constant 0.000000e+00 : f32
      %41 = vector.broadcast %cst_44 : f32 to vector<4x16x256xf32>
      %c0_45 = arith.constant 0 : index
      %c0_46 = arith.constant 0 : index
      %c0_47 = arith.constant 0 : index
      %42 = vector.load %arg9[%c0_45, %c0_46, %c0_47] : memref<4x16x256xf32, #tpu.memory_space<vmem>>, vector<4x16x256xf32>
      tpu.vector_store %arg9[%c0_45, %c0_46, %c0_47], %41 {strides = array<i32>} : memref<4x16x256xf32, #tpu.memory_space<vmem>>, vector<4x16x256xf32>,
    } else {
    }
    %c0 = arith.constant 0 : index
    %c0_1 = arith.constant 0 : index
    %c0_2 = arith.constant 0 : index
    %c0_3 = arith.constant 0 : index
    %3 = vector.load %arg3[%c0, %c0_1, %c0_2, %c0_3] : memref<1x4x16x256xf32, #tpu.memory_space<vmem>>, vector<1x4x16x256xf32>
    %4 = vector.shape_cast %3 : vector<1x4x16x256xf32> to vector<4x16x256xf32>
    %cst = arith.constant 2.500000e-01 : f32
    %5 = vector.broadcast %cst : f32 to vector<4x16x256xf32>
    %6 = arith.mulf %4, %5 : vector<4x16x256xf32>
    %c0_4 = arith.constant 0 : index
    %c0_5 = arith.constant 0 : index
    %c0_6 = arith.constant 0 : index
    %c0_7 = arith.constant 0 : index
    %7 = vector.load %arg4[%c0_4, %c0_5, %c0_6, %c0_7] : memref<1x4x16x256xf32, #tpu.memory_space<vmem>>, vector<1x4x16x256xf32>
    %8 = vector.shape_cast %7 : vector<1x4x16x256xf32> to vector<4x16x256xf32>
    %c0_8 = arith.constant 0 : index
    %c0_9 = arith.constant 0 : index
    %c0_10 = arith.constant 0 : index
    %c0_11 = arith.constant 0 : index
    %9 = vector.load %arg5[%c0_8, %c0_9, %c0_10, %c0_11] : memref<1x4x16x256xf32, #tpu.memory_space<vmem>>, vector<1x4x16x256xf32>
    %10 = vector.shape_cast %9 : vector<1x4x16x256xf32> to vector<4x16x256xf32>
    %cst_12 = arith.constant dense<0.000000e+00> : vector<4x256x256xf32>
    %11 = tpu.matmul %8, %6, %cst_12 {dimension_numbers = #tpu.dot_dimension_numbers<[1], [1], [2], [2], [0, 0, 0, 2, 1, 2], [0], [0]>} : vector<4x16x256xf32>, vector<4x16x256xf32>, vector<4x256x256xf32> -> vector<4x256x256xf32>
    %c0_13 = arith.constant 0 : index
    %c0_14 = arith.constant 0 : index
    %c0_15 = arith.constant 0 : index
    %12 = vector.load %arg7[%c0_13, %c0_14, %c0_15] : memref<4x1x256xf32, #tpu.memory_space<vmem>>, vector<4x1x256xf32>
    %cst_16 = arith.constant dense<0xFF800000> : vector<4x256xf32>
    %13 = vector.multi_reduction <maximumf>, %11, %cst_16 [1] : vector<4x256x256xf32> to vector<4x256xf32>
    %14 = vector.shape_cast %13 : vector<4x256xf32> to vector<4x1x256xf32>
    %15 = arith.maximumf %12, %14 : vector<4x1x256xf32>
    %16 = arith.subf %12, %15 : vector<4x1x256xf32>
    %17 = math.exp %16 : vector<4x1x256xf32>
    %18 = vector.broadcast %15 : vector<4x1x256xf32> to vector<4x256x256xf32>
    %19 = arith.subf %11, %18 : vector<4x256x256xf32>
    %20 = math.exp %19 : vector<4x256x256xf32>
    %c0_17 = arith.constant 0 : index
    %c0_18 = arith.constant 0 : index
    %c0_19 = arith.constant 0 : index
    %21 = vector.load %arg8[%c0_17, %c0_18, %c0_19] : memref<4x1x256xf32, #tpu.memory_space<vmem>>, vector<4x1x256xf32>
    %22 = arith.mulf %17, %21 : vector<4x1x256xf32>
    %cst_20 = arith.constant dense<0.000000e+00> : vector<4x256xf32>
    %23 = vector.multi_reduction <add>, %20, %cst_20 [1] : vector<4x256x256xf32> to vector<4x256xf32>
    %24 = vector.shape_cast %23 : vector<4x256xf32> to vector<4x1x256xf32>
    %25 = arith.addf %22, %24 : vector<4x1x256xf32>
    %c0_21 = arith.constant 0 : index
    %c0_22 = arith.constant 0 : index
    %c0_23 = arith.constant 0 : index
    %26 = vector.load %arg8[%c0_21, %c0_22, %c0_23] : memref<4x1x256xf32, #tpu.memory_space<vmem>>, vector<4x1x256xf32>
    tpu.vector_store %arg8[%c0_21, %c0_22, %c0_23], %25 {strides = array<i32>} : memref<4x1x256xf32, #tpu.memory_space<vmem>>, vector<4x1x256xf32>,
    %c0_24 = arith.constant 0 : index
    %c0_25 = arith.constant 0 : index
    %c0_26 = arith.constant 0 : index
    %27 = vector.load %arg7[%c0_24, %c0_25, %c0_26] : memref<4x1x256xf32, #tpu.memory_space<vmem>>, vector<4x1x256xf32>
    tpu.vector_store %arg7[%c0_24, %c0_25, %c0_26], %15 {strides = array<i32>} : memref<4x1x256xf32, #tpu.memory_space<vmem>>, vector<4x1x256xf32>,
    %cst_27 = arith.constant dense<0.000000e+00> : vector<4x16x256xf32>
    %28 = tpu.matmul %10, %20, %cst_27 {dimension_numbers = #tpu.dot_dimension_numbers<[2], [1], [1], [2], [0, 0, 0, 1, 1, 2], [0], [0]>} : vector<4x16x256xf32>, vector<4x256x256xf32>, vector<4x16x256xf32> -> vector<4x16x256xf32>
    %c0_28 = arith.constant 0 : index
    %c0_29 = arith.constant 0 : index
    %c0_30 = arith.constant 0 : index
    %29 = vector.load %arg9[%c0_28, %c0_29, %c0_30] : memref<4x16x256xf32, #tpu.memory_space<vmem>>, vector<4x16x256xf32>
    %30 = vector.broadcast %17 : vector<4x1x256xf32> to vector<4x16x256xf32>
    %31 = arith.mulf %30, %29 : vector<4x16x256xf32>
    %32 = arith.addf %31, %28 : vector<4x16x256xf32>
    %c0_31 = arith.constant 0 : index
    %c0_32 = arith.constant 0 : index
    %c0_33 = arith.constant 0 : index
    %33 = vector.load %arg9[%c0_31, %c0_32, %c0_33] : memref<4x16x256xf32, #tpu.memory_space<vmem>>, vector<4x16x256xf32>
    tpu.vector_store %arg9[%c0_31, %c0_32, %c0_33], %32 {strides = array<i32>} : memref<4x16x256xf32, #tpu.memory_space<vmem>>, vector<4x16x256xf32>,
    %c0_i32_34 = arith.constant 0 : i32
    %34 = arith.cmpi eq, %arg2, %c0_i32_34 : i32
    %35 = arith.extui %34 : i1 to i32
    %c0_i32_35 = arith.constant 0 : i32
    %36 = arith.cmpi ne, %35, %c0_i32_35 : i32
    scf.if %36 {
      %c0_36 = arith.constant 0 : index
      %c0_37 = arith.constant 0 : index
      %c0_38 = arith.constant 0 : index
      %37 = vector.load %arg8[%c0_36, %c0_37, %c0_38] : memref<4x1x256xf32, #tpu.memory_space<vmem>>, vector<4x1x256xf32>
      %38 = tpu.reciprocal %37 {approx = true} : vector<4x1x256xf32> -> vector<4x1x256xf32>
      %c0_39 = arith.constant 0 : index
      %c0_40 = arith.constant 0 : index
      %c0_41 = arith.constant 0 : index
      %39 = vector.load %arg9[%c0_39, %c0_40, %c0_41] : memref<4x16x256xf32, #tpu.memory_space<vmem>>, vector<4x16x256xf32>
      %40 = vector.broadcast %38 : vector<4x1x256xf32> to vector<4x16x256xf32>
      %41 = arith.mulf %39, %40 : vector<4x16x256xf32>
      %c0_42 = arith.constant 0 : index
      %c0_43 = arith.constant 0 : index
      %c0_44 = arith.constant 0 : index
      %c0_45 = arith.constant 0 : index
      %42 = vector.load %arg6[%c0_42, %c0_43, %c0_44, %c0_45] : memref<1x4x16x256xf32, #tpu.memory_space<vmem>>, vector<1x4x16x256xf32>
      %43 = vector.shape_cast %42 : vector<1x4x16x256xf32> to vector<4x16x256xf32>
      %44 = vector.shape_cast %41 : vector<4x16x256xf32> to vector<1x4x16x256xf32>
      tpu.vector_store %arg6[%c0_42, %c0_43, %c0_44, %c0_45], %44 {strides = array<i32>} : memref<1x4x16x256xf32, #tpu.memory_space<vmem>>, vector<1x4x16x256xf32>,
    } else {
    }
    return
  }
  func.func @transform_0(%arg0: i32, %arg1: i32, %arg2: i32) -> (i32, i32, i32, i32) {
    %c0_i32 = arith.constant 0 : i32
    %c0_i32_0 = arith.constant 0 : i32
    %c0_i32_1 = arith.constant 0 : i32
    return %arg0, %c0_i32, %c0_i32_0, %arg1 : i32, i32, i32, i32
  }
  func.func @transform_1(%arg0: i32, %arg1: i32, %arg2: i32) -> (i32, i32, i32, i32) {
    %c1_i32 = arith.constant 1 : i32
    %c0_i32 = arith.constant 0 : i32
    %c0_i32_0 = arith.constant 0 : i32
    return %arg0, %c1_i32, %c0_i32, %arg2 : i32, i32, i32, i32
  }
  func.func @transform_2(%arg0: i32, %arg1: i32, %arg2: i32) -> (i32, i32, i32, i32) {
    %c2_i32 = arith.constant 2 : i32
    %c0_i32 = arith.constant 0 : i32
    %c0_i32_0 = arith.constant 0 : i32
    return %arg0, %c2_i32, %c0_i32, %arg2 : i32, i32, i32, i32
  }
  func.func @transform_3(%arg0: i32, %arg1: i32, %arg2: i32) -> (i32, i32, i32, i32) {
    %c0_i32 = arith.constant 0 : i32
    %c0_i32_0 = arith.constant 0 : i32
    %c0_i32_1 = arith.constant 0 : i32
    return %arg0, %c0_i32, %c0_i32_0, %arg1 : i32, i32, i32, i32
  }
}

</mosaic_0001>

<bundles_post_ra>
// kernel: tpu_custom_call.1
= control target key start
LH: loop header
LB: loop body
LE: loop exit
PB: predicated region body
PF: predicated region fallthrough
CT: control target
= control target key end

     0   :  { %s8362_s0 = inlined_call_operand.hbm [shape: f32[2,12,16,256], index: 0, kind: input, shape index: {}]   ;;  %s8363_s1 = inlined_call_operand.hbm [shape: f32[2,12,16,256], index: 1, kind: input, shape index: {}]   ;;  %s8364_s2 = inlined_call_operand.hbm [shape: f32[2,12,16,256], index: 2, kind: input, shape index: {}]   ;;  %s8365_s3 = inlined_call_operand.hbm [shape: f32[2,4,16,256], index: 3, kind: output, shape index: {}]  }
   0x1   :  { %8662 = sst [smem:[#allocation133_spill]] %s8363_s1 }
   0x2   :  { %8 = vsyncpa [#allocation6], 0 }
   0x3   :  { %10 = vsyncpa [#allocation6 + $0x1], 0 }
   0x4   :  { %11 = vsyncpa [#allocation9], 0 }
   0x5   :  { %13 = vsyncpa [#allocation9 + $0x1], 0 }
   0x6   :  { %14 = vsyncpa [#allocation7], 0 }
   0x7   :  { %16 = vsyncpa [#allocation7 + $0x1], 0  ;;  %s5195_s12 = smov 0   ;;  %s5197_s13 = smov 0  }
   0x8   :  { %s5199_s14 = smov 0   ;;  %s5201_s15 = smov 0  }
   0x9   :  { %s5203_s16 = smov 0   ;;  %s5205_s17 = smov 0  }
   0xa LB: > { %8663 = sst [smem:[#allocation15_spill]] %s5155_s14  ;;  %s5226_s18 = sadd.s32 4294967295, %s5167_s17   ;;  %s5167_s17 = sphi %s5205_s17, %s22_s17   ;;  %s5163_s16 = sphi %s5203_s16, %s9384_s16   ;;  %s5159_s15 = sphi %s5201_s15, %s9383_s15   ;;  %s5155_s14 = sphi %s5199_s14, %s9387_s14   ;;  %s5151_s13 = sphi %s5197_s13, %s9386_s13   ;;  %s5147_s12 = sphi %s5195_s12, %s9385_s12  }
   0xb   : > { %8664 = sst [smem:[#allocation16_spill]] %s5163_s16  ;;  %s4108_s19 = sadd.s32 4294967294, %s5167_s17  }
   0xc   : > { %8665 = sst [smem:[#allocation17_spill]] %s5167_s17  ;;  %s41_s20 = sadd.s32 1, %s5163_s16 }
   0xd   : > { %s50_s21 = sadd.s32 1, %s5155_s14  ;;  %p43_p0 = scmp.ge.s32.totalorder %s41_s20, 2 }
   0xe   : > { %p57_p1 = scmp.ne.s32.totalorder %s5155_s14, %s5151_s13  ;;  %p58_p2 = scmp.eq.s32.totalorder %s5167_s17, 0 }
   0xf   : > { %p63_p3 = scmp.ne.s32.totalorder %s5151_s13, %s5147_s12  ;;  %s9389_s20 = smov (%p43_p0, %s41_s20), 0 }
  0x10   : > { %8666 = sst [smem:[#allocation18_spill]] %s9389_s20  ;;  %p5238_p4 = por %p58_p2, %p57_p1 }
  0x11   : > { %p64_p5 = scmp.eq.s32.totalorder %s5226_s18, 0  ;;  %s45_s23 = ssub.s32 %s5163_s16, %s9389_s20 }
  0x12   : > { %p145_p6 = scmp.eq.s32.totalorder %s5226_s18, 1  ;;  %p48_p7 = scmp.eq.s32.totalorder %s45_s23, 0 }
  0x13   : > { %p5246_p8 = por %p64_p5, %p63_p3  ;;  %p151_p10 = scmp.eq.s32.totalorder %s4108_s19, 1 }
  0x14   : > { %p5250_p9 = por %p145_p6, %p57_p1  ;;  %p4110_p12 = scmp.ge.s32.totalorder %s5167_s17, 2 }
  0x15   : > { %s5255_s26 = scalar_select %p48_p7, %s5155_s14, %s50_s21  }
  0x16   : > { %p5257_p11 = por %p151_p10, %p63_p3  ;;  %p4407_p13 = scmp.lt.s32.totalorder %s5167_s17, 2 }
  0x17   : > { %8670 = sst [smem:[#allocation19_spill]] %s5255_s26  ;;  %s171_s28 = sand.u32 1, %s5155_s14  }
  0x18   : > { %s8671_s27 = scalar_select %p5257_p11, 1, 0 }
  0x19   : > { %s5264_s29 = sshll.u32 %s171_s28, 7  ;;  %s5267_s30 = smul.u32 384, %s5163_s16 }
  0x1a   : > { %8672 = sst [smem:[#allocation20_spill]] %s8671_s27  ;;  %p5271_p0 = pnand %p4407_p13, %p5238_p4 }
  0x1b   : > { %s195_s5 = sand.u32 1, %s5167_s17   ;;  %s8674_s1 = sld [smem:[#allocation133_spill]] }
  0x1c   : > { %s199_s10 = scalar_lea.vmem [#allocation8], %s5264_s29  ;;  %p4117_p1 = scmp.ge.s32.totalorder %s5167_s17, 1 }
  0x1d   : > { %s210_s11 = sshll.u32 %s199_s10, 4  ;;  %s196_s21 = scalar_lea.sflag [#allocation9], %s195_s5  ;;  %s211_s11 = int_to_ptr.vmem [resolvable:$true] %s210_s11 }
  0x1e   : > { %s5169_s22 = smov 256   ;;  %s5170_s23 = smov 16  }
  0x1f   : > { %p243_p2 = scmp.lt.s32.totalorder %s5167_s17, 3  ;;  %s175_s10 = scalar_lea.vmem [#allocation5], %s5264_s29 }
  0x20   : > { %s172_s5 = scalar_lea.sflag [#allocation6], %s171_s28  ;;  %s224_s26 = scalar_lea.vmem [#allocation10], %s5264_s29 }
  0x21   : > { %s4011_s8 = scalar_lea.hbm %s8674_s1, %s5267_s30  ;;  %p5285_p3 = pnand %p4117_p1, %p243_p2 }
  0x22   : > { %s4012_s9 = scalar_lea.hbm %s4011_s8, 128  ;;  %s185_s1 = sshll.u32 %s175_s10, 4  ;;  %s186_s1 = int_to_ptr.vmem [resolvable:$true] %s185_s1 }
  0x23   : > { %s208_s19 = sshll.u32 %s4012_s9, 4  ;;  %s182_s9 = scalar_lea.hbm %s8362_s0, %s5267_s30  ;;  %s209_s19 = int_to_ptr.hbm [resolvable:$true] %s208_s19 }
  0x24   : > { %4399 = dma.hbm_to_vmem [thread:$0]  (!%p5271_p0), %s209_s19, 2048, %s211_s11, %s196_s21, %s5169_s22, %s5169_s22, %s5170_s23  }
  0x25   : > { %s183_s20 = sshll.u32 %s182_s9, 4  ;;  %s4020_s19 = scalar_lea.hbm %s8364_s2, %s5267_s30  ;;  %s184_s20 = int_to_ptr.hbm [resolvable:$true] %s183_s20 }
  0x26   : > { %4396 = dma.hbm_to_vmem [thread:$0]  (!%p5271_p0), %s184_s20, 2048, %s186_s1, %s172_s5, %s5169_s22, %s5169_s22, %s5170_s23  }
  0x27   : > { %s235_s14 = sshll.u32 %s224_s26, 4  ;;  %s4021_s17 = scalar_lea.hbm %s4020_s19, 256  ;;  %s236_s14 = int_to_ptr.vmem [resolvable:$true] %s235_s14 }
  0x28   : > { %s233_s27 = sshll.u32 %s4021_s17, 4  ;;  %247 = sbr.rel (%p5285_p3) target bundleno = 1313 (0x521), region = 32  ;;  %s234_s27 = int_to_ptr.hbm [resolvable:$true] %s233_s27 }
  0x29   : > { %4402 = dma.hbm_to_vmem [thread:$0]  (!%p5271_p0), %s234_s27, 2048, %s236_s14, %s196_s21, %s5169_s22, %s5169_s22, %s5170_s23  }
  0x2d   : > { %s5306_s28 = sand.u32 1, %s5151_s13  }
  0x2e   : > { %s5309_s1 = sshll.u32 %s5306_s28, 7  ;;  %s250_s16 = scalar_lea.sflag [#allocation6], %s5306_s28 }
  0x2f   : > { %s5313_s20 = scalar_lea.vmem [#allocation5], %s5309_s1 }
  0x30   : > { %5134 = dma.done.wait (%p5246_p8), %s250_s16, 2048  }
  0x31   : > { %5136 = vsyncadd (%p5246_p8), %s250_s16, 4294965248  ;;  %s259_s14 = sand.u32 1, %s5226_s18   ;;  %s5321_s26 = scalar_lea.vmem [#allocation8], %s5309_s1 }
  0x32   : > { %s260_s17 = scalar_lea.sflag [#allocation9], %s259_s14 }
  0x33   : > { %5138 = dma.done.wait (%p5246_p8), %s260_s17, 4096  }
  0x34   : > { %5140 = vsyncadd (%p5246_p8), %s260_s17, 4294963200  ;;  %v379_v0 = vld [vmem:[%s5321_s26 + $0x20] sm:$0xff]  ;;  %v381_v2 = vld [vmem:[%s5321_s26 + $0x30] sm:$0xff]  ;;  %vm471_vm0 = vcmask 130048   ;;  %vm2264_vm2 = vcmask 1040384   ;;  %s6936_s18 = scalar_lea.vmem [#allocation10], %s5309_s1 }
  0x35   : > { %v375_v1 = vld [vmem:[%s5321_s26] sm:$0xff]  ;;  %794 = vxpose.xlu1.b32.start [1/2] (short) %v379_v0, 128  ;;  %v377_v3 = vld [vmem:[%s5321_s26 + $0x10] sm:$0xff]  ;;  %v376_v4 = vld [vmem:[%s5321_s26 + $0x8] sm:$0xff]  ;;  %s8039_s24 = scalar_lea.vmem [#allocation11], %s5309_s1  ;;  %s4383_s27 = sshll.u32 %s5159_s15, 7 }
  0x36   : > { %407 = vxpose.xlu0.b32.start [1/2] (short) %v375_v1, 128  ;;  %v345_v5 = vld [vmem:[%s5313_s20 + $0x10] sm:$0xff]  ;;  %439 = vxpose.xlu2.b32.start [1/2] (short) %v376_v4, 128  ;;  %v346_v7 = vld [vmem:[%s5313_s20 + $0x18] sm:$0xff]  ;;  %v380_v14 = vld [vmem:[%s5321_s26 + $0x28] sm:$0xff]  ;;  %s3962_s4 = scalar_lea.hbm %s8365_s3, %s4383_s27  ;;  %s3963_s21 = sshll.u32 %s8039_s24, 4  ;;  %s3964_s21 = int_to_ptr.vmem [resolvable:$true] %s3963_s21 }
  0x37   : > { %v361_v6 = vmul.f32 0.25, %v345_v5  ;;  %v349_v8 = vld [vmem:[%s5313_s20 + $0x30] sm:$0xff]  ;;  %v350_v9 = vld [vmem:[%s5313_s20 + $0x38] sm:$0xff]  ;;  %v362_v10 = vmul.f32 0.25, %v346_v7  ;;  %v343_v15 = vld [vmem:[%s5313_s20] sm:$0xff]  ;;  %s3965_s22 = sshll.u32 %s3962_s4, 4  ;;  %s3966_s22 = int_to_ptr.hbm [resolvable:$true] %s3965_s22 }
  0x38   : > { %v365_v11 = vmul.f32 0.25, %v349_v8  ;;  %v366_v12 = vmul.f32 0.25, %v350_v9  ;;  %v378_v13 = vld [vmem:[%s5321_s26 + $0x18] sm:$0xff]  ;;  %v344_v16 = vld [vmem:[%s5313_s20 + $0x8] sm:$0xff]  ;;  %v347_v17 = vld [vmem:[%s5313_s20 + $0x20] sm:$0xff]  ;;  %v359_v18 = vmul.f32 0.25, %v343_v15 }
  0x39   : > { %582 = vmatpush.msra.mxu0 %v361_v6  ;;  %695 = vmatpush.msra.mxu1 %v362_v10  ;;  %v360_v19 = vmul.f32 0.25, %v344_v16  ;;  %v363_v20 = vmul.f32 0.25, %v347_v17  ;;  %v348_v21 = vld [vmem:[%s5313_s20 + $0x28] sm:$0xff]  ;;  %v382_v23 = vld [vmem:[%s5321_s26 + $0x38] sm:$0xff]  ;;  %v353_v26 = vld [vmem:[%s5313_s20 + $0x50] sm:$0xff]  ;;  %s3949_s15 = scalar_lea.sflag [#allocation7], %s5306_s28 }
  0x3a   : > { %968 = vmatpush.msra.mxu2 %v365_v11  ;;  %1081 = vmatpush.msra.mxu3 %v366_v12  ;;  %v364_v22 = vmul.f32 0.25, %v348_v21  ;;  %v354_v24 = vld [vmem:[%s5313_s20 + $0x58] sm:$0xff]  ;;  %v369_v27 = vmul.f32 0.25, %v353_v26  ;;  %v357_v29 = vld [vmem:[%s5313_s20 + $0x70] sm:$0xff]  ;;  %v383_v48 = vld [vmem:[%s5321_s26 + $0x40] sm:$0xff]  ;;  %s5095_s23 = sshra.s32 %s3966_s22, 4  ;;  %s5096_s23 = int_to_ptr.hbm [resolvable:$true] %s5095_s23 }
  0x3b   : > { %583 = vmatpush.msra.mxu0 %v359_v18  ;;  %696 = vmatpush.msra.mxu1 %v360_v19  ;;  %v370_v25 = vmul.f32 0.25, %v354_v24  ;;  %v358_v28 = vld [vmem:[%s5313_s20 + $0x78] sm:$0xff]  ;;  %v373_v31 = vmul.f32 0.25, %v357_v29  ;;  %v385_v51 = vld [vmem:[%s5321_s26 + $0x50] sm:$0xff]  ;;  %v387_v52 = vld [vmem:[%s5321_s26 + $0x60] sm:$0xff]  ;;  %s5097_s6 = scalar_lea.hbm %s5096_s23, 128  ;;  %p5102_p7 = scmp.lt.s32.totalorder %s5096_s23, %s8365_s3 }
  0x3c   : > { %969 = vmatpush.msra.mxu2 %v363_v20  ;;  %1082 = vmatpush.msra.mxu3 %v364_v22  ;;  %v374_v30 = vmul.f32 0.25, %v358_v28  ;;  %v389_v55 = vld [vmem:[%s5321_s26 + $0x70] sm:$0xff]  ;;  %v352_v5 = vld [vmem:[%s5313_s20 + $0x48] sm:$0xff]  ;;  %v351_v7 = vld [vmem:[%s5313_s20 + $0x40] sm:$0xff]  ;;  %p5098_p4 = scmp.ne.s32.totalorder %s5096_s23, %s5097_s6  ;;  %s5101_s9 = scalar_lea.hbm %s8365_s3, 256 }
  0x3d   : > { %795 = vxpose.xlu1.b32.end [2/2] (short) %v381_v2, 128  ;;  %1467 = vmatpush.msrb.mxu1 %v370_v25  ;;  %v368_v6 = vmul.f32 0.25, %v352_v5  ;;  %v367_v8 = vmul.f32 0.25, %v351_v7  ;;  %v356_v12 = vld [vmem:[%s5313_s20 + $0x68] sm:$0xff]  ;;  %v355_v16 = vld [vmem:[%s5313_s20 + $0x60] sm:$0xff]  ;;  %v386_v7 = vld [vmem:[%s5321_s26 + $0x58] sm:$0xff]  ;;  %p5103_p8 = scmp.lt.s32.totalorder %s5101_s9, %s5097_s6 }
  0x3e   : > { %408 = vxpose.xlu0.b32.end [2/2] (short) %v377_v3, 128  ;;  %440 = vxpose.xlu2.b32.end [2/2] (short) %v378_v13, 128  ;;  %v372_v13 = vmul.f32 0.25, %v356_v12  ;;  %v371_v17 = vmul.f32 0.25, %v355_v16  ;;  %p5099_p5 = pnand %p5098_p4, %p5250_p9 }
  0x3f   : > { %1354 = vmatpush.msrb.mxu0 %v369_v27  ;;  %1853 = vmatpush.msrb.mxu3 %v374_v30  ;;  %p5104_p10 = por %p5103_p8, %p5102_p7 }
  0x40   : > { %1740 = vmatpush.msrb.mxu2 %v373_v31  ;;  %1468 = vmatpush.msrb.mxu1 %v368_v6  ;;  %v390_v6 = vld [vmem:[%s5321_s26 + $0x78] sm:$0xff]  ;;  %p5100_p6 = pneg %p5099_p5 }
  0x41   : > { %1355 = vmatpush.msrb.mxu0 %v367_v8  ;;  %1854 = vmatpush.msrb.mxu3 %v372_v13 }
  0x42   : > { %1741 = vmatpush.msrb.mxu2 %v371_v17  ;;  %p5105_p13 = pnand %p5104_p10, %p5100_p6 }
  0xb5   : > { %1180 = vxpose.xlu1.b32.start [1/2] (short) %v383_v48, 128 }
  0xb6   : > { %826 = vxpose.xlu0.b32.start [1/2] (short) %v380_v14, 128  ;;  %1566 = vxpose.xlu2.b32.start [1/2] (short) %v387_v52, 128 }
  0xbd   : > { %1181 = vxpose.xlu1.b32.end [2/2] (short) %v385_v51, 128 }
  0xbe   : > { %827 = vxpose.xlu0.b32.end [2/2] (short) %v382_v23, 128  ;;  %1567 = vxpose.xlu2.b32.end [2/2] (short) %v389_v55, 128 }
  0xcf   : > { %v455_v60 = vpop.trf.xlu2 }
  0xd7   : > { %v456_v63 = vpop.trf.xlu2 }
  0xd9   : > { %v810_v32 = vpop.trf.xlu1 }
  0xda   : > { %v423_v33 = vpop.trf.xlu0  ;;  %4186 = vmatmul.msk.f32.vlgmr.msra.gmra.mxu2 %vm471_vm0, %v810_v32  ;;  %4218 = vmatmul.msk.f32.vlgmr.msra.gmra.mxu3 %vm471_vm0, %v810_v32 }
  0xdb   : > { %4122 = vmatmul.msk.f32.vlgmr.msra.gmra.mxu0 %vm471_vm0, %v423_v33  ;;  %4154 = vmatmul.msk.f32.vlgmr.msra.gmra.mxu1 %vm471_vm0, %v423_v33 }
  0xdf   : > { %v457_v2 = vpop.trf.xlu2 }
  0xe1   : > { %v811_v34 = vpop.trf.xlu1 }
  0xe2   : > { %v424_v35 = vpop.trf.xlu0  ;;  %4187 = vmatmul.msk.f32.gmra.mxu2 %vm471_vm0, %v811_v34  ;;  %4219 = vmatmul.msk.f32.gmra.mxu3 %vm471_vm0, %v811_v34 }
  0xe3   : > { %4123 = vmatmul.msk.f32.gmra.mxu0 %vm471_vm0, %v424_v35  ;;  %4155 = vmatmul.msk.f32.gmra.mxu1 %vm471_vm0, %v424_v35 }
  0xe7   : > { %v458_v9 = vpop.trf.xlu2 }
  0xe9   : > { %v812_v36 = vpop.trf.xlu1 }
  0xea   : > { %v425_v37 = vpop.trf.xlu0  ;;  %4188 = vmatmul.msk.f32.gmra.mxu2 %vm471_vm0, %v812_v36  ;;  %4220 = vmatmul.msk.f32.gmra.mxu3 %vm471_vm0, %v812_v36 }
  0xeb   : > { %4124 = vmatmul.msk.f32.gmra.mxu0 %vm471_vm0, %v425_v37  ;;  %4156 = vmatmul.msk.f32.gmra.mxu1 %vm471_vm0, %v425_v37 }
  0xef   : > { %v459_v18 = vpop.trf.xlu2 }
  0xf1   : > { %v813_v38 = vpop.trf.xlu1 }
  0xf2   : > { %v426_v39 = vpop.trf.xlu0  ;;  %4189 = vmatmul.msk.f32.gmra.mxu2 %vm471_vm0, %v813_v38  ;;  %4221 = vmatmul.msk.f32.gmra.mxu3 %vm471_vm0, %v813_v38 }
  0xf3   : > { %4125 = vmatmul.msk.f32.gmra.mxu0 %vm471_vm0, %v426_v39  ;;  %4157 = vmatmul.msk.f32.gmra.mxu1 %vm471_vm0, %v426_v39 }
  0xf7   : > { %v460_v24 = vpop.trf.xlu2 }
  0xf9   : > { %v814_v40 = vpop.trf.xlu1 }
  0xfa   : > { %v427_v41 = vpop.trf.xlu0  ;;  %4190 = vmatmul.msk.f32.gmra.mxu2 %vm471_vm0, %v814_v40  ;;  %4222 = vmatmul.msk.f32.gmra.mxu3 %vm471_vm0, %v814_v40 }
  0xfb   : > { %4126 = vmatmul.msk.f32.gmra.mxu0 %vm471_vm0, %v427_v41  ;;  %4158 = vmatmul.msk.f32.gmra.mxu1 %vm471_vm0, %v427_v41 }
  0xff   : > { %v461_v30 = vpop.trf.xlu2 }
 0x101   : > { %v815_v42 = vpop.trf.xlu1 }
 0x102   : > { %v428_v43 = vpop.trf.xlu0  ;;  %4191 = vmatmul.msk.f32.gmra.mxu2 %vm471_vm0, %v815_v42  ;;  %4223 = vmatmul.msk.f32.gmra.mxu3 %vm471_vm0, %v815_v42 }
 0x103   : > { %4127 = vmatmul.msk.f32.gmra.mxu0 %vm471_vm0, %v428_v43  ;;  %4159 = vmatmul.msk.f32.gmra.mxu1 %vm471_vm0, %v428_v43 }
 0x107   : > { %v462_v36 = vpop.trf.xlu2 }
 0x109   : > { %v816_v44 = vpop.trf.xlu1 }
 0x10a   : > { %v429_v45 = vpop.trf.xlu0  ;;  %4192 = vmatmul.msk.f32.gmra.mxu2 %vm471_vm0, %v816_v44  ;;  %4224 = vmatmul.msk.f32.gmra.mxu3 %vm471_vm0, %v816_v44 }
 0x10b   : > { %4128 = vmatmul.msk.f32.gmra.mxu0 %vm471_vm0, %v429_v45  ;;  %4160 = vmatmul.msk.f32.gmra.mxu1 %vm471_vm0, %v429_v45 }
 0x10f   : > { %v463_v42 = vpop.trf.xlu2 }
 0x111   : > { %v817_v46 = vpop.trf.xlu1 }
 0x112   : > { %v430_v47 = vpop.trf.xlu0  ;;  %4193 = vmatmul.msk.f32.gmra.mxu2 %vm471_vm0, %v817_v46  ;;  %4225 = vmatmul.msk.f32.gmra.mxu3 %vm471_vm0, %v817_v46 }
 0x113   : > { %4129 = vmatmul.msk.f32.gmra.mxu0 %vm471_vm0, %v430_v47  ;;  %4161 = vmatmul.msk.f32.gmra.mxu1 %vm471_vm0, %v430_v47 }
 0x117   : > { %v464_v48 = vpop.trf.xlu2 }
 0x119   : > { %v818_v49 = vpop.trf.xlu1 }
 0x11a   : > { %v431_v50 = vpop.trf.xlu0  ;;  %4194 = vmatmul.msk.f32.gmra.mxu2 %vm471_vm0, %v818_v49  ;;  %4226 = vmatmul.msk.f32.gmra.mxu3 %vm471_vm0, %v818_v49 }
 0x11b   : > { %4130 = vmatmul.msk.f32.gmra.mxu0 %vm471_vm0, %v431_v50  ;;  %4162 = vmatmul.msk.f32.gmra.mxu1 %vm471_vm0, %v431_v50 }
 0x121   : > { %v819_v53 = vpop.trf.xlu1 }
 0x122   : > { %v432_v54 = vpop.trf.xlu0  ;;  %4195 = vmatmul.msk.f32.gmra.mxu2 %vm471_vm0, %v819_v53  ;;  %4227 = vmatmul.msk.f32.gmra.mxu3 %vm471_vm0, %v819_v53 }
 0x123   : > { %4131 = vmatmul.msk.f32.gmra.mxu0 %vm471_vm0, %v432_v54  ;;  %4163 = vmatmul.msk.f32.gmra.mxu1 %vm471_vm0, %v432_v54  ;;  %v465_v54 = vpop.trf.xlu2 }
 0x129   : > { %v820_v56 = vpop.trf.xlu1 }
 0x12a   : > { %v433_v57 = vpop.trf.xlu0  ;;  %4196 = vmatmul.msk.f32.gmra.mxu2 %vm471_vm0, %v820_v56  ;;  %4228 = vmatmul.msk.f32.gmra.mxu3 %vm471_vm0, %v820_v56 }
 0x12b   : > { %4132 = vmatmul.msk.f32.gmra.mxu0 %vm471_vm0, %v433_v57  ;;  %4164 = vmatmul.msk.f32.gmra.mxu1 %vm471_vm0, %v433_v57 }
 0x131   : > { %v821_v58 = vpop.trf.xlu1 }
 0x132   : > { %v434_v59 = vpop.trf.xlu0  ;;  %4197 = vmatmul.msk.f32.gmra.mxu2 %vm471_vm0, %v821_v58  ;;  %4229 = vmatmul.msk.f32.gmra.mxu3 %vm471_vm0, %v821_v58 }
 0x133   : > { %4133 = vmatmul.msk.f32.gmra.mxu0 %vm471_vm0, %v434_v59  ;;  %4165 = vmatmul.msk.f32.gmra.mxu1 %vm471_vm0, %v434_v59 }
 0x139   : > { %v822_v61 = vpop.trf.xlu1 }
 0x13a   : > { %v435_v62 = vpop.trf.xlu0  ;;  %4198 = vmatmul.msk.f32.gmra.mxu2 %vm471_vm0, %v822_v61  ;;  %4230 = vmatmul.msk.f32.gmra.mxu3 %vm471_vm0, %v822_v61 }
 0x13b   : > { %4134 = vmatmul.msk.f32.gmra.mxu0 %vm471_vm0, %v435_v62  ;;  %4166 = vmatmul.msk.f32.gmra.mxu1 %vm471_vm0, %v435_v62  ;;  %v388_v62 = vld [vmem:[%s5321_s26 + $0x68] sm:$0xff] }
 0x13c   : > { %1598 = vxpose.xlu1.b32.start [1/2] (short) %v388_v62, 128 }
 0x141   : > { %v823_v0 = vpop.trf.xlu1 }
 0x142   : > { %v436_v1 = vpop.trf.xlu0  ;;  %4199 = vmatmul.msk.f32.gmra.mxu2 %vm471_vm0, %v823_v0  ;;  %4231 = vmatmul.msk.f32.gmra.mxu3 %vm471_vm0, %v823_v0 }
 0x143   : > { %4135 = vmatmul.msk.f32.gmra.mxu0 %vm471_vm0, %v436_v1  ;;  %4167 = vmatmul.msk.f32.gmra.mxu1 %vm471_vm0, %v436_v1 }
 0x144   : > { %1599 = vxpose.xlu1.b32.end [2/2] (short) %v390_v6, 128 }
 0x149   : > { %v824_v3 = vpop.trf.xlu1 }
 0x14a   : > { %v437_v4 = vpop.trf.xlu0  ;;  %4200 = vmatmul.msk.f32.gmra.mxu2 %vm471_vm0, %v824_v3  ;;  %4232 = vmatmul.msk.f32.gmra.mxu3 %vm471_vm0, %v824_v3 }
 0x14b   : > { %4136 = vmatmul.msk.f32.gmra.mxu0 %vm471_vm0, %v437_v4  ;;  %4168 = vmatmul.msk.f32.gmra.mxu1 %vm471_vm0, %v437_v4 }
 0x151   : > { %v825_v10 = vpop.trf.xlu1 }
 0x152   : > { %v438_v11 = vpop.trf.xlu0  ;;  %4201 = vmatmul.msk.f32.gmra.mxu2 %vm471_vm0, %v825_v10  ;;  %4233 = vmatmul.msk.f32.gmra.mxu3 %vm471_vm0, %v825_v10 }
 0x153   : > { %4137 = vmatmul.msk.f32.gmra.mxu0 %vm471_vm0, %v438_v11  ;;  %4169 = vmatmul.msk.f32.gmra.mxu1 %vm471_vm0, %v438_v11 }
 0x158   : > { %v5418_v14 = vpop.f32.mrf.mxu0  ;;  %v5420_v15 = vpop.f32.mrf.mxu1 }
 0x159   : > { %v1196_v62 = vpop.trf.xlu1 }
 0x15a   : > { %v842_v19 = vpop.trf.xlu0 }
 0x15b   : > { %4138 = vmatmul.msk.f32.gmra.mxu0 %vm471_vm0, %v455_v60  ;;  %4170 = vmatmul.msk.f32.gmra.mxu1 %vm471_vm0, %v455_v60  ;;  %v466_v60 = vpop.trf.xlu2 }
 0x15c   : > { %4202 = vmatmul.msk.f32.gmra.mxu2 %vm471_vm0, %v842_v19  ;;  %4234 = vmatmul.msk.f32.gmra.mxu3 %vm471_vm0, %v842_v19 }
 0x15d   : > { %v5427_v20 = vpop.f32.mrf.mxu2  ;;  %v5429_v21 = vpop.f32.mrf.mxu3 }
 0x15e   : > { %8676 = vst [vmem:[#allocation21_spill] sm:$0xff] %v5427_v20 }
 0x15f   : > { %8677 = vst [vmem:[#allocation22_spill] sm:$0xff] %v5429_v21 }
 0x160   : > { %v5431_v22 = vpop.f32.mrf.mxu0  ;;  %v5433_v23 = vpop.f32.mrf.mxu1 }
 0x161   : > { %8678 = vst [vmem:[#allocation23_spill] sm:$0xff] %v5431_v22 }
 0x162   : > { %8679 = vst [vmem:[#allocation24_spill] sm:$0xff] %v5433_v23  ;;  %v843_v25 = vpop.trf.xlu0 }
 0x163   : > { %4139 = vmatmul.msk.f32.gmra.mxu0 %vm471_vm0, %v456_v63  ;;  %4171 = vmatmul.msk.f32.gmra.mxu1 %vm471_vm0, %v456_v63  ;;  %v384_v63 = vld [vmem:[%s5321_s26 + $0x48] sm:$0xff]  ;;  %v467_v4 = vpop.trf.xlu2 }
 0x164   : > { %4203 = vmatmul.msk.f32.gmra.mxu2 %vm471_vm0, %v843_v25  ;;  %4235 = vmatmul.msk.f32.gmra.mxu3 %vm471_vm0, %v843_v25 }
 0x165   : > { %v5439_v26 = vpop.f32.mrf.mxu2  ;;  %v5441_v27 = vpop.f32.mrf.mxu3  ;;  %1212 = vxpose.xlu0.b32.start [1/2] (short) %v384_v63, 128 }
 0x166   : > { %8680 = vst [vmem:[#allocation25_spill] sm:$0xff] %v5439_v26 }
 0x167   : > { %8681 = vst [vmem:[#allocation26_spill] sm:$0xff] %v5441_v27 }
 0x168   : > { %v5443_v28 = vpop.f32.mrf.mxu0  ;;  %v5445_v29 = vpop.f32.mrf.mxu1 }
 0x169   : > { %8682 = vst [vmem:[#allocation27_spill] sm:$0xff] %v5445_v29 }
 0x16a   : > { %v844_v31 = vpop.trf.xlu0 }
 0x16b   : > { %4140 = vmatmul.msk.f32.gmra.mxu0 %vm471_vm0, %v457_v2  ;;  %4172 = vmatmul.msk.f32.gmra.mxu1 %vm471_vm0, %v457_v2  ;;  %v468_v12 = vpop.trf.xlu2 }
 0x16c   : > { %4204 = vmatmul.msk.f32.gmra.mxu2 %vm471_vm0, %v844_v31  ;;  %4236 = vmatmul.msk.f32.gmra.mxu3 %vm471_vm0, %v844_v31 }
 0x16d   : > { %v5451_v32 = vpop.f32.mrf.mxu2  ;;  %v5453_v33 = vpop.f32.mrf.mxu3  ;;  %1213 = vxpose.xlu0.b32.end [2/2] (short) %v386_v7, 128 }
 0x16e   : > { %8683 = vst [vmem:[#allocation28_spill] sm:$0xff] %v5451_v32 }
 0x16f   : > { %8684 = vst [vmem:[#allocation29_spill] sm:$0xff] %v5453_v33 }
 0x170   : > { %v5455_v34 = vpop.f32.mrf.mxu0  ;;  %v5457_v35 = vpop.f32.mrf.mxu1 }
 0x172   : > { %v845_v37 = vpop.trf.xlu0 }
 0x173   : > { %4141 = vmatmul.msk.f32.gmra.mxu0 %vm471_vm0, %v458_v9  ;;  %4173 = vmatmul.msk.f32.gmra.mxu1 %vm471_vm0, %v458_v9 }
 0x174   : > { %4205 = vmatmul.msk.f32.gmra.mxu2 %vm471_vm0, %v845_v37  ;;  %4237 = vmatmul.msk.f32.gmra.mxu3 %vm471_vm0, %v845_v37 }
 0x175   : > { %v5463_v38 = vpop.f32.mrf.mxu2  ;;  %v5465_v39 = vpop.f32.mrf.mxu3 }
 0x176   : > { %8685 = vst [vmem:[#allocation30_spill] sm:$0xff] %v5463_v38 }
 0x177   : > { %8686 = vst [vmem:[#allocation31_spill] sm:$0xff] %v5465_v39 }
 0x178   : > { %v5467_v40 = vpop.f32.mrf.mxu0  ;;  %v5469_v41 = vpop.f32.mrf.mxu1 }
 0x179   : > { %8687 = vst [vmem:[#allocation32_spill] sm:$0xff] %v5467_v40 }
 0x17a   : > { %8688 = vst [vmem:[#allocation33_spill] sm:$0xff] %v5469_v41  ;;  %v846_v43 = vpop.trf.xlu0 }
 0x17b   : > { %4142 = vmatmul.msk.f32.gmra.mxu0 %vm471_vm0, %v459_v18  ;;  %4174 = vmatmul.msk.f32.gmra.mxu1 %vm471_vm0, %v459_v18 }
 0x17c   : > { %4206 = vmatmul.msk.f32.gmra.mxu2 %vm471_vm0, %v846_v43  ;;  %4238 = vmatmul.msk.f32.gmra.mxu3 %vm471_vm0, %v846_v43 }
 0x17d   : > { %v5475_v44 = vpop.f32.mrf.mxu2  ;;  %v5477_v45 = vpop.f32.mrf.mxu3 }
 0x17e   : > { %8689 = vst [vmem:[#allocation34_spill] sm:$0xff] %v5475_v44 }
 0x17f   : > { %8690 = vst [vmem:[#allocation35_spill] sm:$0xff] %v5477_v45 }
 0x180   : > { %v5479_v46 = vpop.f32.mrf.mxu0  ;;  %v5481_v47 = vpop.f32.mrf.mxu1 }
 0x181   : > { %8691 = vst [vmem:[#allocation36_spill] sm:$0xff] %v5481_v47 }
 0x182   : > { %v847_v49 = vpop.trf.xlu0 }
 0x183   : > { %4143 = vmatmul.msk.f32.gmra.mxu0 %vm471_vm0, %v460_v24  ;;  %4175 = vmatmul.msk.f32.gmra.mxu1 %vm471_vm0, %v460_v24  ;;  %v469_v24 = vpop.trf.xlu2 }
 0x184   : > { %4207 = vmatmul.msk.f32.gmra.mxu2 %vm471_vm0, %v847_v49  ;;  %4239 = vmatmul.msk.f32.gmra.mxu3 %vm471_vm0, %v847_v49 }
 0x185   : > { %v5487_v50 = vpop.f32.mrf.mxu2  ;;  %v5489_v51 = vpop.f32.mrf.mxu3 }
 0x186   : > { %8692 = vst [vmem:[#allocation37_spill] sm:$0xff] %v5487_v50 }
 0x187   : > { %8693 = vst [vmem:[#allocation38_spill] sm:$0xff] %v5489_v51 }
 0x188   : > { %v5491_v52 = vpop.f32.mrf.mxu0  ;;  %v5493_v53 = vpop.f32.mrf.mxu1 }
 0x18a   : > { %v848_v55 = vpop.trf.xlu0 }
 0x18b   : > { %4144 = vmatmul.msk.f32.gmra.mxu0 %vm471_vm0, %v461_v30  ;;  %4176 = vmatmul.msk.f32.gmra.mxu1 %vm471_vm0, %v461_v30  ;;  %v470_v43 = vpop.trf.xlu2 }
 0x18c   : > { %4208 = vmatmul.msk.f32.gmra.mxu2 %vm471_vm0, %v848_v55  ;;  %4240 = vmatmul.msk.f32.gmra.mxu3 %vm471_vm0, %v848_v55 }
 0x18d   : > { %v5499_v56 = vpop.f32.mrf.mxu2  ;;  %v5501_v57 = vpop.f32.mrf.mxu3 }
 0x18e   : > { %8694 = vst [vmem:[#allocation39_spill] sm:$0xff] %v5499_v56 }
 0x18f   : > { %8695 = vst [vmem:[#allocation40_spill] sm:$0xff] %v5501_v57 }
 0x190   : > { %v5503_v58 = vpop.f32.mrf.mxu0  ;;  %v5505_v59 = vpop.f32.mrf.mxu1 }
 0x191   : > { %8696 = vst [vmem:[#allocation41_spill] sm:$0xff] %v5505_v59 }
 0x192   : > { %v849_v61 = vpop.trf.xlu0 }
 0x193   : > { %4145 = vmatmul.msk.f32.gmra.mxu0 %vm471_vm0, %v462_v36  ;;  %4177 = vmatmul.msk.f32.gmra.mxu1 %vm471_vm0, %v462_v36 }
 0x194   : > { %4209 = vmatmul.msk.f32.gmra.mxu2 %vm471_vm0, %v849_v61  ;;  %4241 = vmatmul.msk.f32.gmra.mxu3 %vm471_vm0, %v849_v61 }
 0x195   : > { %v5513_v0 = vpop.f32.mrf.mxu2  ;;  %v5515_v1 = vpop.f32.mrf.mxu3 }
 0x196   : > { %8697 = vst [vmem:[#allocation42_spill] sm:$0xff] %v5513_v0 }
 0x197   : > { %8698 = vst [vmem:[#allocation43_spill] sm:$0xff] %v5515_v1 }
 0x198   : > { %v5517_v2 = vpop.f32.mrf.mxu0  ;;  %v5519_v3 = vpop.f32.mrf.mxu1 }
 0x199   : > { %8699 = vst [vmem:[#allocation44_spill] sm:$0xff] %v5517_v2 }
 0x19a   : > { %8700 = vst [vmem:[#allocation45_spill] sm:$0xff] %v5519_v3  ;;  %v850_v5 = vpop.trf.xlu0 }
 0x19b   : > { %4146 = vmatmul.msk.f32.gmra.mxu0 %vm471_vm0, %v463_v42  ;;  %4178 = vmatmul.msk.f32.gmra.mxu1 %vm471_vm0, %v463_v42 }
 0x19c   : > { %4210 = vmatmul.msk.f32.gmra.mxu2 %vm471_vm0, %v850_v5  ;;  %4242 = vmatmul.msk.f32.gmra.mxu3 %vm471_vm0, %v850_v5 }
 0x19d   : > { %v5527_v8 = vpop.f32.mrf.mxu2  ;;  %v5529_v9 = vpop.f32.mrf.mxu3 }
 0x19e   : > { %8701 = vst [vmem:[#allocation46_spill] sm:$0xff] %v5527_v8 }
 0x19f   : > { %8702 = vst [vmem:[#allocation47_spill] sm:$0xff] %v5529_v9 }
 0x1a0   : > { %v5531_v10 = vpop.f32.mrf.mxu0  ;;  %v5533_v11 = vpop.f32.mrf.mxu1 }
 0x1a1   : > { %8703 = vst [vmem:[#allocation48_spill] sm:$0xff] %v5533_v11 }
 0x1a2   : > { %v851_v13 = vpop.trf.xlu0 }
 0x1a3   : > { %4147 = vmatmul.msk.f32.gmra.mxu0 %vm471_vm0, %v464_v48  ;;  %4179 = vmatmul.msk.f32.gmra.mxu1 %vm471_vm0, %v464_v48 }
 0x1a4   : > { %4211 = vmatmul.msk.f32.gmra.mxu2 %vm471_vm0, %v851_v13  ;;  %4243 = vmatmul.msk.f32.gmra.mxu3 %vm471_vm0, %v851_v13  ;;  %v1197_v13 = vpop.trf.xlu1 }
 0x1a5   : > { %v5539_v16 = vpop.f32.mrf.mxu2  ;;  %v5541_v17 = vpop.f32.mrf.mxu3 }
 0x1a6   : > { %8704 = vst [vmem:[#allocation49_spill] sm:$0xff] %v5539_v16 }
 0x1a7   : > { %8705 = vst [vmem:[#allocation50_spill] sm:$0xff] %v5541_v17 }
 0x1a8   : > { %v5543_v18 = vpop.f32.mrf.mxu0  ;;  %v5545_v19 = vpop.f32.mrf.mxu1 }
 0x1a9   : > { %8706 = vst [vmem:[#allocation51_spill] sm:$0xff] %v5543_v18 }
 0x1aa   : > { %8707 = vst [vmem:[#allocation52_spill] sm:$0xff] %v5545_v19  ;;  %v852_v25 = vpop.trf.xlu0 }
 0x1ab   : > { %4148 = vmatmul.msk.f32.gmra.mxu0 %vm471_vm0, %v465_v54  ;;  %4180 = vmatmul.msk.f32.gmra.mxu1 %vm471_vm0, %v465_v54 }
 0x1ac   : > { %4212 = vmatmul.msk.f32.gmra.mxu2 %vm471_vm0, %v852_v25  ;;  %4244 = vmatmul.msk.f32.gmra.mxu3 %vm471_vm0, %v852_v25 }
 0x1ad   : > { %v5551_v30 = vpop.f32.mrf.mxu2  ;;  %v5557_v37 = vpop.f32.mrf.mxu3 }
 0x1ae   : > { %8708 = vst [vmem:[#allocation53_spill] sm:$0xff] %v5551_v30 }
 0x1af   : > { %8711 = vst [vmem:[#allocation56_spill] sm:$0xff] %v5557_v37 }
 0x1b0   : > { %v5553_v31 = vpop.f32.mrf.mxu0  ;;  %v5555_v36 = vpop.f32.mrf.mxu1 }
 0x1b1   : > { %8709 = vst [vmem:[#allocation54_spill] sm:$0xff] %v5553_v31 }
 0x1b2   : > { %8710 = vst [vmem:[#allocation55_spill] sm:$0xff] %v5555_v36  ;;  %v853_v42 = vpop.trf.xlu0 }
 0x1b3   : > { %4149 = vmatmul.msk.f32.gmra.mxu0 %vm471_vm0, %v466_v60  ;;  %4181 = vmatmul.msk.f32.gmra.mxu1 %vm471_vm0, %v466_v60  ;;  %v1582_v60 = vpop.trf.xlu2 }
 0x1b4   : > { %4213 = vmatmul.msk.f32.gmra.mxu2 %vm471_vm0, %v853_v42  ;;  %4245 = vmatmul.msk.f32.gmra.mxu3 %vm471_vm0, %v853_v42 }
 0x1b5   : > { %v5567_v54 = vpop.f32.mrf.mxu2  ;;  %v5569_v61 = vpop.f32.mrf.mxu3 }
 0x1b6   : > { %8712 = vst [vmem:[#allocation57_spill] sm:$0xff] %v5567_v54 }
 0x1b7   : > { %8713 = vst [vmem:[#allocation58_spill] sm:$0xff] %v5569_v61 }
 0x1b8   : > { %v5563_v48 = vpop.f32.mrf.mxu0  ;;  %v5565_v49 = vpop.f32.mrf.mxu1 }
 0x1ba   : > { %v854_v55 = vpop.trf.xlu0 }
 0x1bb   : > { %4150 = vmatmul.msk.f32.gmra.mxu0 %vm471_vm0, %v467_v4  ;;  %4182 = vmatmul.msk.f32.gmra.mxu1 %vm471_vm0, %v467_v4  ;;  %v1583_v25 = vpop.trf.xlu2 }
 0x1bc   : > { %4214 = vmatmul.msk.f32.gmra.mxu2 %vm471_vm0, %v854_v55  ;;  %4246 = vmatmul.msk.f32.gmra.mxu3 %vm471_vm0, %v854_v55 }
 0x1bd   : > { %v5579_v7 = vpop.f32.mrf.mxu2  ;;  %v5585_v4 = vpop.f32.mrf.mxu3 }
 0x1be   : > { %8714 = vst [vmem:[#allocation59_spill] sm:$0xff] %v5579_v7 }
 0x1bf   : > { %8715 = vst [vmem:[#allocation60_spill] sm:$0xff] %v5585_v4  ;;  %v1198_v4 = vpop.trf.xlu1 }
 0x1c0   : > { %v5575_v63 = vpop.f32.mrf.mxu0  ;;  %v5577_v5 = vpop.f32.mrf.mxu1 }
 0x1c2   : > { %v855_v6 = vpop.trf.xlu0 }
 0x1c3   : > { %4151 = vmatmul.msk.f32.gmra.mxu0 %vm471_vm0, %v468_v12  ;;  %4183 = vmatmul.msk.f32.gmra.mxu1 %vm471_vm0, %v468_v12  ;;  %v1584_v37 = vpop.trf.xlu2 }
 0x1c4   : > { %4215 = vmatmul.msk.f32.gmra.mxu2 %vm471_vm0, %v855_v6  ;;  %4247 = vmatmul.msk.f32.gmra.mxu3 %vm471_vm0, %v855_v6 }
 0x1c5   : > { %v5595_v12 = vpop.f32.mrf.mxu2  ;;  %v5597_v6 = vpop.f32.mrf.mxu3 }
 0x1c6   : > { %8716 = vst [vmem:[#allocation61_spill] sm:$0xff] %v5595_v12 }
 0x1c7   : > { %8717 = vst [vmem:[#allocation62_spill] sm:$0xff] %v5597_v6  ;;  %v1199_v17 = vpop.trf.xlu1 }
 0x1c8   : > { %v5587_v42 = vpop.f32.mrf.mxu0  ;;  %v5589_v55 = vpop.f32.mrf.mxu1 }
 0x1ca   : > { %v856_v61 = vpop.trf.xlu0 }
 0x1cb   : > { %4152 = vmatmul.msk.f32.gmra.mxu0 %vm471_vm0, %v469_v24  ;;  %4184 = vmatmul.msk.f32.gmra.mxu1 %vm471_vm0, %v469_v24  ;;  %v1585_v16 = vpop.trf.xlu2 }
 0x1cc   : > { %4216 = vmatmul.msk.f32.gmra.mxu2 %vm471_vm0, %v856_v61  ;;  %4248 = vmatmul.msk.f32.gmra.mxu3 %vm471_vm0, %v856_v61 }
 0x1cd   : > { %v5607_v24 = vpop.f32.mrf.mxu2  ;;  %v5613_v12 = vpop.f32.mrf.mxu3 }
 0x1ce   : > { %8718 = vst [vmem:[#allocation63_spill] sm:$0xff] %v5607_v24 }
 0x1cf   : > { %8721 = vst [vmem:[#allocation66_spill] sm:$0xff] %v5613_v12  ;;  %v1200_v12 = vpop.trf.xlu1 }
 0x1d0   : > { %v5599_v7 = vpop.f32.mrf.mxu0  ;;  %v5601_v54 = vpop.f32.mrf.mxu1 }
 0x1d2   : > { %v857_v30 = vpop.trf.xlu0 }
 0x1d3   : > { %4153 = vmatmul.msk.f32.gmra.mxu0 %vm471_vm0, %v470_v43  ;;  %4185 = vmatmul.msk.f32.gmra.mxu1 %vm471_vm0, %v470_v43 }
 0x1d4   : > { %4217 = vmatmul.msk.f32.gmra.mxu2 %vm471_vm0, %v857_v30  ;;  %4249 = vmatmul.msk.f32.gmra.mxu3 %vm471_vm0, %v857_v30 }
 0x1d5   : > { %v5623_v24 = vpop.f32.mrf.mxu2  ;;  %v5625_v9 = vpop.f32.mrf.mxu3 }
 0x1d6   : > { %8722 = vst [vmem:[#allocation67_spill] sm:$0xff] %v5623_v24 }
 0x1d7   : > { %8723 = vst [vmem:[#allocation68_spill] sm:$0xff] %v5625_v9  ;;  %v1201_v9 = vpop.trf.xlu1 }
 0x1d8   : > { %v5609_v61 = vpop.f32.mrf.mxu0  ;;  %v5611_v6 = vpop.f32.mrf.mxu1 }
 0x1d9   : > { %8719 = vst [vmem:[#allocation64_spill] sm:$0xff] %v5609_v61 }
 0x1da   : > { %8720 = vst [vmem:[#allocation65_spill] sm:$0xff] %v5611_v6 }
 0x1db   : > { %4250 = vmatmul.msk.f32.vlgmr.msrb.gmra.mxu0 %vm471_vm0, %v1196_v62  ;;  %4282 = vmatmul.msk.f32.vlgmr.msrb.gmra.mxu1 %vm471_vm0, %v1196_v62  ;;  %v1586_v62 = vpop.trf.xlu2 }
 0x1dc   : > { %4314 = vmatmul.msk.f32.vlgmr.msrb.gmra.mxu2 %vm471_vm0, %v1582_v60  ;;  %4346 = vmatmul.msk.f32.vlgmr.msrb.gmra.mxu3 %vm471_vm0, %v1582_v60 }
 0x1df   : > { %v5635_v1 = vpop.f32.mrf.mxu2 }
 0x1e0   : > { %v5619_v43 = vpop.f32.mrf.mxu0  ;;  %v5621_v30 = vpop.f32.mrf.mxu1  ;;  %8724 = vst [vmem:[#allocation69_spill] sm:$0xff] %v5635_v1 }
 0x1e3   : > { %4251 = vmatmul.msk.f32.gmra.mxu0 %vm471_vm0, %v1197_v13  ;;  %4283 = vmatmul.msk.f32.gmra.mxu1 %vm471_vm0, %v1197_v13  ;;  %v5641_v13 = vpop.f32.mrf.mxu3  ;;  %v1587_v24 = vpop.trf.xlu2 }
 0x1e4   : > { %4315 = vmatmul.msk.f32.gmra.mxu2 %vm471_vm0, %v1583_v25  ;;  %4347 = vmatmul.msk.f32.gmra.mxu3 %vm471_vm0, %v1583_v25  ;;  %8725 = vst [vmem:[#allocation70_spill] sm:$0xff] %v5641_v13 }
 0x1e8   : > { %v5631_v8 = vpop.f32.mrf.mxu0  ;;  %v5633_v60 = vpop.f32.mrf.mxu1 }
 0x1eb   : > { %4252 = vmatmul.msk.f32.gmra.mxu0 %vm471_vm0, %v1198_v4  ;;  %4284 = vmatmul.msk.f32.gmra.mxu1 %vm471_vm0, %v1198_v4  ;;  %v5651_v4 = vpop.f32.mrf.mxu2  ;;  %v5653_v1 = vpop.f32.mrf.mxu3 }
 0x1ec   : > { %4316 = vmatmul.msk.f32.gmra.mxu2 %vm471_vm0, %v1584_v37  ;;  %4348 = vmatmul.msk.f32.gmra.mxu3 %vm471_vm0, %v1584_v37  ;;  %8727 = vst [vmem:[#allocation72_spill] sm:$0xff] %v5651_v4  ;;  %v1202_v37 = vpop.trf.xlu1  ;;  %v1588_v56 = vpop.trf.xlu2 }
 0x1ed   : > { %8728 = vst [vmem:[#allocation73_spill] sm:$0xff] %v5653_v1 }
 0x1f0   : > { %v5643_v25 = vpop.f32.mrf.mxu0  ;;  %v5645_v0 = vpop.f32.mrf.mxu1 }
 0x1f1   : > { %8726 = vst [vmem:[#allocation71_spill] sm:$0xff] %v5645_v0 }
 0x1f3   : > { %4253 = vmatmul.msk.f32.gmra.mxu0 %vm471_vm0, %v1199_v17  ;;  %4285 = vmatmul.msk.f32.gmra.mxu1 %vm471_vm0, %v1199_v17  ;;  %v5663_v17 = vpop.f32.mrf.mxu2  ;;  %v5669_v1 = vpop.f32.mrf.mxu3 }
 0x1f4   : > { %4317 = vmatmul.msk.f32.gmra.mxu2 %vm471_vm0, %v1585_v16  ;;  %4349 = vmatmul.msk.f32.gmra.mxu3 %vm471_vm0, %v1585_v16  ;;  %8731 = vst [vmem:[#allocation76_spill] sm:$0xff] %v5663_v17  ;;  %v1203_v51 = vpop.trf.xlu1  ;;  %v1589_v50 = vpop.trf.xlu2 }
 0x1f5   : > { %8734 = vst [vmem:[#allocation79_spill] sm:$0xff] %v5669_v1 }
 0x1f8   : > { %v5655_v13 = vpop.f32.mrf.mxu0  ;;  %v5657_v57 = vpop.f32.mrf.mxu1 }
 0x1f9   : > { %8729 = vst [vmem:[#allocation74_spill] sm:$0xff] %v5655_v13 }
 0x1fa   : > { %8730 = vst [vmem:[#allocation75_spill] sm:$0xff] %v5657_v57 }
 0x1fb   : > { %4254 = vmatmul.msk.f32.gmra.mxu0 %vm471_vm0, %v1200_v12  ;;  %4286 = vmatmul.msk.f32.gmra.mxu1 %vm471_vm0, %v1200_v12  ;;  %v5679_v17 = vpop.f32.mrf.mxu2  ;;  %v5681_v45 = vpop.f32.mrf.mxu3 }
 0x1fc   : > { %4318 = vmatmul.msk.f32.gmra.mxu2 %vm471_vm0, %v1586_v62  ;;  %4350 = vmatmul.msk.f32.gmra.mxu3 %vm471_vm0, %v1586_v62  ;;  %8737 = vst [vmem:[#allocation82_spill] sm:$0xff] %v5679_v17  ;;  %v1204_v1 = vpop.trf.xlu1 }
 0x1fd   : > { %8738 = vst [vmem:[#allocation83_spill] sm:$0xff] %v5681_v45 }
 0x200   : > { %v5665_v16 = vpop.f32.mrf.mxu0  ;;  %v5667_v4 = vpop.f32.mrf.mxu1 }
 0x201   : > { %8732 = vst [vmem:[#allocation77_spill] sm:$0xff] %v5665_v16 }
 0x202   : > { %8733 = vst [vmem:[#allocation78_spill] sm:$0xff] %v5667_v4 }
 0x203   : > { %4255 = vmatmul.msk.f32.gmra.mxu0 %vm471_vm0, %v1201_v9  ;;  %4287 = vmatmul.msk.f32.gmra.mxu1 %vm471_vm0, %v1201_v9  ;;  %v1590_v9 = vpop.trf.xlu2  ;;  %v5691_v39 = vpop.f32.mrf.mxu2 }
 0x204   : > { %4319 = vmatmul.msk.f32.gmra.mxu2 %vm471_vm0, %v1587_v24  ;;  %4351 = vmatmul.msk.f32.gmra.mxu3 %vm471_vm0, %v1587_v24  ;;  %8741 = vst [vmem:[#allocation86_spill] sm:$0xff] %v5691_v39  ;;  %v5701_v45 = vpop.f32.mrf.mxu3  ;;  %v1205_v17 = vpop.trf.xlu1 }
 0x205   : > { %8742 = vst [vmem:[#allocation87_spill] sm:$0xff] %v5701_v45 }
 0x208   : > { %v5675_v12 = vpop.f32.mrf.mxu0  ;;  %v5677_v62 = vpop.f32.mrf.mxu1 }
 0x209   : > { %8735 = vst [vmem:[#allocation80_spill] sm:$0xff] %v5675_v12 }
 0x20a   : > { %8736 = vst [vmem:[#allocation81_spill] sm:$0xff] %v5677_v62 }
 0x20b   : > { %4256 = vmatmul.msk.f32.gmra.mxu0 %vm471_vm0, %v1202_v37  ;;  %4288 = vmatmul.msk.f32.gmra.mxu1 %vm471_vm0, %v1202_v37  ;;  %v1956_v37 = vmax.f32 %v5418_v14, %v5431_v22  ;;  %v1591_v33 = vpop.trf.xlu2 }
 0x20c   : > { %4320 = vmatmul.msk.f32.gmra.mxu2 %vm471_vm0, %v1588_v56  ;;  %4352 = vmatmul.msk.f32.gmra.mxu3 %vm471_vm0, %v1588_v56  ;;  %v1993_v56 = vmax.f32 %v5420_v15, %v5433_v23 }
 0x20d   : > { %v1957_v38 = vmax.f32 %v1956_v37, %v5443_v28 }
 0x20e   : > { %v1994_v39 = vmax.f32 %v1993_v56, %v5445_v29  ;;  %v5719_v29 = vpop.f32.mrf.mxu2 }
 0x20f   : > { %8745 = vst [vmem:[#allocation90_spill] sm:$0xff] %v5719_v29 }
 0x210   : > { %v5687_v44 = vpop.f32.mrf.mxu0  ;;  %v5689_v24 = vpop.f32.mrf.mxu1  ;;  %v1995_v21 = vmax.f32 %v1994_v39, %v5457_v35 }
 0x211   : > { %8739 = vst [vmem:[#allocation84_spill] sm:$0xff] %v5687_v44 }
 0x212   : > { %8740 = vst [vmem:[#allocation85_spill] sm:$0xff] %v5689_v24  ;;  %v1996_v23 = vmax.f32 %v1995_v21, %v5469_v41  ;;  %v1206_v21 = vpop.trf.xlu1 }
 0x213   : > { %4257 = vmatmul.msk.f32.gmra.mxu0 %vm471_vm0, %v1203_v51  ;;  %4289 = vmatmul.msk.f32.gmra.mxu1 %vm471_vm0, %v1203_v51 }
 0x214   : > { %4321 = vmatmul.msk.f32.gmra.mxu2 %vm471_vm0, %v1589_v50  ;;  %4353 = vmatmul.msk.f32.gmra.mxu3 %vm471_vm0, %v1589_v50  ;;  %v1958_v50 = vmax.f32 %v1957_v38, %v5455_v34  ;;  %v1997_v56 = vmax.f32 %v1996_v23, %v5481_v47 }
 0x216   : > { %v1959_v22 = vmax.f32 %v1958_v50, %v5467_v40  ;;  %v1998_v39 = vmax.f32 %v1997_v56, %v5493_v53  ;;  %v5723_v50 = vpop.f32.mrf.mxu3 }
 0x217   : > { %8746 = vst [vmem:[#allocation91_spill] sm:$0xff] %v5723_v50 }
 0x218   : > { %v5705_v32 = vpop.f32.mrf.mxu0  ;;  %v5707_v51 = vpop.f32.mrf.mxu1  ;;  %v1960_v37 = vmax.f32 %v1959_v22, %v5479_v46 }
 0x219   : > { %8743 = vst [vmem:[#allocation88_spill] sm:$0xff] %v5705_v32  ;;  %v1592_v22 = vpop.trf.xlu2 }
 0x21a   : > { %8744 = vst [vmem:[#allocation89_spill] sm:$0xff] %v5707_v51  ;;  %v1961_v38 = vmax.f32 %v1960_v37, %v5491_v52 }
 0x21b   : > { %4258 = vmatmul.msk.f32.gmra.mxu0 %vm471_vm0, %v1204_v1  ;;  %4290 = vmatmul.msk.f32.gmra.mxu1 %vm471_vm0, %v1204_v1 }
 0x21c   : > { %4322 = vmatmul.msk.f32.gmra.mxu2 %vm471_vm0, %v1590_v9  ;;  %4354 = vmatmul.msk.f32.gmra.mxu3 %vm471_vm0, %v1590_v9  ;;  %v1962_v40 = vmax.f32 %v1961_v38, %v5503_v58  ;;  %v1999_v9 = vmax.f32 %v1998_v39, %v5505_v59  ;;  %v5741_v59 = vpop.f32.mrf.mxu2 }
 0x21d   : > { %8749 = vst [vmem:[#allocation94_spill] sm:$0xff] %v5741_v59 }
 0x21e   : > { %v1963_v23 = vmax.f32 %v1962_v40, %v5517_v2  ;;  %v2000_v47 = vmax.f32 %v1999_v9, %v5519_v3  ;;  %v5749_v2 = vpop.f32.mrf.mxu3 }
 0x21f   : > { %8752 = vst [vmem:[#allocation97_spill] sm:$0xff] %v5749_v2 }
 0x220   : > { %v5725_v41 = vpop.f32.mrf.mxu0  ;;  %v5727_v1 = vpop.f32.mrf.mxu1  ;;  %v1964_v37 = vmax.f32 %v1963_v23, %v5531_v10  ;;  %v2001_v56 = vmax.f32 %v2000_v47, %v5533_v11 }
 0x221   : > { %8747 = vst [vmem:[#allocation92_spill] sm:$0xff] %v5725_v41 }
 0x222   : > { %8748 = vst [vmem:[#allocation93_spill] sm:$0xff] %v5727_v1  ;;  %v1965_v38 = vmax.f32 %v1964_v37, %v5543_v18  ;;  %v2002_v39 = vmax.f32 %v2001_v56, %v5545_v19  ;;  %v1593_v37 = vpop.trf.xlu2 }
 0x223   : > { %4259 = vmatmul.msk.f32.gmra.mxu0 %vm471_vm0, %v1205_v17  ;;  %4291 = vmatmul.msk.f32.gmra.mxu1 %vm471_vm0, %v1205_v17 }
 0x224   : > { %4323 = vmatmul.msk.f32.gmra.mxu2 %vm471_vm0, %v1591_v33  ;;  %4355 = vmatmul.msk.f32.gmra.mxu3 %vm471_vm0, %v1591_v33  ;;  %v1966_v17 = vmax.f32 %v1965_v38, %v5553_v31  ;;  %v2003_v3 = vmax.f32 %v2002_v39, %v5555_v36  ;;  %v1207_v33 = vpop.trf.xlu1  ;;  %v5767_v18 = vpop.f32.mrf.mxu2 }
 0x225   : > { %8755 = vst [vmem:[#allocation100_spill] sm:$0xff] %v5767_v18 }
 0x226   : > { %v1967_v23 = vmax.f32 %v1966_v17, %v5563_v48  ;;  %v2004_v47 = vmax.f32 %v2003_v3, %v5565_v49  ;;  %v5771_v36 = vpop.f32.mrf.mxu3 }
 0x227   : > { %8756 = vst [vmem:[#allocation101_spill] sm:$0xff] %v5771_v36 }
 0x228   : > { %v5743_v40 = vpop.f32.mrf.mxu0  ;;  %v5745_v9 = vpop.f32.mrf.mxu1  ;;  %v1968_v56 = vmax.f32 %v1967_v23, %v5575_v63  ;;  %v2005_v38 = vmax.f32 %v2004_v47, %v5577_v5 }
 0x229   : > { %8750 = vst [vmem:[#allocation95_spill] sm:$0xff] %v5743_v40 }
 0x22a   : > { %8751 = vst [vmem:[#allocation96_spill] sm:$0xff] %v5745_v9  ;;  %v1969_v39 = vmax.f32 %v1968_v56, %v5587_v42  ;;  %v2006_v11 = vmax.f32 %v2005_v38, %v5589_v55  ;;  %v1594_v38 = vpop.trf.xlu2 }
 0x22b   : > { %4260 = vmatmul.msk.f32.gmra.mxu0 %vm471_vm0, %v1206_v21  ;;  %4292 = vmatmul.msk.f32.gmra.mxu1 %vm471_vm0, %v1206_v21 }
 0x22c   : > { %4324 = vmatmul.msk.f32.gmra.mxu2 %vm471_vm0, %v1592_v22  ;;  %4356 = vmatmul.msk.f32.gmra.mxu3 %vm471_vm0, %v1592_v22  ;;  %v1970_v19 = vmax.f32 %v1969_v39, %v5599_v7  ;;  %v2007_v21 = vmax.f32 %v2006_v11, %v5601_v54  ;;  %v1208_v47 = vpop.trf.xlu1 }
 0x22e   : > { %v1971_v22 = vmax.f32 %v1970_v19, %v5609_v61  ;;  %v2008_v23 = vmax.f32 %v2007_v21, %v5611_v6  ;;  %v315_v61 = vlaneseq }
 0x230   : > { %v5761_v17 = vpop.f32.mrf.mxu0  ;;  %v5763_v3 = vpop.f32.mrf.mxu1  ;;  %v1972_v56 = vmax.f32 %v1971_v22, %v5619_v43  ;;  %v2009_v11 = vmax.f32 %v2008_v23, %v5621_v30  ;;  %vm5787_vm1 = vcmp.lt.s32.totalorder %v315_v61, 256 }
 0x231   : > { %8753 = vst [vmem:[#allocation98_spill] sm:$0xff] %v5761_v17 }
 0x232   : > { %8754 = vst [vmem:[#allocation99_spill] sm:$0xff] %v5763_v3  ;;  %v1973_v19 = vmax.f32 %v1972_v56, %v5631_v8  ;;  %v2010_v39 = vmax.f32 %v2009_v11, %v5633_v60  ;;  %v5171_v56 = vmov -inf   ;;  %v5797_v11 = vpop.f32.mrf.mxu2 }
 0x233   : > { %4261 = vmatmul.msk.f32.gmra.mxu0 %vm471_vm0, %v1207_v33  ;;  %4293 = vmatmul.msk.f32.gmra.mxu1 %vm471_vm0, %v1207_v33  ;;  %319 = vst.msk [vmem:[#allocation2] sm:$0x3] %vm5787_vm1, %v5171_v56 }
 0x234   : > { %4325 = vmatmul.msk.f32.gmra.mxu2 %vm471_vm0, %v1593_v37  ;;  %4357 = vmatmul.msk.f32.gmra.mxu3 %vm471_vm0, %v1593_v37  ;;  %v1974_v33 = vmax.f32 %v1973_v19, %v5643_v25  ;;  %v2011_v31 = vmax.f32 %v2010_v39, %v5645_v0  ;;  %v8759_v37 = vmov 0  ;;  %8762 = vst [vmem:[#allocation105_spill] sm:$0xff] %v5797_v11  ;;  %v5805_v19 = vpop.f32.mrf.mxu3  ;;  %v8790_v0 = vld [vmem:[#allocation50_spill] sm:$0xff] }
 0x235   : > { %v8760_v37 = vsel %vm5787_vm1, 4294967295, %v8759_v37  ;;  %320 = vst.msk [vmem:[#allocation2 + $0x2] sm:$0x3] %vm5787_vm1, %v5171_v56 }
 0x236   : > { %8761 = vst [vmem:[#allocation104_spill] sm:$0xff] %v8760_v37  ;;  %v1975_v22 = vmax.f32 %v1974_v33, %v5655_v13  ;;  %v2012_v23 = vmax.f32 %v2011_v31, %v5657_v57  ;;  %v1595_v33 = vpop.trf.xlu2 }
 0x237   : > { %8763 = vst [vmem:[#allocation106_spill] sm:$0xff] %v5805_v19 }
 0x238   : > { %v5781_v21 = vpop.f32.mrf.mxu0  ;;  %v5783_v6 = vpop.f32.mrf.mxu1  ;;  %v1976_v61 = vmax.f32 %v1975_v22, %v5665_v16  ;;  %v2013_v31 = vmax.f32 %v2012_v23, %v5667_v4  ;;  %321 = vst.msk [vmem:[#allocation2 + $0x4] sm:$0x3] %vm5787_vm1, %v5171_v56 }
 0x239   : > { %8757 = vst [vmem:[#allocation102_spill] sm:$0xff] %v5781_v21 }
 0x23a   : > { %8758 = vst [vmem:[#allocation103_spill] sm:$0xff] %v5783_v6  ;;  %v1977_v39 = vmax.f32 %v1976_v61, %v5675_v12  ;;  %v8766_v61 = vld [vmem:[#allocation22_spill] sm:$0xff] }
 0x23b   : > { %4262 = vmatmul.msk.f32.gmra.mxu0 %vm471_vm0, %v1208_v47  ;;  %4294 = vmatmul.msk.f32.gmra.mxu1 %vm471_vm0, %v1208_v47  ;;  %v1209_v47 = vpop.trf.xlu1  ;;  %322 = vst.msk [vmem:[#allocation2 + $0x6] sm:$0x3] %vm5787_vm1, %v5171_v56  ;;  %v2030_v56 = vmax.f32 %v5427_v20, %v5439_v26  ;;  %v8769_v20 = vld [vmem:[#allocation28_spill] sm:$0xff] }
 0x23c   : > { %4326 = vmatmul.msk.f32.gmra.mxu2 %vm471_vm0, %v1594_v38  ;;  %4358 = vmatmul.msk.f32.gmra.mxu3 %vm471_vm0, %v1594_v38  ;;  %v2014_v38 = vmax.f32 %v2013_v31, %v5677_v62  ;;  %v1978_v22 = vmax.f32 %v1977_v39, %v5687_v44  ;;  %v2067_v31 = vmax.f32 %v8766_v61, %v5441_v27  ;;  %v8772_v27 = vld [vmem:[#allocation29_spill] sm:$0xff] }
 0x23e   : > { %v2015_v23 = vmax.f32 %v2014_v38, %v5689_v24  ;;  %v1979_v4 = vmax.f32 %v1978_v22, %v5705_v32  ;;  %v5831_v22 = vpop.f32.mrf.mxu2  ;;  %v2031_v32 = vmax.f32 %v2030_v56, %v8769_v20  ;;  %v2068_v61 = vmax.f32 %v2067_v31, %v8772_v27  ;;  %v8773_v56 = vld [vmem:[#allocation30_spill] sm:$0xff]  ;;  %v8774_v31 = vld [vmem:[#allocation31_spill] sm:$0xff] }
 0x23f   : > { %8767 = vst [vmem:[#allocation109_spill] sm:$0xff] %v5831_v22  ;;  %v8775_v20 = vld [vmem:[#allocation34_spill] sm:$0xff] }
 0x240   : > { %v5813_v57 = vpop.f32.mrf.mxu0  ;;  %v5815_v13 = vpop.f32.mrf.mxu1  ;;  %v2016_v16 = vmax.f32 %v2015_v23, %v5707_v51  ;;  %v1980_v39 = vmax.f32 %v1979_v4, %v5725_v41  ;;  %v2069_v27 = vmax.f32 %v2068_v61, %v8774_v31  ;;  %v8780_v61 = vld [vmem:[#allocation37_spill] sm:$0xff] }
 0x241   : > { %8764 = vst [vmem:[#allocation107_spill] sm:$0xff] %v5813_v57  ;;  %v5833_v23 = vpop.f32.mrf.mxu3 }
 0x242   : > { %8765 = vst [vmem:[#allocation108_spill] sm:$0xff] %v5815_v13  ;;  %v2017_v38 = vmax.f32 %v2016_v16, %v5727_v1  ;;  %v1596_v1 = vpop.trf.xlu2 }
 0x243   : > { %4263 = vmatmul.msk.f32.gmra.mxu0 %vm471_vm0, %v1209_v47  ;;  %4295 = vmatmul.msk.f32.gmra.mxu1 %vm471_vm0, %v1209_v47  ;;  %8768 = vst [vmem:[#allocation110_spill] sm:$0xff] %v5833_v23  ;;  %v1981_v47 = vmax.f32 %v1980_v39, %v5743_v40  ;;  %v1210_v26 = vpop.trf.xlu1 }
 0x244   : > { %4327 = vmatmul.msk.f32.gmra.mxu2 %vm471_vm0, %v1595_v33  ;;  %4359 = vmatmul.msk.f32.gmra.mxu3 %vm471_vm0, %v1595_v33  ;;  %v2018_v51 = vmax.f32 %v2017_v38, %v5745_v9  ;;  %v2032_v38 = vmax.f32 %v2031_v32, %v8773_v56  ;;  %v8778_v32 = vld [vmem:[#allocation35_spill] sm:$0xff] }
 0x245   : > { %v1982_v4 = vmax.f32 %v1981_v47, %v5761_v17  ;;  %v2070_v56 = vmax.f32 %v2069_v27, %v8778_v32  ;;  %v8785_v32 = vld [vmem:[#allocation42_spill] sm:$0xff] }
 0x246   : > { %v2019_v16 = vmax.f32 %v2018_v51, %v5763_v3  ;;  %v2033_v9 = vmax.f32 %v2032_v38, %v8775_v20  ;;  %v5863_v40 = vpop.f32.mrf.mxu2  ;;  %v8783_v20 = vld [vmem:[#allocation39_spill] sm:$0xff] }
 0x247   : > { %v1983_v41 = vmax.f32 %v1982_v4, %v5781_v21  ;;  %8779 = vst [vmem:[#allocation115_spill] sm:$0xff] %v5863_v40  ;;  %v8784_v21 = vld [vmem:[#allocation40_spill] sm:$0xff] }
 0x248   : > { %v5838_v24 = vpop.f32.mrf.mxu0  ;;  %v5840_v33 = vpop.f32.mrf.mxu1  ;;  %v2020_v39 = vmax.f32 %v2019_v16, %v5783_v6 }
 0x249   : > { %8770 = vst [vmem:[#allocation111_spill] sm:$0xff] %v5838_v24  ;;  %v1984_v47 = vmax.f32 %v1983_v41, %v5813_v57  ;;  %v5868_v31 = vpop.f32.mrf.mxu3 }
 0x24a   : > { %8771 = vst [vmem:[#allocation112_spill] sm:$0xff] %v5840_v33  ;;  %v2021_v51 = vmax.f32 %v2020_v39, %v5815_v13  ;;  %v2034_v39 = vmax.f32 %v2033_v9, %v8780_v61  ;;  %v8788_v61 = vld [vmem:[#allocation47_spill] sm:$0xff] }
 0x24b   : > { %4264 = vmatmul.msk.f32.gmra.mxu0 %vm471_vm0, %v1210_v26  ;;  %4296 = vmatmul.msk.f32.gmra.mxu1 %vm471_vm0, %v1210_v26  ;;  %v1985_v4 = vmax.f32 %v1984_v47, %v5838_v24  ;;  %8781 = vst [vmem:[#allocation116_spill] sm:$0xff] %v5868_v31  ;;  %v8782_v47 = vld [vmem:[#allocation38_spill] sm:$0xff]  ;;  %v8786_v24 = vld [vmem:[#allocation43_spill] sm:$0xff] }
 0x24c   : > { %4328 = vmatmul.msk.f32.gmra.mxu2 %vm471_vm0, %v1596_v1  ;;  %4360 = vmatmul.msk.f32.gmra.mxu3 %vm471_vm0, %v1596_v1  ;;  %v2022_v16 = vmax.f32 %v2021_v51, %v5840_v33  ;;  %v2071_v51 = vmax.f32 %v2070_v56, %v8782_v47  ;;  %v2035_v6 = vmax.f32 %v2034_v39, %v8783_v20  ;;  %v8789_v47 = vld [vmem:[#allocation49_spill] sm:$0xff] }
 0x24e   : > { %v2072_v13 = vmax.f32 %v2071_v51, %v8784_v21  ;;  %v2036_v33 = vmax.f32 %v2035_v6, %v8785_v32  ;;  %v5879_v20 = vpop.f32.mrf.mxu2  ;;  %v8816_v32 = vld [vmem:[#allocation83_spill] sm:$0xff]  ;;  %v8818_v21 = vld [vmem:[#allocation86_spill] sm:$0xff] }
 0x24f   : > { %8791 = vst [vmem:[#allocation117_spill] sm:$0xff] %v5879_v20 }
 0x250   : > { %v5858_v3 = vpop.f32.mrf.mxu0  ;;  %v5860_v26 = vpop.f32.mrf.mxu1 }
 0x251   : > { %8776 = vst [vmem:[#allocation113_spill] sm:$0xff] %v5858_v3  ;;  %v1986_v1 = vmax.f32 %v1985_v4, %v5858_v3  ;;  %v2023_v41 = vmax.f32 %v2022_v16, %v5860_v26  ;;  %v2073_v4 = vmax.f32 %v2072_v13, %v8786_v24  ;;  %v5882_v51 = vpop.f32.mrf.mxu3  ;;  %v8794_v13 = vld [vmem:[#allocation56_spill] sm:$0xff] }
 0x252   : > { %8777 = vst [vmem:[#allocation114_spill] sm:$0xff] %v5860_v26  ;;  %v8787_v26 = vld [vmem:[#allocation46_spill] sm:$0xff] }
 0x253   : > { %v1987_v17 = vrot.slane %v1986_v1, 4  ;;  %v2024_v38 = vrot.slane %v2023_v41, 4  ;;  %v2037_v9 = vmax.f32 %v2036_v33, %v8787_v26  ;;  %v2074_v44 = vmax.f32 %v2073_v4, %v8788_v61  ;;  %8793 = vst [vmem:[#allocation118_spill] sm:$0xff] %v5882_v51  ;;  %v8795_v33 = vld [vmem:[#allocation57_spill] sm:$0xff]  ;;  %v5887_v4 = vld [vmem:[#allocation2] sm:$0x3] }
 0x254   : > { %8797 = vst [vmem:[#allocation119_spill] sm:$0xff] %v5887_v4 }
 0x255   : > { %v1988_v57 = vmax.f32 %v1986_v1, %v1987_v17  ;;  %v2025_v27 = vmax.f32 %v2023_v41, %v2024_v38  ;;  %v2038_v12 = vmax.f32 %v2037_v9, %v8789_v47  ;;  %v2075_v39 = vmax.f32 %v2074_v44, %v8790_v0  ;;  %v8792_v41 = vld [vmem:[#allocation53_spill] sm:$0xff]  ;;  %v8799_v0 = vld [vmem:[#allocation60_spill] sm:$0xff] }
 0x257   : > { %v1989_v3 = vrot.slane %v1988_v57, 2  ;;  %v2026_v16 = vrot.slane %v2025_v27, 2  ;;  %v2039_v6 = vmax.f32 %v2038_v12, %v8792_v41  ;;  %v2076_v38 = vmax.f32 %v2075_v39, %v8794_v13  ;;  %v8800_v41 = vld [vmem:[#allocation61_spill] sm:$0xff] }
 0x259   : > { %v1990_v62 = vmax.f32 %v1988_v57, %v1989_v3  ;;  %v2027_v56 = vmax.f32 %v2025_v27, %v2026_v16  ;;  %v2040_v26 = vmax.f32 %v2039_v6, %v8795_v33  ;;  %v8796_v57 = vld [vmem:[#allocation58_spill] sm:$0xff]  ;;  %v8798_v16 = vld [vmem:[#allocation59_spill] sm:$0xff] }
 0x25a   : > { %v2077_v3 = vmax.f32 %v2076_v38, %v8796_v57  ;;  %v8803_v6 = vld [vmem:[#allocation63_spill] sm:$0xff] }
 0x25b   : > { %v1991_v17 = vrot.slane %v1990_v62, 1  ;;  %v2028_v1 = vrot.slane %v2027_v56, 1  ;;  %v2041_v9 = vmax.f32 %v2040_v26, %v8798_v16  ;;  %v8806_v38 = vld [vmem:[#allocation67_spill] sm:$0xff] }
 0x25c   : > { %v2078_v47 = vmax.f32 %v2077_v3, %v8799_v0  ;;  %v8813_v0 = vld [vmem:[#allocation76_spill] sm:$0xff]  ;;  %v8814_v57 = vld [vmem:[#allocation79_spill] sm:$0xff] }
 0x25d   : > { %v2029_v24 = vmax.f32 %v2027_v56, %v2028_v1  ;;  %v1992_v27 = vmax.f32 %v1990_v62, %v1991_v17  ;;  %v2042_v61 = vmax.f32 %v2041_v9, %v8800_v41  ;;  %v8802_v56 = vld [vmem:[#allocation62_spill] sm:$0xff]  ;;  %v5904_v17 = vpop.f32.mrf.mxu2  ;;  %v8811_v41 = vld [vmem:[#allocation72_spill] sm:$0xff] }
 0x25e   : > { %v2079_v1 = vmax.f32 %v2078_v47, %v8802_v56  ;;  %8805 = vst [vmem:[#allocation121_spill] sm:$0xff] %v5904_v17  ;;  %v8809_v47 = vld [vmem:[#allocation69_spill] sm:$0xff] }
 0x25f   : > { %v2260_v44 = vrot.slane %v2029_v24, 7  ;;  %v2043_v33 = vmax.f32 %v2042_v61, %v8803_v6  ;;  %v8804_v24 = vld [vmem:[#allocation66_spill] sm:$0xff] }
 0x260   : > { %v2080_v26 = vmax.f32 %v2079_v1, %v8804_v24  ;;  %v8810_v61 = vld [vmem:[#allocation70_spill] sm:$0xff] }
 0x261   : > { %v2265_v12 = vsel %vm2264_vm2, %v1992_v27, %v2260_v44  ;;  %v2044_v3 = vmax.f32 %v2043_v33, %v8806_v38  ;;  %v5907_v27 = vpop.f32.mrf.mxu3  ;;  %v8808_v44 = vld [vmem:[#allocation68_spill] sm:$0xff]  ;;  %v8815_v24 = vld [vmem:[#allocation82_spill] sm:$0xff] }
 0x262   : > { %v5894_v39 = vmax.f32 %v5887_v4, %v2265_v12  ;;  %8807 = vst [vmem:[#allocation122_spill] sm:$0xff] %v5907_v27  ;;  %v2081_v9 = vmax.f32 %v2080_v26, %v8808_v44  ;;  %v8812_v4 = vld [vmem:[#allocation73_spill] sm:$0xff] }
 0x263   : > { %v2045_v12 = vmax.f32 %v2044_v3, %v8809_v47 }
 0x264   : > { %8801 = vst [vmem:[#allocation120_spill] sm:$0xff] %v5894_v39  ;;  %v2082_v56 = vmax.f32 %v2081_v9, %v8810_v61 }
 0x265   : > { %3413 = vst.msk [vmem:[#allocation2] sm:$0x3] %vm5787_vm1, %v5894_v39  ;;  %v2046_v62 = vmax.f32 %v2045_v12, %v8811_v41  ;;  %v5918_v38 = vpop.f32.mrf.mxu2 }
 0x266   : > { %v2083_v6 = vmax.f32 %v2082_v56, %v8812_v4  ;;  %8817 = vst [vmem:[#allocation69_spill] sm:$0xff] %v5918_v38 }
 0x267   : > { %v2047_v16 = vmax.f32 %v2046_v62, %v8813_v0 }
 0x268   : > { %v2084_v1 = vmax.f32 %v2083_v6, %v8814_v57 }
 0x269   : > { %v2048_v13 = vmax.f32 %v2047_v16, %v8815_v24  ;;  %v5921_v44 = vpop.f32.mrf.mxu3 }
 0x26a   : > { %v2085_v33 = vmax.f32 %v2084_v1, %v8816_v32  ;;  %8819 = vst [vmem:[#allocation70_spill] sm:$0xff] %v5921_v44 }
 0x26b   : > { %v2049_v26 = vmax.f32 %v2048_v13, %v8818_v21 }
 0x26c   : > { %v2086_v3 = vmax.f32 %v2085_v33, %v5701_v45  ;;  %v5935_v33 = vperm.slane %v5894_v39, 0 }
 0x26d   : > { %v2050_v9 = vmax.f32 %v2049_v26, %v5719_v29  ;;  %v5932_v21 = vpop.f32.mrf.mxu2  ;;  %v8847_v29 = vld [vmem:[#allocation80_spill] sm:$0xff] }
 0x26e   : > { %v2087_v56 = vmax.f32 %v2086_v3, %v5723_v50  ;;  %8820 = vst [vmem:[#allocation72_spill] sm:$0xff] %v5932_v21  ;;  %v2353_v45 = vsub.f32 %v8847_v29, %v5935_v33 }
 0x26f   : > { %v2051_v62 = vmax.f32 %v2050_v9, %v5741_v59  ;;  %v5941_v9 = vperm.slane %v5894_v39, 1 }
 0x270   : > { %v2088_v6 = vmax.f32 %v2087_v56, %v5749_v2 }
 0x271   : > { %v2052_v16 = vmax.f32 %v2051_v62, %v5767_v18  ;;  %v5938_v3 = vpop.f32.mrf.mxu3 }
 0x272   : > { %v2089_v12 = vmax.f32 %v2088_v6, %v5771_v36  ;;  %8821 = vst [vmem:[#allocation73_spill] sm:$0xff] %v5938_v3  ;;  %v8822_v36 = vld [vmem:[#allocation23_spill] sm:$0xff] }
 0x273   : > { %v2053_v1 = vmax.f32 %v2052_v16, %v5797_v11  ;;  %v2309_v16 = vsub.f32 %v5418_v14, %v5935_v33  ;;  %v2311_v39 = vsub.f32 %v8822_v36, %v5935_v33  ;;  %v1597_v11 = vpop.trf.xlu2 }
 0x274   : > { %v2090_v13 = vmax.f32 %v2089_v12, %v5805_v19  ;;  %v2310_v19 = vsub.f32 %v5420_v15, %v5941_v9  ;;  %v2313_v15 = vsub.f32 %v5443_v28, %v5935_v33  ;;  %4329 = vmatmul.msk.f32.gmra.mxu2 %vm471_vm0, %v1597_v11  ;;  %4361 = vmatmul.msk.f32.gmra.mxu3 %vm471_vm0, %v1597_v11 }
 0x275   : > { %v2054_v26 = vmax.f32 %v2053_v1, %v5831_v22  ;;  %v1211_v22 = vpop.trf.xlu1 }
 0x276   : > { %v2091_v56 = vmax.f32 %v2090_v13, %v5833_v23  ;;  %4265 = vmatmul.msk.f32.gmra.mxu0 %vm471_vm0, %v1211_v22  ;;  %4297 = vmatmul.msk.f32.gmra.mxu1 %vm471_vm0, %v1211_v22  ;;  %v2315_v22 = vsub.f32 %v5455_v34, %v5935_v33  ;;  %v8828_v34 = vld [vmem:[#allocation33_spill] sm:$0xff] }
 0x277   : > { %v2055_v62 = vmax.f32 %v2054_v26, %v5863_v40  ;;  %v8823_v26 = vld [vmem:[#allocation24_spill] sm:$0xff] }
 0x278   : > { %v2092_v6 = vmax.f32 %v2091_v56, %v5868_v31  ;;  %v2312_v56 = vsub.f32 %v8823_v26, %v5941_v9  ;;  %v2567_v26 = vmul.f32 1.442695, %v2310_v19  ;;  %v5970_v31 = vpop.f32.mrf.mxu2  ;;  %v8827_v19 = vld [vmem:[#allocation32_spill] sm:$0xff] }
 0x279   : > { %v2056_v12 = vmax.f32 %v2055_v62, %v5879_v20  ;;  %v2565_v62 = vmul.f32 1.442695, %v2309_v16  ;;  %8825 = vst [vmem:[#allocation23_spill] sm:$0xff] %v5970_v31  ;;  %v2316_v16 = vsub.f32 %v5457_v35, %v5941_v9  ;;  %v5975_v40 = vpop.f32.mrf.mxu3  ;;  %v2319_v35 = vsub.f32 %v5479_v46, %v5935_v33 }
 0x27a   : > { %v2093_v1 = vmax.f32 %v2092_v6, %v5882_v51  ;;  %v8824_v6 = vld [vmem:[#allocation27_spill] sm:$0xff]  ;;  %v2571_v11 = vmul.f32 1.442695, %v2312_v56  ;;  %8826 = vst [vmem:[#allocation24_spill] sm:$0xff] %v5975_v40  ;;  %v2577_v56 = vmul.f32 1.442695, %v2315_v22 }
 0x27b   : > { %v2057_v13 = vmax.f32 %v2056_v12, %v5904_v17  ;;  %v2314_v12 = vsub.f32 %v8824_v6, %v5941_v9  ;;  %v2317_v6 = vsub.f32 %v8827_v19, %v5935_v33  ;;  %4463 = vpow2.f32 %v2565_v62 }
 0x27c   : > { %v2094_v14 = vmax.f32 %v2093_v1, %v5907_v27  ;;  %v2569_v1 = vmul.f32 1.442695, %v2311_v39  ;;  %v2318_v39 = vsub.f32 %v8828_v34, %v5941_v9  ;;  %4465 = vpow2.f32 %v2567_v26 }
 0x27d   : > { %v2058_v36 = vmax.f32 %v2057_v13, %v5918_v38  ;;  %v2575_v51 = vmul.f32 1.442695, %v2314_v12  ;;  %v2579_v62 = vmul.f32 1.442695, %v2316_v16  ;;  %v2321_v19 = vsub.f32 %v5491_v52, %v5935_v33  ;;  %v8830_v52 = vld [vmem:[#allocation44_spill] sm:$0xff] }
 0x27e   : > { %v2095_v23 = vmax.f32 %v2094_v14, %v5921_v44  ;;  %v2573_v14 = vmul.f32 1.442695, %v2313_v15  ;;  %4467 = vpow2.f32 %v2569_v1  ;;  %v2581_v12 = vmul.f32 1.442695, %v2317_v6 }
 0x27f   : > { %v2059_v28 = vmax.f32 %v2058_v36, %v5932_v21  ;;  %4469 = vpow2.f32 %v2571_v11  ;;  %v2583_v46 = vmul.f32 1.442695, %v2318_v39  ;;  %v2585_v16 = vmul.f32 1.442695, %v2319_v35 }
 0x280   : > { %v2096_v13 = vmax.f32 %v2095_v23, %v5938_v3  ;;  %v8829_v23 = vld [vmem:[#allocation36_spill] sm:$0xff]  ;;  %4471 = vpow2.f32 %v2573_v14  ;;  %v2325_v6 = vsub.f32 %v8830_v52, %v5935_v33  ;;  %v2589_v39 = vmul.f32 1.442695, %v2321_v19 }
 0x281   : > { %v2060_v36 = vmax.f32 %v2059_v28, %v5970_v31  ;;  %v2320_v27 = vsub.f32 %v8829_v23, %v5941_v9  ;;  %v2322_v28 = vsub.f32 %v5493_v53, %v5941_v9  ;;  %4473 = vpow2.f32 %v2575_v51  ;;  %v5992_v1 = vpop.eup %4463 }
 0x282   : > { %v2097_v20 = vmax.f32 %v2096_v13, %v5975_v40  ;;  %v2323_v13 = vsub.f32 %v5503_v58, %v5935_v33  ;;  %4475 = vpow2.f32 %v2577_v56  ;;  %v5996_v34 = vpop.eup %4465  ;;  %v2327_v51 = vsub.f32 %v5531_v10, %v5935_v33 }
 0x283   : > { %v2061_v15 = vrot.slane %v2060_v36, 4  ;;  %4477 = vpow2.f32 %v2579_v62  ;;  %v2587_v14 = vmul.f32 1.442695, %v2320_v27  ;;  %v2591_v35 = vmul.f32 1.442695, %v2322_v28 }
 0x284   : > { %v2098_v26 = vrot.slane %v2097_v20, 4  ;;  %v6000_v53 = vpop.eup %4467  ;;  %4479 = vpow2.f32 %v2581_v12  ;;  %v2340_v27 = vsub.f32 %v5601_v54, %v5941_v9  ;;  %v2593_v62 = vmul.f32 1.442695, %v2323_v13 }
 0x285   : > { %v2062_v22 = vmax.f32 %v2060_v36, %v2061_v15  ;;  %v6004_v58 = vpop.eup %4469  ;;  %4481 = vpow2.f32 %v2583_v46  ;;  %v2337_v19 = vsub.f32 %v5587_v42, %v5935_v33  ;;  %v2338_v12 = vsub.f32 %v5589_v55, %v5941_v9 }
 0x286   : > { %v2099_v11 = vmax.f32 %v2097_v20, %v2098_v26  ;;  %v2339_v20 = vsub.f32 %v5599_v7, %v5935_v33  ;;  %v6008_v15 = vpop.eup %4471  ;;  %4483 = vpow2.f32 %v2585_v16  ;;  %v2597_v7 = vmul.f32 1.442695, %v2325_v6 }
 0x287   : > { %v2063_v23 = vrot.slane %v2062_v22, 2  ;;  %v6012_v10 = vpop.eup %4473  ;;  %4485 = vpow2.f32 %v2587_v14  ;;  %v2601_v46 = vmul.f32 1.442695, %v2327_v51  ;;  %v2335_v13 = vsub.f32 %v5575_v63, %v5935_v33 }
 0x288   : > { %v2100_v36 = vrot.slane %v2099_v11, 2  ;;  %v6018_v28 = vpop.eup %4475  ;;  %4487 = vpow2.f32 %v2589_v39  ;;  %v2625_v16 = vmul.f32 1.442695, %v2339_v20  ;;  %v2336_v42 = vsub.f32 %v5577_v5, %v5941_v9 }
 0x289   : > { %v2064_v56 = vmax.f32 %v2062_v22, %v2063_v23  ;;  %v6020_v54 = vpop.eup %4477  ;;  %4489 = vpow2.f32 %v2591_v35  ;;  %v2627_v55 = vmul.f32 1.442695, %v2340_v27  ;;  %v2333_v23 = vsub.f32 %v5563_v48, %v5935_v33  ;;  %v6036_v35 = vld [vmem:[#allocation2 + $0x2] sm:$0x3] }
 0x28a   : > { %v2101_v26 = vmax.f32 %v2099_v11, %v2100_v36  ;;  %v6024_v11 = vpop.eup %4479  ;;  %4491 = vpow2.f32 %v2593_v62  ;;  %v2334_v51 = vsub.f32 %v5565_v49, %v5941_v9  ;;  %v2621_v63 = vmul.f32 1.442695, %v2337_v19  ;;  %8831 = vst [vmem:[#allocation27_spill] sm:$0xff] %v6036_v35  ;;  %v8832_v62 = vld [vmem:[#allocation54_spill] sm:$0xff]  ;;  %v8833_v48 = vld [vmem:[#allocation55_spill] sm:$0xff] }
 0x28b   : > { %v2065_v22 = vrot.slane %v2064_v56, 1  ;;  %v6028_v14 = vpop.eup %4481  ;;  %4493 = vpow2.f32 %v2597_v7  ;;  %v2623_v36 = vmul.f32 1.442695, %v2338_v12  ;;  %v2617_v17 = vmul.f32 1.442695, %v2335_v13 }
 0x28c   : > { %v2102_v52 = vrot.slane %v2101_v26, 1  ;;  %v6034_v39 = vpop.eup %4483  ;;  %4495 = vpow2.f32 %v2601_v46  ;;  %v2619_v19 = vmul.f32 1.442695, %v2336_v42  ;;  %v8834_v46 = vld [vmem:[#allocation51_spill] sm:$0xff] }
 0x28d   : > { %v2066_v20 = vmax.f32 %v2064_v56, %v2065_v22  ;;  %v6038_v27 = vpop.eup %4485  ;;  %4497 = vpow2.f32 %v2625_v16  ;;  %v3085_v56 = vadd.f32 %v6000_v53, %v5992_v1  ;;  %v2329_v22 = vsub.f32 %v8834_v46, %v5935_v33  ;;  %v8836_v16 = vld [vmem:[#allocation52_spill] sm:$0xff] }
 0x28e   : > { %v2103_v6 = vmax.f32 %v2101_v26, %v2102_v52  ;;  %v2331_v26 = vsub.f32 %v8832_v62, %v5935_v33  ;;  %v2332_v52 = vsub.f32 %v8833_v48, %v5941_v9  ;;  %v6044_v49 = vpop.eup %4487  ;;  %4499 = vpow2.f32 %v2627_v55 }
 0x28f   : > { %v6049_v7 = vpop.eup %4489  ;;  %4501 = vpow2.f32 %v2621_v63  ;;  %v2330_v42 = vsub.f32 %v8836_v16, %v5941_v9  ;;  %v2615_v55 = vmul.f32 1.442695, %v2334_v51  ;;  %v3086_v48 = vadd.f32 %v6008_v15, %v3085_v56  ;;  %v8838_v51 = vld [vmem:[#allocation48_spill] sm:$0xff] }
 0x290   : > { %v2261_v5 = vrot.slane %v2103_v6, 7  ;;  %v2613_v6 = vmul.f32 1.442695, %v2333_v23  ;;  %v6056_v13 = vpop.eup %4491  ;;  %4503 = vpow2.f32 %v2623_v36  ;;  %v2609_v46 = vmul.f32 1.442695, %v2331_v26 }
 0x291   : > { %4505 = vpow2.f32 %v2617_v17  ;;  %v2328_v36 = vsub.f32 %v8838_v51, %v5941_v9  ;;  %v2611_v56 = vmul.f32 1.442695, %v2332_v52  ;;  %v8839_v17 = vld [vmem:[#allocation45_spill] sm:$0xff]  ;;  %v2607_v3 = vmul.f32 1.442695, %v2330_v42 }
 0x292   : > { %v2266_v12 = vsel %vm2264_vm2, %v2066_v20, %v2261_v5  ;;  %v6061_v20 = vpop.eup %4493  ;;  %v8837_v5 = vld [vmem:[#allocation41_spill] sm:$0xff]  ;;  %4507 = vpow2.f32 %v2619_v19  ;;  %v2326_v26 = vsub.f32 %v8839_v17, %v5941_v9 }
 0x293   : > { %v6054_v62 = vmax.f32 %v6036_v35, %v2266_v12  ;;  %v2324_v44 = vsub.f32 %v8837_v5, %v5941_v9  ;;  %v6070_v63 = vpop.eup %4495  ;;  %v3087_v12 = vadd.f32 %v6018_v28, %v3086_v48  ;;  %v2605_v5 = vmul.f32 1.442695, %v2329_v22  ;;  %v8840_v35 = vld [vmem:[#allocation64_spill] sm:$0xff]  ;;  %v8841_v19 = vld [vmem:[#allocation65_spill] sm:$0xff] }
 0x294   : > { %v6075_v16 = vpop.eup %4497  ;;  %4509 = vpow2.f32 %v2613_v6  ;;  %v2341_v38 = vsub.f32 %v8840_v35, %v5935_v33  ;;  %v2342_v48 = vsub.f32 %v8841_v19, %v5941_v9  ;;  %v3122_v22 = vadd.f32 %v6004_v58, %v5996_v34 }
 0x295   : > { %8835 = vst [vmem:[#allocation32_spill] sm:$0xff] %v6054_v62  ;;  %v6079_v23 = vpop.eup %4499  ;;  %4511 = vpow2.f32 %v2615_v55  ;;  %v3088_v51 = vadd.f32 %v6024_v11, %v3087_v12  ;;  %3417 = vmatpush.msra.mxu0 %v6075_v16  ;;  %v2595_v21 = vmul.f32 1.442695, %v2324_v44  ;;  %v2343_v35 = vsub.f32 %v5619_v43, %v5935_v33 }
 0x296   : > { %3414 = vst.msk [vmem:[#allocation2 + $0x2] sm:$0x3] %vm5787_vm1, %v6054_v62  ;;  %v6085_v52 = vpop.eup %4501  ;;  %4513 = vpow2.f32 %v2609_v46  ;;  %3463 = vmatpush.msra.mxu2 %v6079_v23  ;;  %v2603_v42 = vmul.f32 1.442695, %v2328_v36  ;;  %v2344_v44 = vsub.f32 %v5621_v30, %v5941_v9  ;;  %v2345_v46 = vsub.f32 %v5631_v8, %v5935_v33 }
 0x297   : > { %v6092_v6 = vpop.eup %4503  ;;  %4515 = vpow2.f32 %v2611_v56  ;;  %v3089_v55 = vadd.f32 %v6034_v39, %v3088_v51  ;;  %3418 = vmatpush.msra.mxu0 %v6085_v52  ;;  %v3123_v17 = vadd.f32 %v6012_v10, %v3122_v22  ;;  %v2346_v36 = vsub.f32 %v5633_v60, %v5941_v9  ;;  %v8842_v60 = vld [vmem:[#allocation71_spill] sm:$0xff] }
 0x298   : > { %v6098_v12 = vpop.eup %4505  ;;  %4517 = vpow2.f32 %v2605_v5  ;;  %3464 = vmatpush.msra.mxu2 %v6092_v6  ;;  %v2599_v56 = vmul.f32 1.442695, %v2326_v26  ;;  %v2347_v8 = vsub.f32 %v5643_v25, %v5935_v33  ;;  %v2629_v5 = vmul.f32 1.442695, %v2341_v38  ;;  %v8843_v25 = vld [vmem:[#allocation74_spill] sm:$0xff]  ;;  %v8844_v38 = vld [vmem:[#allocation75_spill] sm:$0xff] }
 0x299   : > { %v6106_v43 = vpop.eup %4507  ;;  %4519 = vpow2.f32 %v2607_v3  ;;  %v3090_v51 = vadd.f32 %v6044_v49, %v3089_v55  ;;  %3419 = vmatpush.msra.mxu0 %v6098_v12  ;;  %v3124_v19 = vadd.f32 %v6020_v54, %v3123_v17  ;;  %v2348_v3 = vsub.f32 %v8842_v60, %v5941_v9 }
 0x29a   : > { %v6112_v30 = vpop.eup %4509  ;;  %4521 = vpow2.f32 %v2595_v21  ;;  %3465 = vmatpush.msra.mxu2 %v6106_v43  ;;  %v2631_v26 = vmul.f32 1.442695, %v2342_v48  ;;  %v2349_v21 = vsub.f32 %v8843_v25, %v5935_v33  ;;  %v2350_v17 = vsub.f32 %v8844_v38, %v5941_v9  ;;  %v8845_v48 = vld [vmem:[#allocation77_spill] sm:$0xff]  ;;  %v8846_v25 = vld [vmem:[#allocation78_spill] sm:$0xff] }
 0x29b   : > { %v6118_v22 = vpop.eup %4511  ;;  %4523 = vpow2.f32 %v2603_v42  ;;  %v3091_v55 = vadd.f32 %v6056_v13, %v3090_v51  ;;  %3420 = vmatpush.msra.mxu0 %v6112_v30  ;;  %v2633_v31 = vmul.f32 1.442695, %v2343_v35  ;;  %v3125_v18 = vadd.f32 %v6028_v14, %v3124_v19 }
 0x29c   : > { %v4514_v40 = vpop.eup %4513  ;;  %3466 = vmatpush.msra.mxu2 %v6118_v22  ;;  %v2351_v42 = vsub.f32 %v8845_v48, %v5935_v33  ;;  %4525 = vpow2.f32 %v2599_v56  ;;  %v2635_v51 = vmul.f32 1.442695, %v2344_v44  ;;  %v2352_v50 = vsub.f32 %v8846_v25, %v5941_v9  ;;  %v8848_v48 = vld [vmem:[#allocation81_spill] sm:$0xff]  ;;  %v8849_v25 = vld [vmem:[#allocation84_spill] sm:$0xff] }
 0x29d   : > { %v6130_v2 = vpop.eup %4515  ;;  %v3092_v60 = vadd.f32 %v6061_v20, %v3091_v55  ;;  %3421 = vmatpush.msra.mxu0 %v4514_v40  ;;  %4527 = vpow2.f32 %v2629_v5  ;;  %v2637_v35 = vmul.f32 1.442695, %v2345_v46  ;;  %v3126_v19 = vadd.f32 %v6038_v27, %v3125_v18 }
 0x29e   : > { %v4518_v59 = vpop.eup %4517  ;;  %3467 = vmatpush.msra.mxu2 %v6130_v2  ;;  %4529 = vpow2.f32 %v2631_v26  ;;  %v2639_v56 = vmul.f32 1.442695, %v2346_v36  ;;  %v2354_v32 = vsub.f32 %v8848_v48, %v5941_v9  ;;  %v2641_v5 = vmul.f32 1.442695, %v2347_v8  ;;  %v8850_v36 = vld [vmem:[#allocation85_spill] sm:$0xff]  ;;  %v8851_v8 = vld [vmem:[#allocation88_spill] sm:$0xff] }
 0x29f   : > { %v4520_v38 = vpop.eup %4519  ;;  %v3093_v44 = vadd.f32 %v6070_v63, %v3092_v60  ;;  %3422 = vmatpush.msra.mxu0 %v4518_v59  ;;  %4531 = vpow2.f32 %v2633_v31  ;;  %v3127_v46 = vadd.f32 %v6049_v7, %v3126_v19  ;;  %v2355_v24 = vsub.f32 %v8849_v25, %v5935_v33 }
 0x2a0   : > { %v4522_v55 = vpop.eup %4521  ;;  %3468 = vmatpush.msra.mxu2 %v4520_v38  ;;  %4533 = vpow2.f32 %v2635_v51  ;;  %v2643_v29 = vmul.f32 1.442695, %v2348_v3  ;;  %v2356_v60 = vsub.f32 %v8850_v36, %v5941_v9  ;;  %v2645_v57 = vmul.f32 1.442695, %v2349_v21 }
 0x2a1   : > { %v4524_v18 = vpop.eup %4523  ;;  %v3094_v26 = vadd.f32 %v4518_v59, %v3093_v44  ;;  %3423 = vmatpush.msra.mxu0 %v6070_v63  ;;  %4535 = vpow2.f32 %v2637_v35  ;;  %v3128_v48 = vadd.f32 %v4522_v55, %v3127_v46  ;;  %v2357_v19 = vsub.f32 %v8851_v8, %v5935_v33  ;;  %v8853_v59 = vld [vmem:[#allocation89_spill] sm:$0xff]  ;;  %v8855_v44 = vld [vmem:[#allocation92_spill] sm:$0xff]  ;;  %v8861_v8 = vld [vmem:[#allocation107_spill] sm:$0xff] }
 0x2a2   : > { %3469 = vmatpush.msra.mxu2 %v4524_v18  ;;  %v4526_v31 = vpop.eup %4525  ;;  %4537 = vpow2.f32 %v2639_v56  ;;  %v2647_v0 = vmul.f32 1.442695, %v2350_v17  ;;  %v2358_v63 = vsub.f32 %v8853_v59, %v5941_v9  ;;  %v2649_v51 = vmul.f32 1.442695, %v2351_v42  ;;  %v8856_v17 = vld [vmem:[#allocation113_spill] sm:$0xff] }
 0x2a3   : > { %v3095_v37 = vadd.f32 %v4514_v40, %v3094_v26  ;;  %3424 = vmatpush.msra.mxu0 %v6061_v20  ;;  %v6153_v3 = vpop.eup %4527  ;;  %4539 = vpow2.f32 %v2641_v5  ;;  %v3129_v35 = vadd.f32 %v4526_v31, %v3128_v48  ;;  %v2359_v46 = vsub.f32 %v8855_v44, %v5935_v33  ;;  %v8858_v48 = vld [vmem:[#allocation114_spill] sm:$0xff] }
 0x2a4   : > { %8852 = vst [vmem:[#allocation33_spill] sm:$0xff] %v6153_v3  ;;  %3470 = vmatpush.msra.mxu2 %v4526_v31  ;;  %v6157_v21 = vpop.eup %4529  ;;  %4541 = vpow2.f32 %v2643_v29  ;;  %v2651_v56 = vmul.f32 1.442695, %v2352_v50  ;;  %v2371_v25 = vsub.f32 %v8856_v17, %v5935_v33  ;;  %v2653_v42 = vmul.f32 1.442695, %v2353_v45 }
 0x2a5   : > { %8854 = vst [vmem:[#allocation36_spill] sm:$0xff] %v6157_v21  ;;  %v3096_v40 = vadd.f32 %v6112_v30, %v3095_v37  ;;  %3425 = vmatpush.msra.mxu0 %v6056_v13  ;;  %v6163_v20 = vpop.eup %4531  ;;  %4543 = vpow2.f32 %v2645_v57  ;;  %v3130_v5 = vadd.f32 %v4524_v18, %v3129_v35  ;;  %v2372_v31 = vsub.f32 %v8858_v48, %v5941_v9  ;;  %v8859_v30 = vld [vmem:[#allocation111_spill] sm:$0xff]  ;;  %v8860_v18 = vld [vmem:[#allocation112_spill] sm:$0xff] }
 0x2a6   : > { %3471 = vmatpush.msra.mxu2 %v4522_v55  ;;  %v6167_v26 = vpop.eup %4533  ;;  %4545 = vpow2.f32 %v2647_v0  ;;  %v2655_v50 = vmul.f32 1.442695, %v2354_v32  ;;  %v2369_v29 = vsub.f32 %v8859_v30, %v5935_v33  ;;  %v2657_v45 = vmul.f32 1.442695, %v2355_v24  ;;  %v8862_v35 = vld [vmem:[#allocation108_spill] sm:$0xff]  ;;  %v8866_v30 = vld [vmem:[#allocation95_spill] sm:$0xff] }
 0x2a7   : > { %8857 = vst [vmem:[#allocation44_spill] sm:$0xff] %v6167_v26  ;;  %v3097_v37 = vadd.f32 %v6098_v12, %v3096_v40  ;;  %3426 = vmatpush.msra.mxu0 %v6044_v49  ;;  %v6173_v13 = vpop.eup %4535  ;;  %4547 = vpow2.f32 %v2649_v51  ;;  %v3131_v57 = vadd.f32 %v4520_v38, %v3130_v5  ;;  %v2370_v0 = vsub.f32 %v8860_v18, %v5941_v9  ;;  %v8863_v40 = vld [vmem:[#allocation102_spill] sm:$0xff]  ;;  %v8867_v18 = vld [vmem:[#allocation93_spill] sm:$0xff] }
 0x2a8   : > { %3472 = vmatpush.msra.mxu2 %v6049_v7  ;;  %v6178_v55 = vpop.eup %4537  ;;  %4549 = vpow2.f32 %v2651_v56  ;;  %v2661_v32 = vmul.f32 1.442695, %v2357_v19  ;;  %v2367_v51 = vsub.f32 %v8861_v8, %v5935_v33  ;;  %v2689_v24 = vmul.f32 1.442695, %v2371_v25 }
 0x2a9   : > { %v3098_v12 = vadd.f32 %v6085_v52, %v3097_v37  ;;  %3427 = vmatpush.msra.mxu0 %v6034_v39  ;;  %v6184_v49 = vpop.eup %4539  ;;  %4551 = vpow2.f32 %v2653_v42  ;;  %v3132_v7 = vadd.f32 %v6130_v2, %v3131_v57  ;;  %v2368_v19 = vsub.f32 %v8862_v35, %v5941_v9  ;;  %v8864_v42 = vld [vmem:[#allocation103_spill] sm:$0xff] }
 0x2aa   : > { %3473 = vmatpush.msra.mxu2 %v6038_v27  ;;  %v6190_v38 = vpop.eup %4541  ;;  %4553 = vpow2.f32 %v2655_v50  ;;  %v2691_v52 = vmul.f32 1.442695, %v2372_v31  ;;  %v2365_v17 = vsub.f32 %v8863_v40, %v5935_v33  ;;  %v2685_v2 = vmul.f32 1.442695, %v2369_v29  ;;  %v8865_v31 = vld [vmem:[#allocation98_spill] sm:$0xff] }
 0x2ab   : > { %v3099_v39 = vadd.f32 %v6075_v16, %v3098_v12  ;;  %3428 = vmatpush.msra.mxu0 %v6024_v11  ;;  %v6196_v56 = vpop.eup %4543  ;;  %4555 = vpow2.f32 %v2657_v45  ;;  %v3133_v27 = vadd.f32 %v6118_v22, %v3132_v7  ;;  %v2366_v5 = vsub.f32 %v8864_v42, %v5941_v9  ;;  %v8868_v12 = vld [vmem:[#allocation99_spill] sm:$0xff]  ;;  %v8869_v7 = vld [vmem:[#allocation96_spill] sm:$0xff] }
 0x2ac   : > { %3474 = vmatpush.msra.mxu2 %v6028_v14  ;;  %v6202_v25 = vpop.eup %4545  ;;  %4557 = vpow2.f32 %v2661_v32  ;;  %v2687_v16 = vmul.f32 1.442695, %v2370_v0  ;;  %v2363_v50 = vsub.f32 %v8865_v31, %v5935_v33  ;;  %v2681_v37 = vmul.f32 1.442695, %v2367_v51 }
 0x2ad   : > { %v3100_v11 = vadd.f32 %v6153_v3, %v3099_v39  ;;  %3429 = vmatpush.msra.mxu0 %v6018_v28  ;;  %v6208_v48 = vpop.eup %4547  ;;  %4559 = vpow2.f32 %v2689_v24  ;;  %v3134_v14 = vadd.f32 %v6106_v43, %v3133_v27  ;;  %v2361_v29 = vsub.f32 %v8866_v30, %v5935_v33 }
 0x2ae   : > { %3475 = vmatpush.msra.mxu2 %v6020_v54  ;;  %v6214_v22 = vpop.eup %4549  ;;  %v2683_v45 = vmul.f32 1.442695, %v2368_v19  ;;  %4561 = vpow2.f32 %v2691_v52  ;;  %v2360_v0 = vsub.f32 %v8867_v18, %v5941_v9  ;;  %v2677_v32 = vmul.f32 1.442695, %v2365_v17 }
 0x2af   : > { %v3101_v28 = vadd.f32 %v6163_v20, %v3100_v11  ;;  %3430 = vmatpush.msra.mxu0 %v6008_v15  ;;  %v6220_v57 = vpop.eup %4551  ;;  %4563 = vpow2.f32 %v2685_v2  ;;  %v3135_v54 = vadd.f32 %v6092_v6, %v3134_v14  ;;  %v2364_v8 = vsub.f32 %v8868_v12, %v5941_v9  ;;  %v8872_v14 = vld [vmem:[#allocation25_spill] sm:$0xff] }
 0x2b0   : > { %3476 = vmatpush.msra.mxu2 %v6012_v10  ;;  %v6226_v43 = vpop.eup %4553  ;;  %v2679_v51 = vmul.f32 1.442695, %v2366_v5  ;;  %4565 = vpow2.f32 %v2687_v16  ;;  %v2362_v35 = vsub.f32 %v8869_v7, %v5941_v9  ;;  %v2673_v19 = vmul.f32 1.442695, %v2363_v50 }
 0x2b1   : > { %v3102_v15 = vadd.f32 %v6173_v13, %v3101_v28  ;;  %3431 = vmatpush.msra.mxu0 %v6000_v53  ;;  %v6232_v24 = vpop.eup %4555  ;;  %4567 = vpow2.f32 %v2681_v37  ;;  %v3136_v10 = vadd.f32 %v6079_v23, %v3135_v54  ;;  %v2665_v52 = vmul.f32 1.442695, %v2359_v46  ;;  %v8875_v54 = vld [vmem:[#allocation29_spill] sm:$0xff] }
 0x2b2   : > { %3477 = vmatpush.msra.mxu2 %v6004_v58  ;;  %v6238_v6 = vpop.eup %4557  ;;  %v2669_v39 = vmul.f32 1.442695, %v2361_v29  ;;  %4569 = vpow2.f32 %v2683_v45  ;;  %v6249_v23 = vperm.slane %v6054_v62, 0  ;;  %v6252_v58 = vperm.slane %v6054_v62, 1  ;;  %v8873_v29 = vld [vmem:[#allocation26_spill] sm:$0xff] }
 0x2b3   : > { %v3103_v53 = vadd.f32 %v6184_v49, %v3102_v15  ;;  %3432 = vmatpush.msra.mxu0 %v5992_v1  ;;  %v6245_v40 = vpop.eup %4559  ;;  %4571 = vpow2.f32 %v2677_v32  ;;  %v3137_v17 = vadd.f32 %v6157_v21, %v3136_v10  ;;  %v2675_v44 = vmul.f32 1.442695, %v2364_v8  ;;  %v8876_v15 = vld [vmem:[#allocation30_spill] sm:$0xff]  ;;  %v6304_v10 = vpop.f32.mrf.mxu0 }
 0x2b4   : > { %3478 = vmatpush.msra.mxu2 %v5996_v34  ;;  %v6255_v33 = vpop.eup %4561  ;;  %4573 = vpow2.f32 %v2679_v51  ;;  %3440 = vmatpush.msra.mxu1 %v6245_v40  ;;  %v2659_v2 = vmul.f32 1.442695, %v2356_v60  ;;  %v2663_v27 = vmul.f32 1.442695, %v2358_v63  ;;  %v2667_v5 = vmul.f32 1.442695, %v2360_v0 }
 0x2b5   : > { %v3104_v46 = vadd.f32 %v6196_v56, %v3103_v53  ;;  %v6259_v1 = vpop.eup %4563  ;;  %4575 = vpow2.f32 %v2673_v19  ;;  %v3138_v34 = vadd.f32 %v6167_v26, %v3137_v17  ;;  %3486 = vmatpush.msra.mxu3 %v6255_v33  ;;  %v2671_v16 = vmul.f32 1.442695, %v2362_v35  ;;  %v8870_v60 = vld [vmem:[#allocation21_spill] sm:$0xff]  ;;  %v8871_v63 = vld [vmem:[#allocation22_spill] sm:$0xff]  ;;  %v8874_v0 = vld [vmem:[#allocation28_spill] sm:$0xff]  ;;  %8878 = vst [vmem:[#allocation54_spill] sm:$0xff] %v6304_v10  ;;  %v6343_v10 = vpop.f32.mrf.mxu2 }
 0x2b6   : > { %v6269_v42 = vpop.eup %4565  ;;  %4577 = vpow2.f32 %v2665_v52  ;;  %3441 = vmatpush.msra.mxu1 %v6259_v1  ;;  %v2373_v59 = vsub.f32 %v8870_v60, %v6249_v23  ;;  %v2374_v31 = vsub.f32 %v8871_v63, %v6252_v58  ;;  %v2375_v30 = vsub.f32 %v8872_v14, %v6249_v23  ;;  %v8877_v35 = vld [vmem:[#allocation31_spill] sm:$0xff]  ;;  %v6306_v52 = vpop.f32.mrf.mxu1  ;;  %v8880_v17 = vld [vmem:[#allocation34_spill] sm:$0xff]  ;;  %8890 = vst [vmem:[#allocation51_spill] sm:$0xff] %v6343_v10 }
 0x2b7   : > { %v3105_v11 = vadd.f32 %v6208_v48, %v3104_v46  ;;  %v6273_v36 = vpop.eup %4567  ;;  %4579 = vpow2.f32 %v2669_v39  ;;  %v3139_v9 = vadd.f32 %v6178_v55, %v3138_v34  ;;  %3487 = vmatpush.msra.mxu3 %v6269_v42  ;;  %v2376_v45 = vsub.f32 %v8873_v29, %v6252_v58  ;;  %8879 = vst [vmem:[#allocation55_spill] sm:$0xff] %v6306_v52  ;;  %v8881_v46 = vld [vmem:[#allocation35_spill] sm:$0xff]  ;;  %v1614_v63 = vpop.trf.xlu1  ;;  %v8883_v29 = vld [vmem:[#allocation38_spill] sm:$0xff] }
 0x2b8   : > { %v6281_v50 = vpop.eup %4569  ;;  %4581 = vpow2.f32 %v2675_v44  ;;  %3442 = vmatpush.msra.mxu1 %v6273_v36  ;;  %v2377_v32 = vsub.f32 %v8874_v0, %v6249_v23  ;;  %v2378_v12 = vsub.f32 %v8875_v54, %v6252_v58  ;;  %v2379_v7 = vsub.f32 %v8876_v15, %v6249_v23  ;;  %v8884_v0 = vld [vmem:[#allocation39_spill] sm:$0xff]  ;;  %4330 = vmatmul.msk.f32.gmra.mxu2 %vm471_vm0, %v1614_v63  ;;  %v8893_v52 = vld [vmem:[#allocation50_spill] sm:$0xff] }
 0x2b9   : > { %v3106_v37 = vadd.f32 %v6220_v57, %v3105_v11  ;;  %v6289_v28 = vpop.eup %4571  ;;  %4583 = vpow2.f32 %v2659_v2  ;;  %v3140_v18 = vadd.f32 %v6190_v38, %v3139_v9  ;;  %3488 = vmatpush.msra.mxu3 %v6281_v50  ;;  %v2380_v19 = vsub.f32 %v8877_v35, %v6252_v58  ;;  %v8882_v11 = vld [vmem:[#allocation37_spill] sm:$0xff] }
 0x2ba   : > { %v6297_v8 = vpop.eup %4573  ;;  %4585 = vpow2.f32 %v2671_v16  ;;  %3443 = vmatpush.msra.mxu1 %v6289_v28  ;;  %v2381_v44 = vsub.f32 %v8880_v17, %v6249_v23  ;;  %v2693_v60 = vmul.f32 1.442695, %v2373_v59  ;;  %v2695_v15 = vmul.f32 1.442695, %v2374_v31  ;;  %v8886_v17 = vld [vmem:[#allocation42_spill] sm:$0xff]  ;;  %4362 = vmatmul.msk.f32.gmra.mxu3 %vm471_vm0, %v1614_v63  ;;  %v8892_v2 = vld [vmem:[#allocation49_spill] sm:$0xff] }
 0x2bb   : > { %v3107_v51 = vadd.f32 %v6232_v24, %v3106_v37  ;;  %v4576_v39 = vpop.eup %4575  ;;  %4587 = vpow2.f32 %v2663_v27  ;;  %v3141_v53 = vadd.f32 %v6202_v25, %v3140_v18  ;;  %3489 = vmatpush.msra.mxu3 %v6297_v8  ;;  %v1228_v27 = vpop.trf.xlu0  ;;  %v2697_v9 = vmul.f32 1.442695, %v2375_v30 }
 0x2bc   : > { %v4578_v34 = vpop.eup %4577  ;;  %4589 = vpow2.f32 %v2667_v5  ;;  %3444 = vmatpush.msra.mxu1 %v4576_v39  ;;  %4266 = vmatmul.msk.f32.gmra.mxu0 %vm471_vm0, %v1228_v27  ;;  %v2699_v62 = vmul.f32 1.442695, %v2376_v45  ;;  %v2701_v63 = vmul.f32 1.442695, %v2377_v32  ;;  %v2703_v3 = vmul.f32 1.442695, %v2378_v12  ;;  %v6352_v10 = vpop.f32.mrf.mxu0 }
 0x2bd   : > { %v3108_v16 = vadd.f32 %v6238_v6, %v3107_v51  ;;  %v4580_v37 = vpop.eup %4579  ;;  %v3142_v14 = vadd.f32 %v6214_v22, %v3141_v53  ;;  %4298 = vmatmul.msk.f32.gmra.mxu1 %vm471_vm0, %v1228_v27  ;;  %v8885_v51 = vld [vmem:[#allocation40_spill] sm:$0xff]  ;;  %v8887_v27 = vld [vmem:[#allocation43_spill] sm:$0xff]  ;;  %4591 = vpow2.f32 %v2693_v60  ;;  %v2705_v32 = vmul.f32 1.442695, %v2379_v7  ;;  %8894 = vst [vmem:[#allocation41_spill] sm:$0xff] %v6352_v10 }
 0x2be   : > { %v6325_v5 = vpop.eup %4581  ;;  %3445 = vmatpush.msra.mxu1 %v4580_v37  ;;  %4593 = vpow2.f32 %v2695_v15  ;;  %v2707_v15 = vmul.f32 1.442695, %v2380_v19  ;;  %v2709_v7 = vmul.f32 1.442695, %v2381_v44  ;;  %v8900_v44 = vld [vmem:[#allocation58_spill] sm:$0xff] }
 0x2bf   : > { %v3109_v59 = vadd.f32 %v4578_v34, %v3108_v16  ;;  %v6333_v54 = vpop.eup %4583  ;;  %v3143_v31 = vadd.f32 %v6226_v43, %v3142_v14  ;;  %v8888_v16 = vld [vmem:[#allocation46_spill] sm:$0xff]  ;;  %3490 = vmatpush.msra.mxu3 %v6325_v5  ;;  %v6345_v14 = vpop.f32.mrf.mxu3  ;;  %4595 = vpow2.f32 %v2697_v9 }
 0x2c0   : > { %v4586_v53 = vpop.eup %4585  ;;  %8891 = vst [vmem:[#allocation52_spill] sm:$0xff] %v6345_v14  ;;  %3446 = vmatpush.msra.mxu1 %v4578_v34  ;;  %v6354_v14 = vpop.f32.mrf.mxu1  ;;  %4597 = vpow2.f32 %v2699_v62  ;;  %v8899_v62 = vsub.f32 %v8881_v46, %v6252_v58 }
 0x2c1   : > { %v3110_v30 = vadd.f32 %v4580_v37, %v3109_v59  ;;  %v4588_v21 = vpop.eup %4587  ;;  %v3144_v18 = vadd.f32 %v6333_v54, %v3143_v31  ;;  %3491 = vmatpush.msra.mxu3 %v4586_v53  ;;  %8895 = vst [vmem:[#allocation48_spill] sm:$0xff] %v6354_v14  ;;  %v8896_v31 = vld [vmem:[#allocation53_spill] sm:$0xff]  ;;  %4599 = vpow2.f32 %v2701_v63  ;;  %v1615_v9 = vpop.trf.xlu1 }
 0x2c2   : > { %v4590_v37 = vpop.eup %4589  ;;  %3447 = vmatpush.msra.mxu1 %v6238_v6  ;;  %4601 = vpow2.f32 %v2703_v3  ;;  %v2711_v19 = vmul.f32 1.442695, %v8899_v62  ;;  %4331 = vmatmul.msk.f32.gmra.mxu2 %vm471_vm0, %v1615_v9 }
 0x2c3   : > { %v3111_v59 = vadd.f32 %v4576_v39, %v3110_v30  ;;  %v3145_v26 = vadd.f32 %v4588_v21, %v3144_v18  ;;  %3492 = vmatpush.msra.mxu3 %v4590_v37  ;;  %v8897_v39 = vld [vmem:[#allocation56_spill] sm:$0xff]  ;;  %v1229_v30 = vpop.trf.xlu0  ;;  %v8898_v18 = vld [vmem:[#allocation57_spill] sm:$0xff]  ;;  %v6369_v6 = vpop.eup %4591  ;;  %4603 = vpow2.f32 %v2705_v32 }
 0x2c4   : > { %v2395_v45 = vsub.f32 %v8898_v18, %v6249_v23  ;;  %4267 = vmatmul.msk.f32.gmra.mxu0 %vm471_vm0, %v1229_v30  ;;  %4363 = vmatmul.msk.f32.gmra.mxu3 %vm471_vm0, %v1615_v9  ;;  %v6379_v46 = vpop.eup %4593  ;;  %4605 = vpow2.f32 %v2707_v15  ;;  %v8904_v9 = vld [vmem:[#allocation60_spill] sm:$0xff]  ;;  %v6395_v15 = vpop.f32.mrf.mxu2 }
 0x2c5   : > { %v3112_v12 = vadd.f32 %v6289_v28, %v3111_v59  ;;  %v3146_v60 = vadd.f32 %v4590_v37, %v3145_v26  ;;  %4299 = vmatmul.msk.f32.gmra.mxu1 %vm471_vm0, %v1229_v30  ;;  %v8901_v26 = vsub.f32 %v8882_v11, %v6249_v23  ;;  %v8902_v59 = vld [vmem:[#allocation59_spill] sm:$0xff]  ;;  %3493 = vmatpush.msra.mxu3 %v4588_v21  ;;  %v6387_v11 = vpop.eup %4595  ;;  %4607 = vpow2.f32 %v2709_v7 }
 0x2c6   : > { %v2397_v30 = vsub.f32 %v8902_v59, %v6249_v23  ;;  %3448 = vmatpush.msra.mxu1 %v6232_v24  ;;  %v2398_v62 = vsub.f32 %v8904_v9, %v6252_v58  ;;  %8906 = vst [vmem:[#allocation45_spill] sm:$0xff] %v6395_v15  ;;  %v8908_v24 = vld [vmem:[#allocation67_spill] sm:$0xff]  ;;  %4609 = vpow2.f32 %v2711_v19 }
 0x2c7   : > { %v3113_v28 = vadd.f32 %v6273_v36, %v3112_v12  ;;  %v2713_v3 = vmul.f32 1.442695, %v8901_v26  ;;  %v3147_v37 = vadd.f32 %v4586_v53, %v3146_v60  ;;  %v8903_v36 = vsub.f32 %v8883_v29, %v6252_v58  ;;  %v6397_v26 = vpop.f32.mrf.mxu3  ;;  %v6399_v29 = vpop.eup %4597  ;;  %3494 = vmatpush.msra.mxu3 %v6333_v54  ;;  %v8914_v54 = vld [vmem:[#allocation68_spill] sm:$0xff] }
 0x2c8   : > { %v8905_v53 = vsub.f32 %v8884_v0, %v6249_v23  ;;  %8907 = vst [vmem:[#allocation64_spill] sm:$0xff] %v6397_v26  ;;  %3449 = vmatpush.msra.mxu1 %v6220_v57  ;;  %v6409_v0 = vpop.eup %4599 }
 0x2c9   : > { %v2715_v12 = vmul.f32 1.442695, %v8903_v36  ;;  %v3114_v32 = vadd.f32 %v6259_v1, %v3113_v28  ;;  %v3148_v21 = vadd.f32 %v6325_v5, %v3147_v37  ;;  %v2403_v36 = vsub.f32 %v8908_v24, %v6249_v23  ;;  %v6417_v37 = vpop.f32.mrf.mxu0  ;;  %v6421_v24 = vpop.eup %4601  ;;  %3495 = vmatpush.msra.mxu3 %v6226_v43  ;;  %v8918_v43 = vld [vmem:[#allocation66_spill] sm:$0xff] }
 0x2ca   : > { %v2717_v60 = vmul.f32 1.442695, %v8905_v53  ;;  %v8909_v1 = vsub.f32 %v8885_v51, %v6252_v58  ;;  %v8910_v53 = vld [vmem:[#allocation63_spill] sm:$0xff]  ;;  %4611 = vpow2.f32 %v2713_v3  ;;  %v8911_v5 = vsub.f32 %v8886_v17, %v6249_v23  ;;  %8912 = vst [vmem:[#allocation65_spill] sm:$0xff] %v6417_v37  ;;  %v6419_v51 = vpop.f32.mrf.mxu1  ;;  %3450 = vmatpush.msra.mxu1 %v6208_v48  ;;  %v6431_v17 = vpop.eup %4603 }
 0x2cb   : > { %v3115_v28 = vadd.f32 %v6245_v40, %v3114_v32  ;;  %v2401_v34 = vsub.f32 %v8910_v53, %v6249_v23  ;;  %8913 = vst [vmem:[#allocation71_spill] sm:$0xff] %v6419_v51  ;;  %v3149_v57 = vadd.f32 %v6297_v8, %v3148_v21  ;;  %4613 = vpow2.f32 %v2715_v12  ;;  %v8916_v53 = vld [vmem:[#allocation61_spill] sm:$0xff]  ;;  %v1616_v12 = vpop.trf.xlu1  ;;  %v6438_v63 = vpop.eup %4605  ;;  %3496 = vmatpush.msra.mxu3 %v6214_v22 }
 0x2cc   : > { %v2719_v7 = vmul.f32 1.442695, %v8909_v1  ;;  %v2721_v19 = vmul.f32 1.442695, %v8911_v5  ;;  %v2404_v1 = vsub.f32 %v8914_v54, %v6252_v58  ;;  %v8915_v40 = vsub.f32 %v8887_v27, %v6252_v58  ;;  %v1230_v54 = vpop.trf.xlu0  ;;  %4332 = vmatmul.msk.f32.gmra.mxu2 %vm471_vm0, %v1616_v12  ;;  %4364 = vmatmul.msk.f32.gmra.mxu3 %vm471_vm0, %v1616_v12 }
 0x2cd   : > { %v3116_v32 = vrot.slane %v3115_v28, 4  ;;  %v2399_v5 = vsub.f32 %v8916_v53, %v6249_v23  ;;  %4615 = vpow2.f32 %v2717_v60  ;;  %v8917_v8 = vsub.f32 %v8888_v16, %v6249_v23  ;;  %4268 = vmatmul.msk.f32.gmra.mxu0 %vm471_vm0, %v1230_v54  ;;  %4300 = vmatmul.msk.f32.gmra.mxu1 %vm471_vm0, %v1230_v54  ;;  %v6445_v60 = vpop.eup %4607  ;;  %v8919_v16 = vld [vmem:[#allocation62_spill] sm:$0xff] }
 0x2ce   : > { %v2723_v3 = vmul.f32 1.442695, %v8915_v40  ;;  %v3150_v27 = vadd.f32 %v6281_v50, %v3149_v57  ;;  %v2402_v48 = vsub.f32 %v8918_v43, %v6252_v58  ;;  %4617 = vpow2.f32 %v2719_v7  ;;  %v6453_v50 = vpop.eup %4609  ;;  %3451 = vmatpush.msra.mxu1 %v6196_v56  ;;  %v6464_v43 = vpop.f32.mrf.mxu2  ;;  %3497 = vmatpush.msra.mxu3 %v6202_v25 }
 0x2cf   : > { %v2725_v21 = vmul.f32 1.442695, %v8917_v8  ;;  %v2753_v40 = vmul.f32 1.442695, %v2403_v36  ;;  %v2400_v53 = vsub.f32 %v8919_v16, %v6252_v58  ;;  %4619 = vpow2.f32 %v2721_v19  ;;  %8920 = vst [vmem:[#allocation74_spill] sm:$0xff] %v6464_v43 }
 0x2d0   : > { %v2749_v35 = vmul.f32 1.442695, %v2401_v34  ;;  %v3117_v36 = vadd.f32 %v3116_v32, %v3115_v28  ;;  %v3151_v7 = vadd.f32 %v6269_v42, %v3150_v27  ;;  %4621 = vpow2.f32 %v2723_v3  ;;  %v6458_v54 = vpop.eup %4611  ;;  %v6466_v28 = vpop.f32.mrf.mxu3  ;;  %3452 = vmatpush.msra.mxu1 %v6184_v49  ;;  %3498 = vmatpush.msra.mxu3 %v6190_v38 }
 0x2d1   : > { %v2755_v57 = vmul.f32 1.442695, %v2404_v1  ;;  %4623 = vpow2.f32 %v2725_v21  ;;  %v2745_v12 = vmul.f32 1.442695, %v2399_v5  ;;  %8921 = vst [vmem:[#allocation75_spill] sm:$0xff] %v6466_v28  ;;  %v6468_v42 = vpop.eup %4613  ;;  %v8922_v32 = vsub.f32 %v8892_v2, %v6249_v23 }
 0x2d2   : > { %v3152_v22 = vadd.f32 %v6255_v33, %v3151_v7  ;;  %v2751_v1 = vmul.f32 1.442695, %v2402_v48  ;;  %4625 = vpow2.f32 %v2753_v40  ;;  %v3159_v21 = vadd.f32 %v6387_v11, %v6369_v6  ;;  %v6482_v33 = vpop.f32.mrf.mxu0  ;;  %v6484_v27 = vpop.f32.mrf.mxu1  ;;  %3453 = vmatpush.msra.mxu1 %v6173_v13  ;;  %v8926_v7 = vld [vmem:[#allocation76_spill] sm:$0xff]  ;;  %3499 = vmatpush.msra.mxu3 %v6178_v55 }
 0x2d3   : > { %v6475_v3 = vpop.eup %4615  ;;  %v2729_v5 = vmul.f32 1.442695, %v8922_v32  ;;  %4627 = vpow2.f32 %v2749_v35  ;;  %8923 = vst [vmem:[#allocation77_spill] sm:$0xff] %v6482_v33  ;;  %v3118_v40 = vrot.slane %v3117_v36, 2  ;;  %v2741_v49 = vmul.f32 1.442695, %v2397_v30  ;;  %v1617_v59 = vpop.trf.xlu1 }
 0x2d4   : > { %8924 = vst [vmem:[#allocation78_spill] sm:$0xff] %v6484_v27  ;;  %v6486_v48 = vpop.eup %4617  ;;  %v3153_v25 = vrot.slane %v3152_v22, 4  ;;  %4629 = vpow2.f32 %v2755_v57  ;;  %v5172_v2 = vmov 0.0   ;;  %v2747_v56 = vmul.f32 1.442695, %v2400_v53  ;;  %v1231_v30 = vpop.trf.xlu0  ;;  %v8927_v57 = vld [vmem:[#allocation79_spill] sm:$0xff]  ;;  %4333 = vmatmul.msk.f32.gmra.mxu2 %vm471_vm0, %v1617_v59  ;;  %4365 = vmatmul.msk.f32.gmra.mxu3 %vm471_vm0, %v1617_v59 }
 0x2d5   : > { %323 = vst.msk [vmem:[#allocation3] sm:$0x3] %vm5787_vm1, %v5172_v2  ;;  %v6495_v16 = vpop.eup %4619  ;;  %4631 = vpow2.f32 %v2745_v12  ;;  %v3160_v19 = vadd.f32 %v6409_v0, %v3159_v21  ;;  %v2737_v8 = vmul.f32 1.442695, %v2395_v45  ;;  %4269 = vmatmul.msk.f32.gmra.mxu0 %vm471_vm0, %v1231_v30  ;;  %4301 = vmatmul.msk.f32.gmra.mxu1 %vm471_vm0, %v1231_v30  ;;  %v8928_v12 = vld [vmem:[#allocation82_spill] sm:$0xff]  ;;  %v3119_v18 = vadd.f32 %v3118_v40, %v3117_v36  ;;  %v8934_v59 = vld [vmem:[#allocation47_spill] sm:$0xff] }
 0x2d6   : > { %324 = vst.msk [vmem:[#allocation3 + $0x2] sm:$0x3] %vm5787_vm1, %v5172_v2  ;;  %v6502_v38 = vpop.eup %4621  ;;  %v3154_v13 = vadd.f32 %v3153_v25, %v3152_v22  ;;  %4633 = vpow2.f32 %v2751_v1  ;;  %v2743_v22 = vmul.f32 1.442695, %v2398_v62  ;;  %3454 = vmatpush.msra.mxu1 %v6163_v20  ;;  %v8930_v62 = vld [vmem:[#allocation83_spill] sm:$0xff]  ;;  %v8931_v36 = vsub.f32 %v8900_v44, %v6252_v58 }
 0x2d7   : > { %v6511_v53 = vpop.eup %4623  ;;  %4635 = vpow2.f32 %v2729_v5  ;;  %v3161_v25 = vadd.f32 %v6431_v17, %v3160_v19  ;;  %325 = vst.msk [vmem:[#allocation3 + $0x4] sm:$0x3] %vm5787_vm1, %v5172_v2  ;;  %v8929_v5 = vsub.f32 %v8896_v31, %v6249_v23  ;;  %v3196_v44 = vadd.f32 %v6399_v29, %v6379_v46 }
 0x2d8   : > { %v6523_v45 = vpop.eup %4625  ;;  %v3155_v1 = vrot.slane %v3154_v13, 2  ;;  %4637 = vpow2.f32 %v2741_v49  ;;  %326 = vst.msk [vmem:[#allocation3 + $0x6] sm:$0x3] %vm5787_vm1, %v5172_v2  ;;  %v2739_v40 = vmul.f32 1.442695, %v8931_v36  ;;  %v6540_v49 = vpop.f32.mrf.mxu2  ;;  %v8938_v21 = vsub.f32 %v8893_v52, %v6252_v58 }
 0x2d9   : > { %v2733_v30 = vmul.f32 1.442695, %v8929_v5  ;;  %v6532_v9 = vpop.eup %4627  ;;  %4639 = vpow2.f32 %v2747_v56  ;;  %v3162_v31 = vadd.f32 %v6445_v60, %v3161_v25  ;;  %8932 = vst [vmem:[#allocation80_spill] sm:$0xff] %v6540_v49  ;;  %v6542_v55 = vpop.f32.mrf.mxu3  ;;  %3509 = vmatpush.msrb.mxu0 %v6523_v45  ;;  %v8935_v5 = vsub.f32 %v8934_v59, %v6252_v58  ;;  %v8936_v56 = vld [vmem:[#allocation44_spill] sm:$0xff]  ;;  %v8937_v25 = vld [vmem:[#allocation33_spill] sm:$0xff] }
 0x2da   : > { %8933 = vst [vmem:[#allocation81_spill] sm:$0xff] %v6542_v55  ;;  %v6545_v20 = vpop.eup %4629  ;;  %v3156_v2 = vadd.f32 %v3155_v1, %v3154_v13  ;;  %4641 = vpow2.f32 %v2737_v8  ;;  %3500 = vmatpush.msra.mxu3 %v8936_v56  ;;  %3455 = vmatpush.msra.mxu1 %v8937_v25  ;;  %v2731_v34 = vmul.f32 1.442695, %v8938_v21  ;;  %v8939_v13 = vsub.f32 %v8897_v39, %v6252_v58  ;;  %v6563_v59 = vpop.f32.mrf.mxu0  ;;  %v8940_v39 = vld [vmem:[#allocation36_spill] sm:$0xff] }
 0x2db   : > { %v2727_v19 = vmul.f32 1.442695, %v8935_v5  ;;  %v6554_v36 = vpop.eup %4631  ;;  %4643 = vpow2.f32 %v2743_v22  ;;  %v3163_v8 = vadd.f32 %v6458_v54, %v3162_v31  ;;  %v6565_v5 = vpop.f32.mrf.mxu1  ;;  %3555 = vmatpush.msrb.mxu2 %v6545_v20  ;;  %3510 = vmatpush.msrb.mxu0 %v6532_v9  ;;  %v3120_v25 = vrot.slane %v3119_v18, 1  ;;  %v8941_v31 = vld [vmem:[#allocation86_spill] sm:$0xff] }
 0x2dc   : > { %v2735_v1 = vmul.f32 1.442695, %v8939_v13  ;;  %v6569_v56 = vpop.eup %4633  ;;  %v3157_v52 = vrot.slane %v3156_v2, 1  ;;  %4645 = vpow2.f32 %v2733_v30  ;;  %v3197_v21 = vadd.f32 %v6421_v24, %v3196_v44  ;;  %3501 = vmatpush.msra.mxu3 %v8940_v39  ;;  %v1618_v28 = vpop.trf.xlu1 }
 0x2dd   : > { %v6573_v22 = vpop.eup %4635  ;;  %v2413_v13 = vsub.f32 %v8941_v31, %v6249_v23  ;;  %4647 = vpow2.f32 %v2739_v40  ;;  %v8942_v32 = vsub.f32 %v8809_v47, %v6249_v23  ;;  %v3164_v49 = vadd.f32 %v6475_v3, %v3163_v8  ;;  %v1232_v43 = vpop.trf.xlu0  ;;  %3556 = vmatpush.msrb.mxu2 %v6569_v56  ;;  %3511 = vmatpush.msrb.mxu0 %v6554_v36 }
 0x2de   : > { %v6583_v30 = vpop.eup %4637  ;;  %v3158_v44 = vadd.f32 %v3157_v52, %v3156_v2  ;;  %4649 = vpow2.f32 %v2727_v19  ;;  %v8943_v39 = vsub.f32 %v8810_v61, %v6252_v58  ;;  %v3198_v31 = vadd.f32 %v6438_v63, %v3197_v21  ;;  %4270 = vmatmul.msk.f32.gmra.mxu0 %vm471_vm0, %v1232_v43  ;;  %4302 = vmatmul.msk.f32.gmra.mxu1 %vm471_vm0, %v1232_v43 }
 0x2df   : > { %v2757_v55 = vmul.f32 1.442695, %v8942_v32  ;;  %v6591_v47 = vpop.eup %4639  ;;  %4651 = vpow2.f32 %v2731_v34  ;;  %v8944_v32 = vsub.f32 %v8811_v41, %v6249_v23  ;;  %v8945_v19 = vsub.f32 %v8812_v4, %v6252_v58  ;;  %4334 = vmatmul.msk.f32.gmra.mxu2 %vm471_vm0, %v1618_v28  ;;  %4366 = vmatmul.msk.f32.gmra.mxu3 %vm471_vm0, %v1618_v28  ;;  %v8946_v4 = vld [vmem:[#allocation87_spill] sm:$0xff] }
 0x2e0   : > { %v2759_v40 = vmul.f32 1.442695, %v8943_v39  ;;  %v3165_v61 = vadd.f32 %v6495_v16, %v3164_v49  ;;  %v4642_v52 = vpop.eup %4641  ;;  %v3121_v21 = vadd.f32 %v3120_v25, %v3119_v18  ;;  %v3389_v43 = vrot.slane %v3158_v44, 7  ;;  %3557 = vmatpush.msrb.mxu2 %v6591_v47  ;;  %3512 = vmatpush.msrb.mxu0 %v6583_v30  ;;  %v6613_v25 = vpop.f32.mrf.mxu2 }
 0x2e1   : > { %v2761_v8 = vmul.f32 1.442695, %v8944_v32  ;;  %v2763_v2 = vmul.f32 1.442695, %v8945_v19  ;;  %4653 = vpow2.f32 %v2735_v1  ;;  %v3199_v34 = vadd.f32 %v6453_v50, %v3198_v31  ;;  %v6605_v41 = vpop.eup %4643  ;;  %8948 = vst [vmem:[#allocation84_spill] sm:$0xff] %v6613_v25  ;;  %v6615_v1 = vpop.f32.mrf.mxu3 }
 0x2e2   : > { %v2414_v39 = vsub.f32 %v8946_v4, %v6252_v58  ;;  %4655 = vpow2.f32 %v2757_v55  ;;  %v8947_v49 = vsub.f32 %v8926_v7, %v6249_v23  ;;  %v3166_v18 = vadd.f32 %v6511_v53, %v3165_v61  ;;  %8949 = vst [vmem:[#allocation85_spill] sm:$0xff] %v6615_v1  ;;  %v4646_v44 = vpop.eup %4645  ;;  %3558 = vmatpush.msrb.mxu2 %v6605_v41  ;;  %v8952_v61 = vld [vmem:[#allocation90_spill] sm:$0xff] }
 0x2e3   : > { %v6618_v31 = vsel %vm2264_vm2, %v3121_v21, %v3389_v43  ;;  %4657 = vpow2.f32 %v2759_v40  ;;  %v8951_v32 = vsub.f32 %v8927_v57, %v6252_v58  ;;  %v3200_v55 = vadd.f32 %v6468_v42, %v3199_v34  ;;  %3513 = vmatpush.msrb.mxu0 %v4642_v52  ;;  %v6625_v7 = vpop.eup %4647  ;;  %v6635_v57 = vpop.f32.mrf.mxu1 }
 0x2e4   : > { %v2765_v28 = vmul.f32 1.442695, %v8947_v49  ;;  %8950 = vst [vmem:[#allocation88_spill] sm:$0xff] %v6618_v31  ;;  %v2415_v4 = vsub.f32 %v8952_v61, %v6249_v23  ;;  %4659 = vpow2.f32 %v2761_v8  ;;  %v8953_v21 = vsub.f32 %v8928_v12, %v6249_v23  ;;  %v6633_v49 = vpop.f32.mrf.mxu0  ;;  %v4650_v34 = vpop.eup %4649  ;;  %3559 = vmatpush.msrb.mxu2 %v6625_v7 }
 0x2e5   : > { %v2767_v19 = vmul.f32 1.442695, %v8951_v32  ;;  %v3167_v40 = vadd.f32 %v6573_v22, %v3166_v18  ;;  %8954 = vst [vmem:[#allocation89_spill] sm:$0xff] %v6635_v57  ;;  %v8955_v32 = vld [vmem:[#allocation91_spill] sm:$0xff]  ;;  %4661 = vpow2.f32 %v2763_v2  ;;  %v8956_v25 = vsub.f32 %v8930_v62, %v6252_v58  ;;  %3514 = vmatpush.msrb.mxu0 %v4646_v44  ;;  %v4652_v12 = vpop.eup %4651  ;;  %v8957_v18 = vld [vmem:[#allocation94_spill] sm:$0xff]  ;;  %v1619_v35 = vpop.trf.xlu1  ;;  %v8958_v2 = vld [vmem:[#allocation97_spill] sm:$0xff] }
 0x2e6   : > { %v2769_v43 = vmul.f32 1.442695, %v8953_v21  ;;  %v2416_v1 = vsub.f32 %v8955_v32, %v6252_v58  ;;  %v3201_v8 = vadd.f32 %v6486_v48, %v3200_v55  ;;  %v2417_v21 = vsub.f32 %v8957_v18, %v6249_v23  ;;  %v1233_v31 = vpop.trf.xlu0 }
 0x2e7   : > { %v2771_v61 = vmul.f32 1.442695, %v8956_v25  ;;  %4663 = vpow2.f32 %v2765_v28  ;;  %v2773_v26 = vmul.f32 1.442695, %v2413_v13  ;;  %v3168_v15 = vadd.f32 %v4646_v44, %v3167_v40  ;;  %v4654_v32 = vpop.eup %4653  ;;  %4271 = vmatmul.msk.f32.gmra.mxu0 %vm471_vm0, %v1233_v31  ;;  %4303 = vmatmul.msk.f32.gmra.mxu1 %vm471_vm0, %v1233_v31  ;;  %v8959_v28 = vld [vmem:[#allocation100_spill] sm:$0xff] }
 0x2e8   : > { %v2418_v57 = vsub.f32 %v8958_v2, %v6252_v58  ;;  %4665 = vpow2.f32 %v2767_v19  ;;  %v2775_v62 = vmul.f32 1.442695, %v2414_v39  ;;  %v3202_v25 = vadd.f32 %v6502_v38, %v3201_v8  ;;  %v6651_v55 = vpop.eup %4655  ;;  %4335 = vmatmul.msk.f32.gmra.mxu2 %vm471_vm0, %v1619_v35  ;;  %4367 = vmatmul.msk.f32.gmra.mxu3 %vm471_vm0, %v1619_v35  ;;  %v8960_v39 = vld [vmem:[#allocation105_spill] sm:$0xff] }
 0x2e9   : > { %v2419_v13 = vsub.f32 %v8959_v28, %v6249_v23  ;;  %4667 = vpow2.f32 %v2769_v43  ;;  %v2777_v44 = vmul.f32 1.442695, %v2415_v4  ;;  %v3169_v40 = vadd.f32 %v4642_v52, %v3168_v15  ;;  %v6657_v19 = vpop.eup %4657  ;;  %3560 = vmatpush.msrb.mxu2 %v4654_v32  ;;  %3515 = vmatpush.msrb.mxu0 %v6573_v22  ;;  %v8961_v4 = vld [vmem:[#allocation109_spill] sm:$0xff]  ;;  %v6667_v43 = vpop.f32.mrf.mxu2 }
 0x2ea   : > { %v2421_v8 = vsub.f32 %v8960_v39, %v6249_v23  ;;  %4669 = vpow2.f32 %v2771_v61  ;;  %v2779_v18 = vmul.f32 1.442695, %v2416_v1  ;;  %v3203_v31 = vadd.f32 %v4650_v34, %v3202_v25  ;;  %v6662_v2 = vpop.eup %4659  ;;  %8962 = vst [vmem:[#allocation92_spill] sm:$0xff] %v6667_v43  ;;  %v6669_v28 = vpop.f32.mrf.mxu3  ;;  %v8964_v1 = vld [vmem:[#allocation23_spill] sm:$0xff] }
 0x2eb   : > { %v2423_v15 = vsub.f32 %v8961_v4, %v6249_v23  ;;  %4671 = vpow2.f32 %v2773_v26  ;;  %v2781_v52 = vmul.f32 1.442695, %v2417_v21  ;;  %v3170_v35 = vadd.f32 %v6583_v30, %v3169_v40  ;;  %8963 = vst [vmem:[#allocation113_spill] sm:$0xff] %v6669_v28  ;;  %v6671_v39 = vpop.eup %4661  ;;  %3561 = vmatpush.msrb.mxu2 %v4652_v12  ;;  %3516 = vmatpush.msrb.mxu0 %v6511_v53  ;;  %v8965_v26 = vld [vmem:[#allocation24_spill] sm:$0xff]  ;;  %v6683_v43 = vpop.f32.mrf.mxu1 }
 0x2ec   : > { %v2435_v61 = vsub.f32 %v8964_v1, %v6249_v23  ;;  %4673 = vpow2.f32 %v2775_v62  ;;  %v2783_v22 = vmul.f32 1.442695, %v2418_v57  ;;  %v3204_v25 = vadd.f32 %v4652_v12, %v3203_v31  ;;  %v6681_v28 = vpop.f32.mrf.mxu0  ;;  %8967 = vst [vmem:[#allocation111_spill] sm:$0xff] %v6683_v43  ;;  %v8968_v57 = vld [vmem:[#allocation72_spill] sm:$0xff] }
 0x2ed   : > { %v6676_v4 = vpop.eup %4663  ;;  %v2436_v30 = vsub.f32 %v8965_v26, %v6252_v58  ;;  %4675 = vpow2.f32 %v2777_v44  ;;  %v2785_v21 = vmul.f32 1.442695, %v2419_v13  ;;  %v3171_v40 = vadd.f32 %v6554_v36, %v3170_v35  ;;  %8966 = vst [vmem:[#allocation114_spill] sm:$0xff] %v6681_v28  ;;  %3562 = vmatpush.msrb.mxu2 %v4650_v34  ;;  %3517 = vmatpush.msrb.mxu0 %v6495_v16  ;;  %v8969_v13 = vld [vmem:[#allocation73_spill] sm:$0xff]  ;;  %v1620_v26 = vpop.trf.xlu1 }
 0x2ee   : > { %v6685_v1 = vpop.eup %4665  ;;  %v2433_v12 = vsub.f32 %v8968_v57, %v6249_v23  ;;  %4677 = vpow2.f32 %v2779_v18  ;;  %v2789_v53 = vmul.f32 1.442695, %v2421_v8  ;;  %v3205_v62 = vadd.f32 %v4654_v32, %v3204_v25  ;;  %v1234_v43 = vpop.trf.xlu0  ;;  %v8970_v18 = vld [vmem:[#allocation69_spill] sm:$0xff] }
 0x2ef   : > { %v6690_v31 = vpop.eup %4667  ;;  %v2434_v36 = vsub.f32 %v8969_v13, %v6252_v58  ;;  %4679 = vpow2.f32 %v2781_v52  ;;  %v2793_v44 = vmul.f32 1.442695, %v2423_v15  ;;  %v3172_v35 = vadd.f32 %v6532_v9, %v3171_v40  ;;  %4272 = vmatmul.msk.f32.gmra.mxu0 %vm471_vm0, %v1234_v43  ;;  %4304 = vmatmul.msk.f32.gmra.mxu1 %vm471_vm0, %v1234_v43  ;;  %v8971_v15 = vld [vmem:[#allocation70_spill] sm:$0xff] }
 0x2f0   : > { %v6695_v28 = vpop.eup %4669  ;;  %v2431_v8 = vsub.f32 %v8970_v18, %v6249_v23  ;;  %4681 = vpow2.f32 %v2783_v22  ;;  %v2817_v34 = vmul.f32 1.442695, %v2435_v61  ;;  %v3206_v16 = vadd.f32 %v6625_v7, %v3205_v62  ;;  %4336 = vmatmul.msk.f32.gmra.mxu2 %vm471_vm0, %v1620_v26  ;;  %4368 = vmatmul.msk.f32.gmra.mxu3 %vm471_vm0, %v1620_v26  ;;  %v8972_v7 = vld [vmem:[#allocation121_spill] sm:$0xff] }
 0x2f1   : > { %v6702_v32 = vpop.eup %4671  ;;  %v2432_v9 = vsub.f32 %v8971_v15, %v6252_v58  ;;  %4683 = vpow2.f32 %v2785_v21  ;;  %v2819_v52 = vmul.f32 1.442695, %v2436_v30  ;;  %v3173_v25 = vadd.f32 %v6523_v45, %v3172_v35  ;;  %3563 = vmatpush.msrb.mxu2 %v6502_v38  ;;  %3518 = vmatpush.msrb.mxu0 %v6475_v3  ;;  %v8973_v45 = vld [vmem:[#allocation122_spill] sm:$0xff]  ;;  %v6721_v13 = vpop.f32.mrf.mxu2 }
 0x2f2   : > { %v6709_v61 = vpop.eup %4673  ;;  %v2429_v22 = vsub.f32 %v8972_v7, %v6249_v23  ;;  %4685 = vpow2.f32 %v2789_v53  ;;  %v2813_v43 = vmul.f32 1.442695, %v2433_v12  ;;  %v3207_v40 = vadd.f32 %v6605_v41, %v3206_v16  ;;  %8974 = vst [vmem:[#allocation112_spill] sm:$0xff] %v6721_v13  ;;  %v6723_v35 = vpop.f32.mrf.mxu3  ;;  %v8976_v41 = vld [vmem:[#allocation117_spill] sm:$0xff] }
 0x2f3   : > { %v6716_v30 = vpop.eup %4675  ;;  %v2430_v21 = vsub.f32 %v8973_v45, %v6252_v58  ;;  %4687 = vpow2.f32 %v2793_v44  ;;  %v2815_v57 = vmul.f32 1.442695, %v2434_v36  ;;  %v3174_v62 = vadd.f32 %v6651_v55, %v3173_v25  ;;  %8975 = vst [vmem:[#allocation107_spill] sm:$0xff] %v6723_v35  ;;  %3564 = vmatpush.msrb.mxu2 %v6486_v48  ;;  %3519 = vmatpush.msrb.mxu0 %v6458_v54  ;;  %v8977_v44 = vld [vmem:[#allocation118_spill] sm:$0xff]  ;;  %v6739_v25 = vpop.f32.mrf.mxu1 }
 0x2f4   : > { %v6725_v12 = vpop.eup %4677  ;;  %v2427_v38 = vsub.f32 %v8976_v41, %v6249_v23  ;;  %v2809_v53 = vmul.f32 1.442695, %v2431_v8  ;;  %4689 = vpow2.f32 %v2817_v34  ;;  %v3208_v3 = vadd.f32 %v6591_v47, %v3207_v40  ;;  %v6737_v15 = vpop.f32.mrf.mxu0  ;;  %v8979_v47 = vld [vmem:[#allocation115_spill] sm:$0xff] }
 0x2f5   : > { %v6732_v36 = vpop.eup %4679  ;;  %v2428_v26 = vsub.f32 %v8977_v44, %v6252_v58  ;;  %v2811_v18 = vmul.f32 1.442695, %v2432_v9  ;;  %4691 = vpow2.f32 %v2819_v52  ;;  %v3175_v16 = vadd.f32 %v6662_v2, %v3174_v62  ;;  %8978 = vst [vmem:[#allocation108_spill] sm:$0xff] %v6737_v15  ;;  %3565 = vmatpush.msrb.mxu2 %v6468_v42  ;;  %3520 = vmatpush.msrb.mxu0 %v6445_v60  ;;  %v8980_v52 = vld [vmem:[#allocation116_spill] sm:$0xff]  ;;  %v1621_v62 = vpop.trf.xlu1 }
 0x2f6   : > { %v6741_v8 = vpop.eup %4681  ;;  %v2425_v48 = vsub.f32 %v8979_v47, %v6249_v23  ;;  %v2805_v34 = vmul.f32 1.442695, %v2429_v22  ;;  %4693 = vpow2.f32 %v2813_v43  ;;  %v3209_v54 = vadd.f32 %v6569_v56, %v3208_v3  ;;  %v1235_v41 = vpop.trf.xlu0  ;;  %v8981_v22 = vld [vmem:[#allocation101_spill] sm:$0xff] }
 0x2f7   : > { %v6748_v9 = vpop.eup %4683  ;;  %v2426_v7 = vsub.f32 %v8980_v52, %v6252_v58  ;;  %v2807_v40 = vmul.f32 1.442695, %v2430_v21  ;;  %4695 = vpow2.f32 %v2815_v57  ;;  %v3176_v45 = vadd.f32 %v6676_v4, %v3175_v16  ;;  %4273 = vmatmul.msk.f32.gmra.mxu0 %vm471_vm0, %v1235_v41  ;;  %4305 = vmatmul.msk.f32.gmra.mxu1 %vm471_vm0, %v1235_v41  ;;  %v8982_v21 = vld [vmem:[#allocation110_spill] sm:$0xff] }
 0x2f8   : > { %v6753_v23 = vpop.eup %4685  ;;  %v2420_v56 = vsub.f32 %v8981_v22, %v6252_v58  ;;  %v2801_v43 = vmul.f32 1.442695, %v2427_v38  ;;  %4697 = vpow2.f32 %v2809_v53  ;;  %v3210_v60 = vadd.f32 %v6545_v20, %v3209_v54  ;;  %4337 = vmatmul.msk.f32.gmra.mxu2 %vm471_vm0, %v1621_v62  ;;  %4369 = vmatmul.msk.f32.gmra.mxu3 %vm471_vm0, %v1621_v62 }
 0x2f9   : > { %v6760_v42 = vpop.eup %4687  ;;  %v2424_v57 = vsub.f32 %v8982_v21, %v6252_v58  ;;  %v2803_v3 = vmul.f32 1.442695, %v2428_v26  ;;  %4699 = vpow2.f32 %v2811_v18  ;;  %v3177_v44 = vadd.f32 %v6690_v31, %v3176_v45  ;;  %3566 = vmatpush.msrb.mxu2 %v6453_v50  ;;  %3521 = vmatpush.msrb.mxu0 %v6431_v17  ;;  %v8983_v26 = vld [vmem:[#allocation106_spill] sm:$0xff]  ;;  %v6778_v52 = vpop.f32.mrf.mxu2 }
 0x2fa   : > { %v6767_v38 = vpop.eup %4689  ;;  %v2797_v20 = vmul.f32 1.442695, %v2425_v48  ;;  %4701 = vpow2.f32 %v2805_v34  ;;  %v3211_v53 = vadd.f32 %v6657_v19, %v3210_v60  ;;  %v2422_v18 = vsub.f32 %v8983_v26, %v6252_v58  ;;  %8984 = vst [vmem:[#allocation102_spill] sm:$0xff] %v6778_v52  ;;  %v6780_v48 = vpop.f32.mrf.mxu3 }
 0x2fb   : > { %v6772_v16 = vpop.eup %4691  ;;  %v2799_v47 = vmul.f32 1.442695, %v2426_v7  ;;  %4703 = vpow2.f32 %v2807_v40  ;;  %v3178_v54 = vadd.f32 %v6702_v32, %v3177_v44  ;;  %3532 = vmatpush.msrb.mxu1 %v6767_v38  ;;  %8985 = vst [vmem:[#allocation103_spill] sm:$0xff] %v6780_v48  ;;  %v2787_v50 = vmul.f32 1.442695, %v2420_v56  ;;  %3567 = vmatpush.msrb.mxu2 %v6438_v63  ;;  %v6793_v62 = vpop.f32.mrf.mxu1 }
 0x2fc   : > { %v6782_v34 = vpop.eup %4693  ;;  %4705 = vpow2.f32 %v2801_v43  ;;  %v3212_v17 = vadd.f32 %v6671_v39, %v3211_v53  ;;  %3578 = vmatpush.msrb.mxu3 %v6772_v16  ;;  %v2795_v7 = vmul.f32 1.442695, %v2424_v57  ;;  %v6791_v45 = vpop.f32.mrf.mxu0  ;;  %3522 = vmatpush.msrb.mxu0 %v6409_v0  ;;  %v2791_v56 = vmul.f32 1.442695, %v2422_v18 }
 0x2fd   : > { %v6787_v58 = vpop.eup %4695  ;;  %4707 = vpow2.f32 %v2803_v3  ;;  %v3179_v40 = vadd.f32 %v6716_v30, %v3178_v54  ;;  %3533 = vmatpush.msrb.mxu1 %v6782_v34  ;;  %3568 = vmatpush.msrb.mxu2 %v6421_v24  ;;  %v1622_v60 = vpop.trf.xlu1 }
 0x2fe   : > { %v6796_v41 = vpop.eup %4697  ;;  %4709 = vpow2.f32 %v2797_v20  ;;  %v3213_v22 = vadd.f32 %v6685_v1, %v3212_v17  ;;  %3579 = vmatpush.msrb.mxu3 %v6787_v58  ;;  %v1236_v21 = vpop.trf.xlu0  ;;  %3523 = vmatpush.msrb.mxu0 %v6387_v11 }
 0x2ff   : > { %v6801_v63 = vpop.eup %4699  ;;  %4711 = vpow2.f32 %v2799_v47  ;;  %v3180_v43 = vadd.f32 %v6732_v36, %v3179_v40  ;;  %3534 = vmatpush.msrb.mxu1 %v6796_v41  ;;  %4274 = vmatmul.msk.f32.gmra.mxu0 %vm471_vm0, %v1236_v21 }
 0x300   : > { %v4702_v0 = vpop.eup %4701  ;;  %4713 = vpow2.f32 %v2787_v50  ;;  %v3214_v57 = vadd.f32 %v6695_v28, %v3213_v22  ;;  %3580 = vmatpush.msrb.mxu3 %v6801_v63  ;;  %4338 = vmatmul.msk.f32.gmra.mxu2 %vm471_vm0, %v1622_v60 }
 0x301   : > { %v6809_v24 = vpop.eup %4703  ;;  %4715 = vpow2.f32 %v2795_v7  ;;  %v3181_v3 = vadd.f32 %v6748_v9, %v3180_v43  ;;  %3535 = vmatpush.msrb.mxu1 %v4702_v0  ;;  %4370 = vmatmul.msk.f32.gmra.mxu3 %vm471_vm0, %v1622_v60  ;;  %v6819_v47 = vpop.f32.mrf.mxu2 }
 0x302   : > { %v4706_v44 = vpop.eup %4705  ;;  %v3215_v20 = vadd.f32 %v6709_v61, %v3214_v57  ;;  %3581 = vmatpush.msrb.mxu3 %v6809_v24  ;;  %4306 = vmatmul.msk.f32.gmra.mxu1 %vm471_vm0, %v1236_v21  ;;  %4717 = vpow2.f32 %v2791_v56  ;;  %8986 = vst [vmem:[#allocation98_spill] sm:$0xff] %v6819_v47  ;;  %v6821_v54 = vpop.f32.mrf.mxu3 }
 0x303   : > { %v4708_v11 = vpop.eup %4707  ;;  %v3182_v53 = vadd.f32 %v6753_v23, %v3181_v3  ;;  %3536 = vmatpush.msrb.mxu1 %v4706_v44  ;;  %8987 = vst [vmem:[#allocation95_spill] sm:$0xff] %v6821_v54  ;;  %3569 = vmatpush.msrb.mxu2 %v6399_v29  ;;  %v6827_v40 = vpop.f32.mrf.mxu1 }
 0x304   : > { %v4710_v26 = vpop.eup %4709  ;;  %v3216_v18 = vadd.f32 %v6725_v12, %v3215_v20  ;;  %3582 = vmatpush.msrb.mxu3 %v4708_v11  ;;  %v6825_v7 = vpop.f32.mrf.mxu0  ;;  %3524 = vmatpush.msrb.mxu0 %v6369_v6 }
 0x305   : > { %v4712_v50 = vpop.eup %4711  ;;  %v3183_v17 = vadd.f32 %v6760_v42, %v3182_v53  ;;  %3537 = vmatpush.msrb.mxu1 %v4710_v26  ;;  %3570 = vmatpush.msrb.mxu2 %v6379_v46  ;;  %v1623_v29 = vpop.trf.xlu1 }
 0x306   : > { %v4714_v22 = vpop.eup %4713  ;;  %v3217_v56 = vadd.f32 %v6741_v8, %v3216_v18  ;;  %3583 = vmatpush.msrb.mxu3 %v4712_v50  ;;  %v1237_v21 = vpop.trf.xlu0 }
 0x307   : > { %v4716_v43 = vpop.eup %4715  ;;  %v3184_v60 = vadd.f32 %v4710_v26, %v3183_v17  ;;  %3538 = vmatpush.msrb.mxu1 %v6760_v42  ;;  %4275 = vmatmul.msk.f32.gmra.mxu0 %vm471_vm0, %v1237_v21 }
 0x308   : > { %v3218_v57 = vadd.f32 %v4714_v22, %v3217_v56  ;;  %3584 = vmatpush.msrb.mxu3 %v4716_v43  ;;  %v4718_v3 = vpop.eup %4717  ;;  %4339 = vmatmul.msk.f32.gmra.mxu2 %vm471_vm0, %v1623_v29 }
 0x309   : > { %v3185_v20 = vadd.f32 %v4706_v44, %v3184_v60  ;;  %3539 = vmatpush.msrb.mxu1 %v6753_v23  ;;  %4371 = vmatmul.msk.f32.gmra.mxu3 %vm471_vm0, %v1623_v29  ;;  %v6846_v18 = vpop.f32.mrf.mxu2 }
 0x30a   : > { %v3219_v6 = vadd.f32 %v4718_v3, %v3218_v57  ;;  %3585 = vmatpush.msrb.mxu3 %v4718_v3  ;;  %4307 = vmatmul.msk.f32.gmra.mxu1 %vm471_vm0, %v1237_v21  ;;  %8990 = vst [vmem:[#allocation96_spill] sm:$0xff] %v6846_v18  ;;  %v9038_v18 = vld [vmem:[#allocation114_spill] sm:$0xff] }
 0x30b   : > { %v3186_v46 = vadd.f32 %v4702_v0, %v3185_v20  ;;  %3540 = vmatpush.msrb.mxu1 %v6748_v9  ;;  %v6843_v23 = vpop.f32.mrf.mxu1  ;;  %v6848_v0 = vpop.f32.mrf.mxu3 }
 0x30c   : > { %v3220_v42 = vadd.f32 %v4716_v43, %v3219_v6  ;;  %3586 = vmatpush.msrb.mxu3 %v4714_v22  ;;  %v6841_v44 = vpop.f32.mrf.mxu0  ;;  %8989 = vst [vmem:[#allocation99_spill] sm:$0xff] %v6843_v23 }
 0x30d   : > { %v3187_v53 = vadd.f32 %v6796_v41, %v3186_v46  ;;  %3541 = vmatpush.msrb.mxu1 %v6732_v36  ;;  %8988 = vst [vmem:[#allocation93_spill] sm:$0xff] %v6841_v44  ;;  %v1624_v17 = vpop.trf.xlu1 }
 0x30e   : > { %v3221_v26 = vadd.f32 %v4712_v50, %v3220_v42  ;;  %3587 = vmatpush.msrb.mxu3 %v6741_v8  ;;  %8991 = vst [vmem:[#allocation21_spill] sm:$0xff] %v6848_v0  ;;  %v1238_v22 = vpop.trf.xlu0 }
 0x30f   : > { %v3188_v9 = vadd.f32 %v6782_v34, %v3187_v53  ;;  %3542 = vmatpush.msrb.mxu1 %v6716_v30  ;;  %4276 = vmatmul.msk.f32.gmra.mxu0 %vm471_vm0, %v1238_v22 }
 0x310   : > { %v3222_v41 = vadd.f32 %v4708_v11, %v3221_v26  ;;  %3588 = vmatpush.msrb.mxu3 %v6725_v12  ;;  %4340 = vmatmul.msk.f32.gmra.mxu2 %vm471_vm0, %v1624_v17 }
 0x311   : > { %v3189_v36 = vadd.f32 %v6767_v38, %v3188_v9  ;;  %3543 = vmatpush.msrb.mxu1 %v6702_v32  ;;  %4372 = vmatmul.msk.f32.gmra.mxu3 %vm471_vm0, %v1624_v17 }
 0x312   : > { %v3223_v8 = vadd.f32 %v6809_v24, %v3222_v41  ;;  %3589 = vmatpush.msrb.mxu3 %v6709_v61  ;;  %4308 = vmatmul.msk.f32.gmra.mxu1 %vm471_vm0, %v1238_v22 }
 0x313   : > { %v3190_v30 = vrot.slane %v3189_v36, 4  ;;  %3544 = vmatpush.msrb.mxu1 %v6690_v31  ;;  %v6867_v38 = vpop.f32.mrf.mxu1 }
 0x314   : > { %v3224_v12 = vadd.f32 %v6801_v63, %v3223_v8  ;;  %3590 = vmatpush.msrb.mxu3 %v6695_v28  ;;  %v6865_v32 = vpop.f32.mrf.mxu0  ;;  %8993 = vst [vmem:[#allocation25_spill] sm:$0xff] %v6867_v38  ;;  %v6874_v28 = vpop.f32.mrf.mxu2 }
 0x315   : > { %3545 = vmatpush.msrb.mxu1 %v6676_v4  ;;  %8992 = vst [vmem:[#allocation22_spill] sm:$0xff] %v6865_v32  ;;  %v3191_v34 = vadd.f32 %v3190_v30, %v3189_v36  ;;  %v1625_v31 = vpop.trf.xlu1  ;;  %v6876_v4 = vpop.f32.mrf.mxu3 }
 0x316   : > { %v3225_v61 = vadd.f32 %v6787_v58, %v3224_v12  ;;  %3591 = vmatpush.msrb.mxu3 %v6685_v1  ;;  %v1239_v24 = vpop.trf.xlu0  ;;  %8994 = vst [vmem:[#allocation26_spill] sm:$0xff] %v6874_v28 }
 0x317   : > { %3546 = vmatpush.msrb.mxu1 %v6662_v2  ;;  %8995 = vst [vmem:[#allocation28_spill] sm:$0xff] %v6876_v4  ;;  %4277 = vmatmul.msk.f32.gmra.mxu0 %vm471_vm0, %v1239_v24  ;;  %v3192_v58 = vrot.slane %v3191_v34, 2 }
 0x318   : > { %v3226_v11 = vadd.f32 %v6772_v16, %v3225_v61  ;;  %3592 = vmatpush.msrb.mxu3 %v6671_v39  ;;  %4341 = vmatmul.msk.f32.gmra.mxu2 %vm471_vm0, %v1625_v31 }
 0x319   : > { %3547 = vmatpush.msrb.mxu1 %v6651_v55  ;;  %4373 = vmatmul.msk.f32.gmra.mxu3 %vm471_vm0, %v1625_v31  ;;  %v3193_v63 = vadd.f32 %v3192_v58, %v3191_v34 }
 0x31a   : > { %v3227_v1 = vrot.slane %v3226_v11, 4  ;;  %3593 = vmatpush.msrb.mxu3 %v6657_v19  ;;  %4309 = vmatmul.msk.f32.gmra.mxu1 %vm471_vm0, %v1239_v24 }
 0x31b   : > { %v6886_v16 = vpop.f32.mrf.mxu1  ;;  %v3194_v60 = vrot.slane %v3193_v63, 1 }
 0x31c   : > { %v3228_v2 = vadd.f32 %v3227_v1, %v3226_v11  ;;  %v6884_v39 = vpop.f32.mrf.mxu0  ;;  %v6890_v29 = vpop.f32.mrf.mxu2  ;;  %v391_v1 = vld [vmem:[%s6936_s18] sm:$0xff] }
 0x31d   : > { %8996 = vst [vmem:[#allocation29_spill] sm:$0xff] %v6884_v39  ;;  %v1626_v56 = vpop.trf.xlu1  ;;  %v6892_v21 = vpop.f32.mrf.mxu3  ;;  %v3195_v6 = vadd.f32 %v3194_v60, %v3193_v63  ;;  %v394_v60 = vld [vmem:[%s6936_s18 + $0x18] sm:$0xff] }
 0x31e   : > { %v3229_v50 = vrot.slane %v3228_v2, 2  ;;  %v1240_v43 = vpop.trf.xlu0  ;;  %8997 = vst [vmem:[#allocation30_spill] sm:$0xff] %v6890_v29 }
 0x31f   : > { %4278 = vmatmul.msk.f32.gmra.mxu0 %vm471_vm0, %v1240_v43  ;;  %8998 = vst [vmem:[#allocation31_spill] sm:$0xff] %v6892_v21 }
 0x320   : > { %v3230_v55 = vadd.f32 %v3229_v50, %v3228_v2  ;;  %4342 = vmatmul.msk.f32.gmra.mxu2 %vm471_vm0, %v1626_v56  ;;  %v392_v2 = vld [vmem:[%s6936_s18 + $0x8] sm:$0xff] }
 0x321   : > { %4374 = vmatmul.msk.f32.gmra.mxu3 %vm471_vm0, %v1626_v56 }
 0x322   : > { %v3231_v19 = vrot.slane %v3230_v55, 1  ;;  %4310 = vmatmul.msk.f32.gmra.mxu1 %vm471_vm0, %v1240_v43 }
 0x323   : > { %v6898_v20 = vpop.f32.mrf.mxu1 }
 0x324   : > { %v3232_v57 = vadd.f32 %v3231_v19, %v3230_v55  ;;  %v6896_v3 = vpop.f32.mrf.mxu0  ;;  %v6907_v9 = vpop.f32.mrf.mxu2  ;;  %v393_v55 = vld [vmem:[%s6936_s18 + $0x10] sm:$0xff] }
 0x325   : > { %v1627_v42 = vpop.trf.xlu1  ;;  %8999 = vst [vmem:[#allocation34_spill] sm:$0xff] %v6907_v9  ;;  %v6909_v17 = vpop.f32.mrf.mxu3 }
 0x326   : > { %v3390_v46 = vrot.slane %v3232_v57, 7  ;;  %v1241_v53 = vpop.trf.xlu0  ;;  %9000 = vst [vmem:[#allocation35_spill] sm:$0xff] %v6909_v17  ;;  %v9031_v17 = vld [vmem:[#allocation55_spill] sm:$0xff] }
 0x327   : > { %4279 = vmatmul.msk.f32.gmra.mxu0 %vm471_vm0, %v1241_v53 }
 0x328   : > { %v6901_v26 = vsel %vm2264_vm2, %v3195_v6, %v3390_v46  ;;  %4343 = vmatmul.msk.f32.gmra.mxu2 %vm471_vm0, %v1627_v42 }
 0x329   : > { %4375 = vmatmul.msk.f32.gmra.mxu3 %vm471_vm0, %v1627_v42  ;;  %v395_v42 = vld [vmem:[%s6936_s18 + $0x20] sm:$0xff] }
 0x32a   : > { %4311 = vmatmul.msk.f32.gmra.mxu1 %vm471_vm0, %v1241_v53  ;;  %v396_v53 = vld [vmem:[%s6936_s18 + $0x28] sm:$0xff] }
 0x32b   : > { %v6913_v41 = vpop.f32.mrf.mxu1 }
 0x32c   : > { %v6911_v22 = vpop.f32.mrf.mxu0  ;;  %v6923_v34 = vpop.f32.mrf.mxu2 }
 0x32d   : > { %v1628_v36 = vpop.trf.xlu1  ;;  %9002 = vst [vmem:[#allocation38_spill] sm:$0xff] %v6923_v34  ;;  %v6925_v61 = vpop.f32.mrf.mxu3 }
 0x32e   : > { %v1242_v8 = vpop.trf.xlu0  ;;  %9003 = vst [vmem:[#allocation39_spill] sm:$0xff] %v6925_v61 }
 0x32f   : > { %4280 = vmatmul.msk.f32.gmra.mxu0 %vm471_vm0, %v1242_v8 }
 0x330   : > { %4344 = vmatmul.msk.f32.gmra.mxu2 %vm471_vm0, %v1628_v36 }
 0x331   : > { %4376 = vmatmul.msk.f32.gmra.mxu3 %vm471_vm0, %v1628_v36 }
 0x332   : > { %4312 = vmatmul.msk.f32.gmra.mxu1 %vm471_vm0, %v1242_v8 }
 0x333   : > { %v6921_v12 = vpop.f32.mrf.mxu1 }
 0x334   : > { %v6919_v30 = vpop.f32.mrf.mxu0  ;;  %v6940_v63 = vpop.f32.mrf.mxu2 }
 0x335   : > { %9001 = vst [vmem:[#allocation37_spill] sm:$0xff] %v6919_v30  ;;  %v1629_v31 = vpop.trf.xlu1  ;;  %v6942_v50 = vpop.f32.mrf.mxu3 }
 0x336   : > { %v1243_v24 = vpop.trf.xlu0  ;;  %9006 = vst [vmem:[#allocation43_spill] sm:$0xff] %v6940_v63 }
 0x337   : > { %4281 = vmatmul.msk.f32.gmra.mxu0 %vm471_vm0, %v1243_v24  ;;  %9007 = vst [vmem:[#allocation46_spill] sm:$0xff] %v6942_v50 }
 0x338   : > { %4345 = vmatmul.msk.f32.gmra.mxu2 %vm471_vm0, %v1629_v31 }
 0x339   : > { %4377 = vmatmul.msk.f32.gmra.mxu3 %vm471_vm0, %v1629_v31 }
 0x33a   : > { %4313 = vmatmul.msk.f32.gmra.mxu1 %vm471_vm0, %v1243_v24 }
 0x33b   : > { %v6933_v58 = vpop.f32.mrf.mxu1 }
 0x33c   : > { %v6931_v11 = vpop.f32.mrf.mxu0  ;;  %9005 = vst [vmem:[#allocation42_spill] sm:$0xff] %v6933_v58  ;;  %v6950_v19 = vpop.f32.mrf.mxu2 }
 0x33d   : > { %9004 = vst [vmem:[#allocation40_spill] sm:$0xff] %v6931_v11  ;;  %v6952_v57 = vpop.f32.mrf.mxu3 }
 0x33e   : > { %9010 = vst [vmem:[#allocation53_spill] sm:$0xff] %v6950_v19 }
 0x33f   : > { %3433 = vmatmul.f32.vlgmr.msra.gmra.mxu0 %v391_v1  ;;  %9011 = vst [vmem:[#allocation56_spill] sm:$0xff] %v6952_v57 }
 0x340   : > { %3479 = vmatmul.f32.vlgmr.msra.gmra.mxu2 %v391_v1  ;;  %v397_v1 = vld [vmem:[%s6936_s18 + $0x30] sm:$0xff] }
 0x341   : > { %3502 = vmatmul.f32.vlgmr.msra.gmra.mxu3 %v392_v2 }
 0x342   : > { %3456 = vmatmul.f32.vlgmr.msra.gmra.mxu1 %v392_v2  ;;  %v398_v2 = vld [vmem:[%s6936_s18 + $0x38] sm:$0xff] }
 0x343   : > { %v6946_v43 = vpop.f32.mrf.mxu1 }
 0x344   : > { %v6944_v56 = vpop.f32.mrf.mxu0  ;;  %9009 = vst [vmem:[#allocation50_spill] sm:$0xff] %v6946_v43  ;;  %v6960_v36 = vpop.f32.mrf.mxu2 }
 0x345   : > { %9008 = vst [vmem:[#allocation49_spill] sm:$0xff] %v6944_v56  ;;  %v6962_v8 = vpop.f32.mrf.mxu3 }
 0x346   : > { %9014 = vst [vmem:[#allocation59_spill] sm:$0xff] %v6960_v36 }
 0x347   : > { %3436 = vmatmul.f32.gmra.mxu0 %v393_v55  ;;  %9015 = vst [vmem:[#allocation60_spill] sm:$0xff] %v6962_v8 }
 0x348   : > { %3482 = vmatmul.f32.gmra.mxu2 %v393_v55 }
 0x349   : > { %3505 = vmatmul.f32.gmra.mxu3 %v394_v60 }
 0x34a   : > { %3459 = vmatmul.f32.gmra.mxu1 %v394_v60 }
 0x34b   : > { %v6956_v46 = vpop.f32.mrf.mxu1 }
 0x34c   : > { %v6954_v6 = vpop.f32.mrf.mxu0  ;;  %9013 = vst [vmem:[#allocation58_spill] sm:$0xff] %v6956_v46 }
 0x34d   : > { %9012 = vst [vmem:[#allocation57_spill] sm:$0xff] %v6954_v6 }
 0x34f   : > { %3525 = vmatmul.f32.vlgmr.msrb.gmra.mxu0 %v395_v42 }
 0x350   : > { %3571 = vmatmul.f32.vlgmr.msrb.gmra.mxu2 %v395_v42  ;;  %v6974_v42 = vpop.f32.mrf.mxu2 }
 0x351   : > { %3594 = vmatmul.f32.vlgmr.msrb.gmra.mxu3 %v396_v53  ;;  %9019 = vst [vmem:[#allocation61_spill] sm:$0xff] %v6974_v42 }
 0x352   : > { %3548 = vmatmul.f32.vlgmr.msrb.gmra.mxu1 %v396_v53  ;;  %v6976_v53 = vpop.f32.mrf.mxu3 }
 0x353   : > { %v6966_v24 = vpop.f32.mrf.mxu1  ;;  %9020 = vst [vmem:[#allocation66_spill] sm:$0xff] %v6976_v53  ;;  %v9030_v53 = vld [vmem:[#allocation54_spill] sm:$0xff] }
 0x354   : > { %v6964_v31 = vpop.f32.mrf.mxu0  ;;  %v2104_v34 = vmax.f32 %v9030_v53, %v6352_v10  ;;  %v9034_v53 = vld [vmem:[#allocation119_spill] sm:$0xff] }
 0x355   : > { %9016 = vst [vmem:[#allocation67_spill] sm:$0xff] %v6964_v31 }
 0x357   : > { %3528 = vmatmul.f32.gmra.mxu0 %v397_v1 }
 0x358   : > { %3574 = vmatmul.f32.gmra.mxu2 %v397_v1  ;;  %v6982_v57 = vpop.f32.mrf.mxu2 }
 0x359   : > { %3597 = vmatmul.f32.gmra.mxu3 %v398_v2  ;;  %9023 = vst [vmem:[#allocation79_spill] sm:$0xff] %v6982_v57  ;;  %v2141_v57 = vmax.f32 %v9031_v17, %v6354_v14  ;;  %v9035_v14 = vld [vmem:[#allocation120_spill] sm:$0xff] }
 0x35a   : > { %3551 = vmatmul.f32.gmra.mxu1 %v398_v2  ;;  %v6984_v19 = vpop.f32.mrf.mxu3  ;;  %v9036_v17 = vsub.f32 %v9034_v53, %v9035_v14 }
 0x35b   : > { %v6972_v60 = vpop.f32.mrf.mxu1  ;;  %9024 = vst [vmem:[#allocation82_spill] sm:$0xff] %v6984_v19  ;;  %v2105_v19 = vmax.f32 %v2104_v34, %v6417_v37 }
 0x35c   : > { %v6970_v55 = vpop.f32.mrf.mxu0  ;;  %9018 = vst [vmem:[#allocation68_spill] sm:$0xff] %v6972_v60  ;;  %v2281_v34 = vmul.f32 1.442695, %v9036_v17  ;;  %v9043_v17 = vld [vmem:[#allocation32_spill] sm:$0xff] }
 0x35d   : > { %9017 = vst [vmem:[#allocation63_spill] sm:$0xff] %v6970_v55 }
 0x35e   : > { %4719 = vpow2.f32 %v2281_v34 }
 0x360   : > { %v6990_v2 = vpop.f32.mrf.mxu2 }
 0x361   : > { %9027 = vst [vmem:[#allocation44_spill] sm:$0xff] %v6990_v2  ;;  %v2106_v2 = vmax.f32 %v2105_v19, %v6482_v33  ;;  %v9039_v19 = vld [vmem:[#allocation111_spill] sm:$0xff] }
 0x362   : > { %v6992_v63 = vpop.f32.mrf.mxu3 }
 0x363   : > { %9028 = vst [vmem:[#allocation33_spill] sm:$0xff] %v6992_v63  ;;  %v2142_v63 = vmax.f32 %v2141_v57, %v6419_v51  ;;  %v2107_v10 = vmax.f32 %v2106_v2, %v6563_v59 }
 0x364   : > { %v6978_v36 = vpop.f32.mrf.mxu0  ;;  %v6980_v8 = vpop.f32.mrf.mxu1 }
 0x365   : > { %9021 = vst [vmem:[#allocation62_spill] sm:$0xff] %v6978_v36  ;;  %v2143_v28 = vmax.f32 %v2142_v63, %v6484_v27 }
 0x366   : > { %9022 = vst [vmem:[#allocation76_spill] sm:$0xff] %v6980_v8 }
 0x367   : > { %v2144_v37 = vmax.f32 %v2143_v28, %v6565_v5  ;;  %v9042_v28 = vld [vmem:[#allocation27_spill] sm:$0xff] }
 0x368   : > { %v7003_v9 = vpop.f32.mrf.mxu2 }
 0x369   : > { %9032 = vst [vmem:[#allocation86_spill] sm:$0xff] %v7003_v9  ;;  %v9037_v9 = vld [vmem:[#allocation89_spill] sm:$0xff] }
 0x36a   : > { %v7005_v21 = vpop.f32.mrf.mxu3  ;;  %v2145_v0 = vmax.f32 %v2144_v37, %v9037_v9 }
 0x36b   : > { %9033 = vst [vmem:[#allocation87_spill] sm:$0xff] %v7005_v21  ;;  %v2108_v21 = vmax.f32 %v2107_v10, %v6633_v49  ;;  %v9044_v10 = vsub.f32 %v9042_v28, %v9043_v17 }
 0x36c   : > { %v6986_v50 = vpop.f32.mrf.mxu0  ;;  %v6988_v1 = vpop.f32.mrf.mxu1  ;;  %v2146_v33 = vmax.f32 %v2145_v0, %v9039_v19  ;;  %v3077_v19 = vld [vmem:[#allocation3] sm:$0x3] }
 0x36d   : > { %9025 = vst [vmem:[#allocation83_spill] sm:$0xff] %v6986_v50  ;;  %v2109_v57 = vmax.f32 %v2108_v21, %v9038_v18  ;;  %v2283_v53 = vmul.f32 1.442695, %v9044_v10 }
 0x36e   : > { %9026 = vst [vmem:[#allocation47_spill] sm:$0xff] %v6988_v1  ;;  %v2147_v37 = vmax.f32 %v2146_v33, %v6739_v25 }
 0x36f   : > { %v2110_v63 = vmax.f32 %v2109_v57, %v6737_v15  ;;  %v7039_v57 = vpop.eup %4719  ;;  %4721 = vpow2.f32 %v2283_v53 }
 0x370   : > { %v7026_v27 = vpop.f32.mrf.mxu2  ;;  %v2148_v18 = vmax.f32 %v2147_v37, %v6793_v62 }
 0x371   : > { %9040 = vst [vmem:[#allocation90_spill] sm:$0xff] %v7026_v27  ;;  %v2111_v21 = vmax.f32 %v2110_v63, %v6791_v45  ;;  %v3081_v63 = vmul.f32 %v7039_v57, %v3077_v19 }
 0x372   : > { %v7028_v2 = vpop.f32.mrf.mxu3  ;;  %v2149_v34 = vmax.f32 %v2148_v18, %v6827_v40 }
 0x373   : > { %9041 = vst [vmem:[#allocation91_spill] sm:$0xff] %v7028_v2  ;;  %v2112_v0 = vmax.f32 %v2111_v21, %v6825_v7 }
 0x374   : > { %v6994_v61 = vpop.f32.mrf.mxu0  ;;  %v6996_v42 = vpop.f32.mrf.mxu1  ;;  %v2150_v28 = vmax.f32 %v2149_v34, %v6843_v23 }
 0x375   : > { %9029 = vst [vmem:[#allocation36_spill] sm:$0xff] %v6994_v61  ;;  %v2113_v15 = vmax.f32 %v2112_v0, %v6841_v44  ;;  %v9049_v0 = vld [vmem:[#allocation88_spill] sm:$0xff]  ;;  %v7057_v44 = vpop.eup %4721 }
 0x376   : > { %v2151_v10 = vmax.f32 %v2150_v28, %v6867_v38  ;;  %v3401_v53 = vadd.f32 %v9049_v0, %v3081_v63 }
 0x377   : > { %v2114_v33 = vmax.f32 %v2113_v15, %v6865_v32  ;;  %v3078_v32 = vld [vmem:[#allocation3 + $0x2] sm:$0x3] }
 0x378   : > { %v7052_v21 = vpop.f32.mrf.mxu2  ;;  %v2152_v34 = vmax.f32 %v2151_v10, %v6886_v16  ;;  %3409 = vst.msk [vmem:[#allocation3] sm:$0x3] %vm5787_vm1, %v3401_v53 }
 0x379   : > { %v2115_v37 = vmax.f32 %v2114_v33, %v6884_v39  ;;  %9047 = vst [vmem:[#allocation100_spill] sm:$0xff] %v7052_v21  ;;  %v3082_v39 = vmul.f32 %v7057_v44, %v3078_v32 }
 0x37a   : > { %v7054_v18 = vpop.f32.mrf.mxu3  ;;  %v2153_v19 = vmax.f32 %v2152_v34, %v6898_v20 }
 0x37b   : > { %9048 = vst [vmem:[#allocation105_spill] sm:$0xff] %v7054_v18  ;;  %v2116_v15 = vmax.f32 %v2115_v37, %v6896_v3  ;;  %v3402_v10 = vadd.f32 %v6901_v26, %v3082_v39 }
 0x37c   : > { %v7007_v29 = vpop.f32.mrf.mxu0  ;;  %v2154_v63 = vmax.f32 %v2153_v19, %v6913_v41 }
 0x37d   : > { %v2117_v28 = vmax.f32 %v2116_v15, %v6911_v22  ;;  %3410 = vst.msk [vmem:[#allocation3 + $0x2] sm:$0x3] %vm5787_vm1, %v3402_v10 }
 0x37e   : > { %v2155_v37 = vmax.f32 %v2154_v63, %v6921_v12 }
 0x37f   : > { %v7011_v4 = vpop.f32.mrf.mxu1  ;;  %v2118_v0 = vmax.f32 %v2117_v28, %v6919_v30 }
 0x380   : > { %v2156_v34 = vmax.f32 %v2155_v37, %v6933_v58  ;;  %v7079_v32 = vpop.f32.mrf.mxu2  ;;  %v9056_v58 = vld [vmem:[#allocation45_spill] sm:$0xff] }
 0x381   : > { %v2119_v53 = vmax.f32 %v2118_v0, %v6931_v11  ;;  %9052 = vst [vmem:[#allocation23_spill] sm:$0xff] %v7079_v32 }
 0x382   : > { %v7081_v19 = vpop.f32.mrf.mxu3  ;;  %v2157_v28 = vmax.f32 %v2156_v34, %v6946_v43  ;;  %v9057_v34 = vld [vmem:[#allocation51_spill] sm:$0xff] }
 0x383   : > { %v2120_v15 = vmax.f32 %v2119_v53, %v6944_v56  ;;  %9053 = vst [vmem:[#allocation24_spill] sm:$0xff] %v7081_v19  ;;  %v2178_v43 = vmax.f32 %v9057_v34, %v9056_v58  ;;  %v9064_v58 = vld [vmem:[#allocation74_spill] sm:$0xff] }
 0x384   : > { %v7022_v51 = vpop.f32.mrf.mxu0  ;;  %v2158_v26 = vmax.f32 %v2157_v28, %v6956_v46 }
 0x385   : > { %v2121_v30 = vmax.f32 %v2120_v15, %v6954_v6  ;;  %v9058_v15 = vld [vmem:[#allocation64_spill] sm:$0xff]  ;;  %v2179_v34 = vmax.f32 %v2178_v43, %v9064_v58  ;;  %v9075_v58 = vld [vmem:[#allocation113_spill] sm:$0xff] }
 0x386   : > { %v2159_v10 = vmax.f32 %v2158_v26, %v6966_v24  ;;  %v9059_v6 = vld [vmem:[#allocation52_spill] sm:$0xff] }
 0x387   : > { %v7030_v14 = vpop.f32.mrf.mxu1  ;;  %v2122_v63 = vmax.f32 %v2121_v30, %v6964_v31  ;;  %v2215_v11 = vmax.f32 %v9059_v6, %v9058_v15 }
 0x388   : > { %v2160_v53 = vmax.f32 %v2159_v10, %v6972_v60  ;;  %v7101_v31 = vpop.f32.mrf.mxu2 }
 0x389   : > { %v2123_v37 = vmax.f32 %v2122_v63, %v6970_v55  ;;  %9060 = vst [vmem:[#allocation69_spill] sm:$0xff] %v7101_v31  ;;  %v9067_v55 = vld [vmem:[#allocation81_spill] sm:$0xff] }
 0x38a   : > { %v2161_v28 = vmax.f32 %v2160_v53, %v6980_v8  ;;  %v7103_v46 = vpop.f32.mrf.mxu3  ;;  %v9066_v8 = vld [vmem:[#allocation80_spill] sm:$0xff] }
 0x38b   : > { %v2124_v56 = vmax.f32 %v2123_v37, %v6978_v36  ;;  %9061 = vst [vmem:[#allocation70_spill] sm:$0xff] %v7103_v46  ;;  %v9065_v36 = vld [vmem:[#allocation75_spill] sm:$0xff]  ;;  %v2180_v60 = vmax.f32 %v2179_v34, %v9066_v8  ;;  %v9073_v8 = vld [vmem:[#allocation85_spill] sm:$0xff] }
 0x38c   : > { %v7043_v9 = vpop.f32.mrf.mxu0  ;;  %v2162_v63 = vmax.f32 %v2161_v28, %v6988_v1  ;;  %v2216_v15 = vmax.f32 %v2215_v11, %v9065_v36 }
 0x38d   : > { %9045 = vst [vmem:[#allocation94_spill] sm:$0xff] %v7043_v9  ;;  %v2125_v30 = vmax.f32 %v2124_v56, %v6986_v50 }
 0x38e   : > { %v2163_v53 = vmax.f32 %v2162_v63, %v6996_v42  ;;  %v2217_v28 = vmax.f32 %v2216_v15, %v9067_v55  ;;  %v9074_v55 = vld [vmem:[#allocation92_spill] sm:$0xff] }
 0x38f   : > { %v7047_v17 = vpop.f32.mrf.mxu1  ;;  %v2126_v10 = vmax.f32 %v2125_v30, %v6994_v61 }
 0x390   : > { %9046 = vst [vmem:[#allocation97_spill] sm:$0xff] %v7047_v17  ;;  %v2164_v6 = vmax.f32 %v2163_v53, %v7011_v4  ;;  %v7123_v43 = vpop.f32.mrf.mxu2  ;;  %v2218_v15 = vmax.f32 %v2217_v28, %v9073_v8 }
 0x391   : > { %v2127_v56 = vmax.f32 %v2126_v10, %v7007_v29  ;;  %9069 = vst [vmem:[#allocation118_spill] sm:$0xff] %v7123_v43 }
 0x392   : > { %v2165_v30 = vmax.f32 %v2164_v6, %v7030_v14  ;;  %v7127_v10 = vpop.f32.mrf.mxu3 }
 0x393   : > { %v2128_v50 = vmax.f32 %v2127_v56, %v7022_v51  ;;  %9070 = vst [vmem:[#allocation115_spill] sm:$0xff] %v7127_v10  ;;  %v9072_v56 = vld [vmem:[#allocation84_spill] sm:$0xff] }
 0x394   : > { %v7065_v33 = vpop.f32.mrf.mxu0  ;;  %v2166_v11 = vmax.f32 %v2165_v30, %v7047_v17  ;;  %v2181_v34 = vmax.f32 %v2180_v60, %v9072_v56 }
 0x395   : > { %9051 = vst [vmem:[#allocation109_spill] sm:$0xff] %v7065_v33  ;;  %v2129_v61 = vmax.f32 %v2128_v50, %v7043_v9  ;;  %v2219_v9 = vmax.f32 %v2218_v15, %v9075_v58 }
 0x396   : > { %v2182_v36 = vmax.f32 %v2181_v34, %v9074_v55  ;;  %v9083_v55 = vld [vmem:[#allocation28_spill] sm:$0xff] }
 0x397   : > { %v7070_v38 = vpop.f32.mrf.mxu1  ;;  %v2130_v63 = vmax.f32 %v2129_v61, %v7065_v33  ;;  %v2220_v17 = vmax.f32 %v2219_v9, %v6723_v35 }
 0x398   : > { %v2167_v6 = vmax.f32 %v2166_v11, %v7070_v38  ;;  %v2183_v33 = vmax.f32 %v2182_v36, %v6721_v13 }
 0x39a   : > { %v2184_v11 = vmax.f32 %v2183_v33, %v6778_v52  ;;  %v7156_v35 = vpop.f32.mrf.mxu3  ;;  %v9080_v33 = vld [vmem:[#allocation96_spill] sm:$0xff] }
 0x39b   : > { %9079 = vst [vmem:[#allocation119_spill] sm:$0xff] %v7156_v35 }
 0x39c   : > { %v7085_v39 = vpop.f32.mrf.mxu0  ;;  %v2185_v36 = vmax.f32 %v2184_v11, %v6819_v47 }
 0x39d   : > { %9054 = vst [vmem:[#allocation72_spill] sm:$0xff] %v7085_v39  ;;  %v2131_v50 = vmax.f32 %v2130_v63, %v7085_v39  ;;  %v2221_v63 = vmax.f32 %v2220_v17, %v6780_v48  ;;  %v9081_v17 = vld [vmem:[#allocation21_spill] sm:$0xff] }
 0x39e   : > { %v2186_v52 = vmax.f32 %v2185_v36, %v9080_v33 }
 0x39f   : > { %v7089_v0 = vpop.f32.mrf.mxu1  ;;  %v2222_v9 = vmax.f32 %v2221_v63, %v6821_v54  ;;  %v9084_v63 = vld [vmem:[#allocation30_spill] sm:$0xff] }
 0x3a0   : > { %9055 = vst [vmem:[#allocation73_spill] sm:$0xff] %v7089_v0  ;;  %v2168_v30 = vmax.f32 %v2167_v6, %v7089_v0  ;;  %v9098_v0 = vld [vmem:[#allocation61_spill] sm:$0xff] }
 0x3a1   : > { %v2223_v48 = vmax.f32 %v2222_v9, %v9081_v17  ;;  %v9088_v9 = vld [vmem:[#allocation38_spill] sm:$0xff] }
 0x3a3   : > { %v2224_v56 = vmax.f32 %v2223_v48, %v9083_v55 }
 0x3a4   : > { %v7105_v26 = vpop.f32.mrf.mxu0 }
 0x3a5   : > { %9062 = vst [vmem:[#allocation121_spill] sm:$0xff] %v7105_v26  ;;  %v2132_v61 = vmax.f32 %v2131_v50, %v7105_v26  ;;  %v9087_v26 = vld [vmem:[#allocation35_spill] sm:$0xff] }
 0x3a7   : > { %v7109_v37 = vpop.f32.mrf.mxu1 }
 0x3a8   : > { %9063 = vst [vmem:[#allocation122_spill] sm:$0xff] %v7109_v37  ;;  %v2169_v60 = vmax.f32 %v2168_v30, %v7109_v37 }
 0x3ac   : > { %v7121_v1 = vpop.f32.mrf.mxu0 }
 0x3ad   : > { %9068 = vst [vmem:[#allocation117_spill] sm:$0xff] %v7121_v1  ;;  %v2133_v28 = vmax.f32 %v2132_v61, %v7121_v1  ;;  %v7154_v61 = vpop.f32.mrf.mxu2  ;;  %v9086_v1 = vld [vmem:[#allocation34_spill] sm:$0xff] }
 0x3ae   : > { %9078 = vst [vmem:[#allocation106_spill] sm:$0xff] %v7154_v61 }
 0x3af   : > { %v7129_v53 = vpop.f32.mrf.mxu1 }
 0x3b0   : > { %9071 = vst [vmem:[#allocation116_spill] sm:$0xff] %v7129_v53  ;;  %v2170_v34 = vmax.f32 %v2169_v60, %v7129_v53 }
 0x3b4   : > { %v7143_v8 = vpop.f32.mrf.mxu0 }
 0x3b5   : > { %9076 = vst [vmem:[#allocation101_spill] sm:$0xff] %v7143_v8  ;;  %v2134_v15 = vmax.f32 %v2133_v28, %v7143_v8  ;;  %v9082_v28 = vld [vmem:[#allocation26_spill] sm:$0xff]  ;;  %v9085_v8 = vld [vmem:[#allocation31_spill] sm:$0xff]  ;;  %v7168_v48 = vpop.f32.mrf.mxu2 }
 0x3b6   : > { %v2187_v58 = vmax.f32 %v2186_v52, %v9082_v28  ;;  %9090 = vst [vmem:[#allocation120_spill] sm:$0xff] %v7168_v48 }
 0x3b7   : > { %v7149_v6 = vpop.f32.mrf.mxu1  ;;  %v2135_v50 = vrot.slane %v2134_v15, 4 }
 0x3b8   : > { %9077 = vst [vmem:[#allocation110_spill] sm:$0xff] %v7149_v6  ;;  %v2171_v30 = vmax.f32 %v2170_v34, %v7149_v6  ;;  %v2188_v54 = vmax.f32 %v2187_v58, %v9084_v63  ;;  %v2225_v34 = vmax.f32 %v2224_v56, %v9085_v8  ;;  %v9092_v58 = vld [vmem:[#allocation43_spill] sm:$0xff]  ;;  %v9093_v56 = vld [vmem:[#allocation46_spill] sm:$0xff]  ;;  %v9094_v8 = vld [vmem:[#allocation53_spill] sm:$0xff] }
 0x3b9   : > { %v2136_v60 = vmax.f32 %v2134_v15, %v2135_v50  ;;  %v9089_v50 = vld [vmem:[#allocation39_spill] sm:$0xff] }
 0x3ba   : > { %v2172_v13 = vrot.slane %v2171_v30, 4  ;;  %v2189_v37 = vmax.f32 %v2188_v54, %v9086_v1  ;;  %v2226_v36 = vmax.f32 %v2225_v34, %v9087_v26  ;;  %v9095_v1 = vld [vmem:[#allocation56_spill] sm:$0xff] }
 0x3bb   : > { %v2137_v11 = vrot.slane %v2136_v60, 2 }
 0x3bc   : > { %v2173_v47 = vmax.f32 %v2171_v30, %v2172_v13  ;;  %v2190_v15 = vmax.f32 %v2189_v37, %v9088_v9  ;;  %v2227_v17 = vmax.f32 %v2226_v36, %v9089_v50  ;;  %v7170_v13 = vpop.f32.mrf.mxu3  ;;  %v9096_v9 = vld [vmem:[#allocation59_spill] sm:$0xff]  ;;  %v9097_v50 = vld [vmem:[#allocation60_spill] sm:$0xff] }
 0x3bd   : > { %v2138_v6 = vmax.f32 %v2136_v60, %v2137_v11  ;;  %9091 = vst [vmem:[#allocation27_spill] sm:$0xff] %v7170_v13 }
 0x3be   : > { %v2174_v53 = vrot.slane %v2173_v47, 2  ;;  %v2191_v30 = vmax.f32 %v2190_v15, %v9092_v58  ;;  %v2228_v60 = vmax.f32 %v2227_v17, %v9093_v56  ;;  %v9099_v15 = vld [vmem:[#allocation66_spill] sm:$0xff] }
 0x3bf   : > { %v2139_v52 = vrot.slane %v2138_v6, 1 }
 0x3c0   : > { %v2175_v33 = vmax.f32 %v2173_v47, %v2174_v53  ;;  %v2192_v54 = vmax.f32 %v2191_v30, %v9094_v8  ;;  %v2229_v34 = vmax.f32 %v2228_v60, %v9095_v1  ;;  %v1954_v53 = vld [vmem:[#allocation2 + $0x4] sm:$0x3]  ;;  %v7185_v30 = vpop.f32.mrf.mxu2  ;;  %v7367_v1 = vld [vmem:[#allocation2 + $0x6] sm:$0x3] }
 0x3c1   : > { %v2140_v47 = vmax.f32 %v2138_v6, %v2139_v52  ;;  %v9101_v6 = vld [vmem:[#allocation82_spill] sm:$0xff]  ;;  %9102 = vst [vmem:[#allocation32_spill] sm:$0xff] %v7185_v30 }
 0x3c2   : > { %v2176_v28 = vrot.slane %v2175_v33, 1  ;;  %v2193_v36 = vmax.f32 %v2192_v54, %v9096_v9  ;;  %v2230_v26 = vmax.f32 %v2229_v34, %v9097_v50  ;;  %v9105_v34 = vld [vmem:[#allocation33_spill] sm:$0xff] }
 0x3c4   : > { %v2177_v11 = vmax.f32 %v2175_v33, %v2176_v28  ;;  %v2194_v39 = vmax.f32 %v2193_v36, %v9098_v0  ;;  %v2231_v58 = vmax.f32 %v2230_v26, %v9099_v15  ;;  %v9100_v33 = vld [vmem:[#allocation79_spill] sm:$0xff]  ;;  %v7187_v60 = vpop.f32.mrf.mxu3  ;;  %v3872_v0 = vld [vmem:[#allocation3] sm:$0x3] }
 0x3c5   : > { %9103 = vst [vmem:[#allocation88_spill] sm:$0xff] %v7187_v60  ;;  %v9107_v36 = vld [vmem:[#allocation87_spill] sm:$0xff]  ;;  %4723 = vrcp.f32 %v3872_v0  ;;  %v3808_v0 = vperm.slane %v7057_v44, 1 }
 0x3c6   : > { %v2262_v37 = vrot.slane %v2177_v11, 7  ;;  %v2195_v28 = vmax.f32 %v2194_v39, %v9100_v33  ;;  %v2232_v52 = vmax.f32 %v2231_v58, %v9101_v6  ;;  %v9104_v11 = vld [vmem:[#allocation44_spill] sm:$0xff] }
 0x3c8   : > { %v2267_v63 = vsel %vm2264_vm2, %v2140_v47, %v2262_v37  ;;  %v2196_v54 = vmax.f32 %v2195_v28, %v9104_v11  ;;  %v9106_v47 = vld [vmem:[#allocation86_spill] sm:$0xff]  ;;  %v7199_v28 = vpop.f32.mrf.mxu2  ;;  %v9159_v11 = vld [vmem:[#allocation76_spill] sm:$0xff] }
 0x3c9   : > { %v2275_v55 = vmax.f32 %v1954_v53, %v2267_v63  ;;  %v2233_v63 = vmax.f32 %v2232_v52, %v9105_v34  ;;  %9108 = vst [vmem:[#allocation123_spill] sm:$0xff] %v7199_v28  ;;  %v9155_v34 = vld [vmem:[#allocation63_spill] sm:$0xff] }
 0x3ca   : > { %v2197_v37 = vmax.f32 %v2196_v54, %v9106_v47  ;;  %v3873_v54 = vld [vmem:[#allocation3 + $0x2] sm:$0x3] }
 0x3cb   : > { %v2279_v17 = vsub.f32 %v1954_v53, %v2275_v55  ;;  %3415 = vst.msk [vmem:[#allocation2 + $0x4] sm:$0x3] %vm5787_vm1, %v2275_v55  ;;  %v2234_v26 = vmax.f32 %v2233_v63, %v9107_v36  ;;  %4725 = vrcp.f32 %v3873_v54  ;;  %v9149_v36 = vld [vmem:[#allocation57_spill] sm:$0xff] }
 0x3cc   : > { %v2198_v53 = vmax.f32 %v2197_v37, %v7026_v27  ;;  %v7201_v52 = vpop.f32.mrf.mxu3  ;;  %v9132_v27 = vld [vmem:[#allocation22_spill] sm:$0xff] }
 0x3cd   : > { %v2235_v15 = vmax.f32 %v2234_v26, %v7028_v2  ;;  %9109 = vst [vmem:[#allocation124_spill] sm:$0xff] %v7201_v52  ;;  %v9131_v2 = vld [vmem:[#allocation99_spill] sm:$0xff] }
 0x3ce   : > { %v2199_v39 = vmax.f32 %v2198_v53, %v7052_v21  ;;  %v9130_v21 = vld [vmem:[#allocation93_spill] sm:$0xff] }
 0x3cf   : > { %v2236_v58 = vmax.f32 %v2235_v15, %v7054_v18 }
 0x3d0   : > { %v2200_v6 = vmax.f32 %v2199_v39, %v7079_v32  ;;  %v3807_v32 = vperm.slane %v7057_v44, 0 }
 0x3d1   : > { %v2237_v33 = vmax.f32 %v2236_v58, %v7081_v19  ;;  %v3805_v58 = vperm.slane %v7039_v57, 0  ;;  %v3806_v19 = vperm.slane %v7039_v57, 1  ;;  %v7225_v57 = vpop.f32.mrf.mxu2 }
 0x3d2   : > { %v2201_v63 = vmax.f32 %v2200_v6, %v7101_v31  ;;  %9112 = vst [vmem:[#allocation127_spill] sm:$0xff] %v7225_v57  ;;  %v7233_v44 = vmul.f32 0.0, %v3807_v32 }
 0x3d3   : > { %v2238_v37 = vmax.f32 %v2237_v33, %v7103_v46  ;;  %v7223_v46 = vperm.slane %v2275_v55, 1 }
 0x3d4   : > { %v2202_v26 = vmax.f32 %v2201_v63, %v7123_v43  ;;  %v7215_v63 = vpop.eup %4723  ;;  %9116 = vst [vmem:[#allocation131_spill] sm:$0xff] %v7233_v44 }
 0x3d5   : > { %v2239_v53 = vmax.f32 %v2238_v37, %v7127_v10  ;;  %9110 = vst [vmem:[#allocation125_spill] sm:$0xff] %v7215_v63  ;;  %v7217_v37 = vperm.slane %v2275_v55, 0  ;;  %v7219_v54 = vpop.eup %4725  ;;  %v7227_v10 = vpop.f32.mrf.mxu3  ;;  %v9118_v55 = vld [vmem:[#allocation54_spill] sm:$0xff] }
 0x3d6   : > { %v2203_v15 = vmax.f32 %v2202_v26, %v7154_v61  ;;  %9111 = vst [vmem:[#allocation126_spill] sm:$0xff] %v7219_v54 }
 0x3d7   : > { %v2240_v39 = vmax.f32 %v2239_v53, %v7156_v35  ;;  %9113 = vst [vmem:[#allocation128_spill] sm:$0xff] %v7227_v10 }
 0x3d8   : > { %v2204_v6 = vmax.f32 %v2203_v15, %v7168_v48  ;;  %v7229_v15 = vmul.f32 0.0, %v3805_v58  ;;  %v9122_v48 = vld [vmem:[#allocation65_spill] sm:$0xff]  ;;  %v9123_v58 = vld [vmem:[#allocation71_spill] sm:$0xff] }
 0x3d9   : > { %v2241_v33 = vmax.f32 %v2240_v39, %v7170_v13  ;;  %v7231_v39 = vmul.f32 0.0, %v3806_v19  ;;  %v2285_v13 = vmul.f32 1.442695, %v2279_v17  ;;  %v2445_v17 = vsub.f32 %v6563_v59, %v7217_v37 }
 0x3da   : > { %v2205_v26 = vmax.f32 %v2204_v6, %v7185_v30  ;;  %9114 = vst [vmem:[#allocation129_spill] sm:$0xff] %v7229_v15  ;;  %v7237_v6 = vmul.f32 0.0, %v3808_v0  ;;  %v9120_v0 = vld [vmem:[#allocation41_spill] sm:$0xff]  ;;  %v9156_v15 = vld [vmem:[#allocation68_spill] sm:$0xff] }
 0x3db   : > { %v2242_v53 = vmax.f32 %v2241_v33, %v7187_v60  ;;  %9115 = vst [vmem:[#allocation130_spill] sm:$0xff] %v7231_v39  ;;  %v2437_v33 = vsub.f32 %v9118_v55, %v7217_v37  ;;  %v9121_v55 = vld [vmem:[#allocation48_spill] sm:$0xff]  ;;  %v2441_v60 = vsub.f32 %v9122_v48, %v7217_v37  ;;  %4727 = vpow2.f32 %v2285_v13  ;;  %v9126_v48 = vld [vmem:[#allocation89_spill] sm:$0xff]  ;;  %v9127_v13 = vld [vmem:[#allocation114_spill] sm:$0xff] }
 0x3dc   : > { %v2206_v35 = vmax.f32 %v2205_v26, %v7199_v28  ;;  %9117 = vst [vmem:[#allocation132_spill] sm:$0xff] %v7237_v6  ;;  %v9119_v26 = vld [vmem:[#allocation55_spill] sm:$0xff]  ;;  %v2442_v28 = vsub.f32 %v9123_v58, %v7223_v46  ;;  %v2449_v43 = vsub.f32 %v9127_v13, %v7217_v37  ;;  %v9142_v6 = vld [vmem:[#allocation40_spill] sm:$0xff] }
 0x3dd   : > { %v2243_v61 = vmax.f32 %v2242_v53, %v7201_v52  ;;  %v2438_v30 = vsub.f32 %v9119_v26, %v7223_v46  ;;  %v2439_v53 = vsub.f32 %v9120_v0, %v7217_v37  ;;  %v2440_v52 = vsub.f32 %v9121_v55, %v7223_v46  ;;  %v9125_v26 = vld [vmem:[#allocation78_spill] sm:$0xff] }
 0x3de   : > { %v2207_v19 = vmax.f32 %v2206_v35, %v7225_v57  ;;  %v9124_v35 = vld [vmem:[#allocation77_spill] sm:$0xff]  ;;  %v2446_v0 = vsub.f32 %v6565_v5, %v7223_v46  ;;  %v2447_v55 = vsub.f32 %v6633_v49, %v7217_v37  ;;  %v2448_v57 = vsub.f32 %v9126_v48, %v7223_v46  ;;  %v7291_v48 = vpop.f32.mrf.mxu2 }
 0x3df   : > { %v2244_v32 = vmax.f32 %v2243_v61, %v7227_v10  ;;  %v2443_v61 = vsub.f32 %v9124_v35, %v7217_v37  ;;  %v2444_v10 = vsub.f32 %v9125_v26, %v7223_v46  ;;  %v2821_v58 = vmul.f32 1.442695, %v2437_v33  ;;  %v9128_v35 = vld [vmem:[#allocation111_spill] sm:$0xff]  ;;  %v9129_v26 = vld [vmem:[#allocation108_spill] sm:$0xff]  ;;  %9133 = vst [vmem:[#allocation54_spill] sm:$0xff] %v7291_v48 }
 0x3e0   : > { %v2450_v31 = vsub.f32 %v9128_v35, %v7223_v46  ;;  %v2451_v18 = vsub.f32 %v9129_v26, %v7217_v37  ;;  %v2823_v59 = vmul.f32 1.442695, %v2438_v30  ;;  %v2452_v5 = vsub.f32 %v6739_v25, %v7223_v46  ;;  %v9136_v35 = vld [vmem:[#allocation25_spill] sm:$0xff]  ;;  %9157 = vst [vmem:[#allocation111_spill] sm:$0xff] %v7367_v1 }
 0x3e1   : > { %v2825_v33 = vmul.f32 1.442695, %v2439_v53  ;;  %v2827_v30 = vmul.f32 1.442695, %v2440_v52  ;;  %4729 = vpow2.f32 %v2821_v58  ;;  %v2829_v54 = vmul.f32 1.442695, %v2441_v60  ;;  %v7293_v53 = vpop.f32.mrf.mxu3  ;;  %v7295_v13 = vpop.eup %4727 }
 0x3e2   : > { %9134 = vst [vmem:[#allocation55_spill] sm:$0xff] %v7293_v53  ;;  %v9137_v26 = vld [vmem:[#allocation29_spill] sm:$0xff]  ;;  %4731 = vpow2.f32 %v2823_v59  ;;  %v2831_v44 = vmul.f32 1.442695, %v2442_v28  ;;  %v2833_v58 = vmul.f32 1.442695, %v2443_v61  ;;  %v2208_v63 = vmax.f32 %v2207_v19, %v7291_v48 }
 0x3e3   : > { %9135 = vst [vmem:[#allocation41_spill] sm:$0xff] %v7295_v13  ;;  %4733 = vpow2.f32 %v2825_v33  ;;  %v2835_v49 = vmul.f32 1.442695, %v2444_v10  ;;  %v2245_v39 = vmax.f32 %v2244_v32, %v7293_v53  ;;  %v2465_v28 = vsub.f32 %v6911_v22, %v7217_v37  ;;  %v9139_v19 = vld [vmem:[#allocation37_spill] sm:$0xff] }
 0x3e4   : > { %4735 = vpow2.f32 %v2827_v30  ;;  %v2837_v59 = vmul.f32 1.442695, %v2445_v17  ;;  %v2839_v25 = vmul.f32 1.442695, %v2446_v0  ;;  %v2209_v52 = vrot.slane %v2208_v63, 4 }
 0x3e5   : > { %4737 = vpow2.f32 %v2829_v54  ;;  %v2246_v60 = vrot.slane %v2245_v39, 4  ;;  %v2466_v10 = vsub.f32 %v6913_v41, %v7223_v46  ;;  %v2467_v32 = vsub.f32 %v9139_v19, %v7217_v37 }
 0x3e6   : > { %4739 = vpow2.f32 %v2831_v44  ;;  %v2841_v61 = vmul.f32 1.442695, %v2447_v55  ;;  %v2843_v22 = vmul.f32 1.442695, %v2448_v57  ;;  %v2210_v54 = vmax.f32 %v2208_v63, %v2209_v52  ;;  %v9145_v63 = vld [vmem:[#allocation42_spill] sm:$0xff] }
 0x3e7   : > { %v7311_v33 = vpop.eup %4729  ;;  %4741 = vpow2.f32 %v2833_v58  ;;  %v2247_v17 = vmax.f32 %v2245_v39, %v2246_v60  ;;  %v2468_v0 = vsub.f32 %v6921_v12, %v7223_v46  ;;  %v2845_v41 = vmul.f32 1.442695, %v2449_v43  ;;  %v9146_v39 = vld [vmem:[#allocation49_spill] sm:$0xff] }
 0x3e8   : > { %9138 = vst [vmem:[#allocation48_spill] sm:$0xff] %v7311_v33  ;;  %v7317_v30 = vpop.eup %4731  ;;  %4743 = vpow2.f32 %v2835_v49  ;;  %v2847_v55 = vmul.f32 1.442695, %v2450_v31  ;;  %v2211_v58 = vrot.slane %v2210_v54, 2  ;;  %v2849_v12 = vmul.f32 1.442695, %v2451_v18 }
 0x3e9   : > { %9140 = vst [vmem:[#allocation65_spill] sm:$0xff] %v7317_v30  ;;  %v7319_v44 = vpop.eup %4733  ;;  %4745 = vpow2.f32 %v2837_v59  ;;  %v2248_v19 = vrot.slane %v2247_v17, 2  ;;  %v2851_v43 = vmul.f32 1.442695, %v2452_v5  ;;  %v9148_v31 = vld [vmem:[#allocation50_spill] sm:$0xff]  ;;  %v9150_v52 = vsub.f32 %v6791_v45, %v7217_v37 }
 0x3ea   : > { %9141 = vst [vmem:[#allocation71_spill] sm:$0xff] %v7319_v44  ;;  %v7325_v48 = vpop.eup %4735  ;;  %4747 = vpow2.f32 %v2839_v25  ;;  %v2212_v59 = vmax.f32 %v2210_v54, %v2211_v58  ;;  %v9152_v5 = vsub.f32 %v6825_v7, %v7217_v37  ;;  %v2881_v45 = vmul.f32 1.442695, %v2467_v32 }
 0x3eb   : > { %9143 = vst [vmem:[#allocation77_spill] sm:$0xff] %v7325_v48  ;;  %v7327_v49 = vpop.eup %4737  ;;  %4749 = vpow2.f32 %v2841_v61  ;;  %v2249_v53 = vmax.f32 %v2247_v17, %v2248_v19  ;;  %v2853_v61 = vmul.f32 1.442695, %v9150_v52  ;;  %v9153_v19 = vld [vmem:[#allocation58_spill] sm:$0xff]  ;;  %v2883_v7 = vmul.f32 1.442695, %v2468_v0 }
 0x3ec   : > { %9144 = vst [vmem:[#allocation78_spill] sm:$0xff] %v7327_v49  ;;  %v7333_v60 = vpop.eup %4739  ;;  %4751 = vpow2.f32 %v2843_v22  ;;  %v2857_v22 = vmul.f32 1.442695, %v9152_v5  ;;  %v2213_v54 = vrot.slane %v2212_v59, 1  ;;  %v2877_v47 = vmul.f32 1.442695, %v2465_v28 }
 0x3ed   : > { %9147 = vst [vmem:[#allocation89_spill] sm:$0xff] %v7333_v60  ;;  %v7335_v25 = vpop.eup %4741  ;;  %4753 = vpow2.f32 %v2845_v41  ;;  %v2250_v17 = vrot.slane %v2249_v53, 1  ;;  %v9154_v41 = vld [vmem:[#allocation67_spill] sm:$0xff]  ;;  %v2879_v32 = vmul.f32 1.442695, %v2466_v10  ;;  %v9161_v10 = vsub.f32 %v6898_v20, %v7223_v46 }
 0x3ee   : > { %v7344_v18 = vpop.eup %4743  ;;  %4755 = vpow2.f32 %v2847_v55  ;;  %v2214_v9 = vmax.f32 %v2212_v59, %v2213_v54  ;;  %v9162_v55 = vld [vmem:[#allocation83_spill] sm:$0xff]  ;;  %v9178_v23 = vsub.f32 %v9142_v6, %v7217_v37 }
 0x3ef   : > { %9151 = vst [vmem:[#allocation114_spill] sm:$0xff] %v7344_v18  ;;  %v7349_v58 = vpop.eup %4745  ;;  %4757 = vpow2.f32 %v2849_v12  ;;  %v2251_v5 = vmax.f32 %v2249_v53, %v2250_v17  ;;  %v9158_v53 = vld [vmem:[#allocation62_spill] sm:$0xff]  ;;  %v2875_v59 = vmul.f32 1.442695, %v9161_v10 }
 0x3f0   : > { %v7355_v52 = vpop.eup %4747  ;;  %4759 = vpow2.f32 %v2851_v43  ;;  %v2885_v56 = vmul.f32 1.442695, %v9178_v23  ;;  %v9185_v23 = vsub.f32 %v9149_v36, %v7217_v37  ;;  %v9188_v36 = vld [vmem:[#allocation122_spill] sm:$0xff] }
 0x3f1   : > { %v7359_v57 = vpop.eup %4749  ;;  %4761 = vpow2.f32 %v2853_v61  ;;  %v2263_v43 = vrot.slane %v2251_v5, 7  ;;  %v9160_v61 = vsub.f32 %v6896_v3, %v7217_v37  ;;  %v9163_v3 = vsub.f32 %v9137_v26, %v7217_v37  ;;  %v9167_v26 = vld [vmem:[#allocation36_spill] sm:$0xff] }
 0x3f2   : > { %v7365_v12 = vpop.eup %4751  ;;  %4763 = vpow2.f32 %v2857_v22  ;;  %v3233_v22 = vadd.f32 %v7319_v44, %v7311_v33 }
 0x3f3   : > { %v7369_v0 = vpop.eup %4753  ;;  %v2873_v28 = vmul.f32 1.442695, %v9160_v61  ;;  %4765 = vpow2.f32 %v2881_v45  ;;  %v2268_v54 = vsel %vm2264_vm2, %v2214_v9, %v2263_v43  ;;  %v2869_v45 = vmul.f32 1.442695, %v9163_v3 }
 0x3f4   : > { %v7378_v50 = vpop.eup %4755  ;;  %4767 = vpow2.f32 %v2883_v7  ;;  %v7394_v61 = vmax.f32 %v7367_v1, %v2268_v54  ;;  %v9165_v7 = vld [vmem:[#allocation47_spill] sm:$0xff]  ;;  %v9166_v9 = vsub.f32 %v6886_v16, %v7223_v46  ;;  %v3234_v17 = vadd.f32 %v7327_v49, %v3233_v22 }
 0x3f5   : > { %v7386_v5 = vpop.eup %4757  ;;  %4769 = vpow2.f32 %v2877_v47  ;;  %v9168_v54 = vsub.f32 %v9132_v27, %v7217_v37  ;;  %v9169_v22 = vsub.f32 %v9136_v35, %v7223_v46  ;;  %v9170_v47 = vsub.f32 %v9130_v21, %v7217_v37 }
 0x3f6   : > { %9164 = vst [vmem:[#allocation108_spill] sm:$0xff] %v7394_v61  ;;  %v7396_v20 = vpop.eup %4759  ;;  %v2871_v43 = vmul.f32 1.442695, %v9166_v9  ;;  %4771 = vpow2.f32 %v2879_v32  ;;  %v3235_v27 = vadd.f32 %v7335_v25, %v3234_v17  ;;  %v9172_v17 = vsub.f32 %v9131_v2, %v7223_v46 }
 0x3f7   : > { %v7404_v8 = vpop.eup %4761  ;;  %v2865_v3 = vmul.f32 1.442695, %v9168_v54  ;;  %4773 = vpow2.f32 %v2873_v28  ;;  %3416 = vst.msk [vmem:[#allocation2 + $0x6] sm:$0x3] %vm5787_vm1, %v7394_v61  ;;  %v2867_v9 = vmul.f32 1.442695, %v9169_v22  ;;  %v3270_v35 = vadd.f32 %v7325_v48, %v7317_v30 }
 0x3f8   : > { %v7416_v16 = vpop.eup %4763  ;;  %4775 = vpow2.f32 %v2875_v59  ;;  %v2861_v1 = vmul.f32 1.442695, %v9170_v47  ;;  %v2863_v59 = vmul.f32 1.442695, %v9172_v17  ;;  %v3236_v22 = vadd.f32 %v7349_v58, %v3235_v27 }
 0x3f9   : > { %v7424_v28 = vpop.eup %4765  ;;  %4777 = vpow2.f32 %v2869_v45  ;;  %v9173_v45 = vsub.f32 %v6793_v62, %v7223_v46  ;;  %v9176_v17 = vsub.f32 %v6827_v40, %v7223_v46  ;;  %v3271_v27 = vadd.f32 %v7333_v60, %v3270_v35 }
 0x3fa   : > { %v7433_v32 = vpop.eup %4767  ;;  %4779 = vpow2.f32 %v2871_v43  ;;  %3601 = vmatpush.msra.mxu0 %v7424_v28  ;;  %v9175_v43 = vld [vmem:[#allocation94_spill] sm:$0xff]  ;;  %v3237_v21 = vadd.f32 %v7359_v57, %v3236_v22  ;;  %v9181_v35 = vsub.f32 %v9146_v39, %v7217_v37  ;;  %v9183_v22 = vsub.f32 %v9148_v31, %v7223_v46  ;;  %v9186_v31 = vld [vmem:[#allocation121_spill] sm:$0xff] }
 0x3fb   : > { %9171 = vst [vmem:[#allocation93_spill] sm:$0xff] %v7433_v32  ;;  %v7442_v10 = vpop.eup %4769  ;;  %v2855_v47 = vmul.f32 1.442695, %v9173_v45  ;;  %4781 = vpow2.f32 %v2865_v3  ;;  %3647 = vmatpush.msra.mxu2 %v7433_v32  ;;  %v2859_v54 = vmul.f32 1.442695, %v9176_v17  ;;  %v9177_v3 = vld [vmem:[#allocation97_spill] sm:$0xff]  ;;  %v9180_v17 = vsub.f32 %v9145_v63, %v7223_v46 }
 0x3fc   : > { %v7452_v2 = vpop.eup %4771  ;;  %4783 = vpow2.f32 %v2867_v9  ;;  %3602 = vmatpush.msra.mxu0 %v7442_v10  ;;  %v9179_v9 = vld [vmem:[#allocation109_spill] sm:$0xff]  ;;  %v2889_v45 = vmul.f32 1.442695, %v9181_v35  ;;  %v2891_v33 = vmul.f32 1.442695, %v9183_v22 }
 0x3fd   : > { %9174 = vst [vmem:[#allocation99_spill] sm:$0xff] %v7452_v2  ;;  %v7461_v62 = vpop.eup %4773  ;;  %4785 = vpow2.f32 %v2861_v1  ;;  %3648 = vmatpush.msra.mxu2 %v7452_v2  ;;  %v2887_v30 = vmul.f32 1.442695, %v9180_v17  ;;  %v3238_v1 = vadd.f32 %v7369_v0, %v3237_v21  ;;  %v9182_v21 = vld [vmem:[#allocation72_spill] sm:$0xff]  ;;  %v9184_v35 = vld [vmem:[#allocation73_spill] sm:$0xff] }
 0x3fe   : > { %v7470_v40 = vpop.eup %4775  ;;  %4787 = vpow2.f32 %v2863_v59  ;;  %3603 = vmatpush.msra.mxu0 %v7461_v62  ;;  %v3272_v59 = vadd.f32 %v7344_v18, %v3271_v27  ;;  %v2893_v48 = vmul.f32 1.442695, %v9185_v23 }
 0x3ff   : > { %v7479_v6 = vpop.eup %4777  ;;  %4789 = vpow2.f32 %v2855_v47  ;;  %3649 = vmatpush.msra.mxu2 %v7470_v40  ;;  %v3239_v47 = vadd.f32 %v7386_v5, %v3238_v1  ;;  %v9187_v1 = vsub.f32 %v9153_v19, %v7223_v46  ;;  %v9190_v19 = vld [vmem:[#allocation117_spill] sm:$0xff] }
 0x400   : > { %v7488_v63 = vpop.eup %4779  ;;  %4791 = vpow2.f32 %v2859_v54  ;;  %3604 = vmatpush.msra.mxu0 %v7479_v6  ;;  %v3273_v17 = vadd.f32 %v7355_v52, %v3272_v59  ;;  %v9189_v59 = vsub.f32 %v9154_v41, %v7217_v37  ;;  %v9192_v41 = vld [vmem:[#allocation116_spill] sm:$0xff] }
 0x401   : > { %v4782_v39 = vpop.eup %4781  ;;  %4793 = vpow2.f32 %v2885_v56  ;;  %3650 = vmatpush.msra.mxu2 %v7488_v63  ;;  %v2895_v32 = vmul.f32 1.442695, %v9187_v1  ;;  %v3240_v56 = vadd.f32 %v7404_v8, %v3239_v47  ;;  %v9191_v47 = vsub.f32 %v6966_v24, %v7223_v46  ;;  %v9194_v1 = vld [vmem:[#allocation101_spill] sm:$0xff] }
 0x402   : > { %v7504_v54 = vpop.eup %4783  ;;  %4795 = vpow2.f32 %v2887_v30  ;;  %3605 = vmatpush.msra.mxu0 %v4782_v39  ;;  %v2897_v44 = vmul.f32 1.442695, %v9189_v59  ;;  %v3274_v60 = vadd.f32 %v7365_v12, %v3273_v17  ;;  %v9193_v17 = vsub.f32 %v9155_v34, %v7217_v37  ;;  %v9197_v34 = vld [vmem:[#allocation110_spill] sm:$0xff] }
 0x403   : > { %v4786_v27 = vpop.eup %4785  ;;  %4797 = vpow2.f32 %v2889_v45  ;;  %3651 = vmatpush.msra.mxu2 %v7504_v54  ;;  %v2899_v22 = vmul.f32 1.442695, %v9191_v47  ;;  %v3241_v23 = vadd.f32 %v7416_v16, %v3240_v56  ;;  %v2499_v24 = vsub.f32 %v9194_v1, %v7217_v37 }
 0x404   : > { %v4788_v30 = vpop.eup %4787  ;;  %4799 = vpow2.f32 %v2891_v33  ;;  %3606 = vmatpush.msra.mxu0 %v4786_v27  ;;  %v2901_v2 = vmul.f32 1.442695, %v9193_v17  ;;  %v3275_v49 = vadd.f32 %v7378_v50, %v3274_v60  ;;  %v9195_v56 = vsub.f32 %v9156_v15, %v7223_v46 }
 0x405   : > { %v4790_v45 = vpop.eup %4789  ;;  %4801 = vpow2.f32 %v2893_v48  ;;  %3652 = vmatpush.msra.mxu2 %v4788_v30  ;;  %v3242_v18 = vadd.f32 %v4786_v27, %v3241_v23  ;;  %v2500_v17 = vsub.f32 %v9197_v34, %v7223_v46  ;;  %v9198_v60 = vsub.f32 %v9158_v53, %v7217_v37 }
 0x406   : > { %v4792_v33 = vpop.eup %4791  ;;  %4803 = vpow2.f32 %v2895_v32  ;;  %v2903_v47 = vmul.f32 1.442695, %v9195_v56  ;;  %3607 = vmatpush.msra.mxu0 %v7416_v16  ;;  %v3276_v1 = vadd.f32 %v7396_v20, %v3275_v49  ;;  %v9200_v15 = vsub.f32 %v9159_v11, %v7223_v46 }
 0x407   : > { %v7537_v48 = vpop.eup %4793  ;;  %4805 = vpow2.f32 %v2897_v44  ;;  %v2905_v59 = vmul.f32 1.442695, %v9198_v60  ;;  %3653 = vmatpush.msra.mxu2 %v4792_v33  ;;  %v9201_v27 = vsub.f32 %v9162_v55, %v7217_v37  ;;  %v3243_v56 = vadd.f32 %v4782_v39, %v3242_v18 }
 0x408   : > { %9196 = vst [vmem:[#allocation22_spill] sm:$0xff] %v7537_v48  ;;  %v7545_v32 = vpop.eup %4795  ;;  %4807 = vpow2.f32 %v2899_v22  ;;  %v2907_v16 = vmul.f32 1.442695, %v9200_v15  ;;  %3608 = vmatpush.msra.mxu0 %v7404_v8  ;;  %v9203_v49 = vsub.f32 %v9165_v7, %v7223_v46  ;;  %v9204_v22 = vsub.f32 %v9167_v26, %v7217_v37 }
 0x409   : > { %9199 = vst [vmem:[#allocation25_spill] sm:$0xff] %v7545_v32  ;;  %v2909_v23 = vmul.f32 1.442695, %v9201_v27  ;;  %v7554_v44 = vpop.eup %4797  ;;  %4809 = vpow2.f32 %v2901_v2  ;;  %v3277_v11 = vadd.f32 %v4790_v45, %v3276_v1  ;;  %3654 = vmatpush.msra.mxu2 %v4790_v45  ;;  %v9206_v18 = vsub.f32 %v6996_v42, %v7223_v46 }
 0x40a   : > { %9202 = vst [vmem:[#allocation29_spill] sm:$0xff] %v7554_v44  ;;  %v2911_v53 = vmul.f32 1.442695, %v9203_v49  ;;  %v2913_v34 = vmul.f32 1.442695, %v9204_v22  ;;  %v7562_v60 = vpop.eup %4799  ;;  %4811 = vpow2.f32 %v2903_v47  ;;  %v9207_v55 = vsub.f32 %v7007_v29, %v7217_v37  ;;  %3609 = vmatpush.msra.mxu0 %v7386_v5 }
 0x40b   : > { %9205 = vst [vmem:[#allocation37_spill] sm:$0xff] %v7562_v60  ;;  %v2915_v8 = vmul.f32 1.442695, %v9206_v18  ;;  %v3244_v7 = vadd.f32 %v7479_v6, %v3243_v56  ;;  %v7572_v39 = vpop.eup %4801  ;;  %4813 = vpow2.f32 %v2905_v59  ;;  %v9209_v26 = vsub.f32 %v7011_v4, %v7223_v46  ;;  %3655 = vmatpush.msra.mxu2 %v7396_v20 }
 0x40c   : > { %v2917_v2 = vmul.f32 1.442695, %v9207_v55  ;;  %9208 = vst [vmem:[#allocation40_spill] sm:$0xff] %v7572_v39  ;;  %v9210_v42 = vsub.f32 %v7022_v51, %v7217_v37  ;;  %v3278_v1 = vadd.f32 %v4792_v33, %v3277_v11  ;;  %v7583_v29 = vpop.eup %4803  ;;  %4815 = vpow2.f32 %v2907_v16  ;;  %3610 = vmatpush.msra.mxu0 %v7369_v0 }
 0x40d   : > { %v7577_v45 = vmul.f32 1.442695, %v9209_v26  ;;  %9211 = vst [vmem:[#allocation42_spill] sm:$0xff] %v7583_v29  ;;  %v9212_v5 = vsub.f32 %v7030_v14, %v7223_v46  ;;  %v9213_v4 = vsub.f32 %v9175_v43, %v7217_v37  ;;  %v3245_v15 = vadd.f32 %v7461_v62, %v3244_v7  ;;  %v7597_v51 = vpop.eup %4805  ;;  %3656 = vmatpush.msra.mxu2 %v7378_v50  ;;  %v9226_v26 = vld [vmem:[#allocation52_spill] sm:$0xff]  ;;  %v9258_v7 = vld [vmem:[#allocation31_spill] sm:$0xff] }
 0x40e   : > { %v2921_v47 = vmul.f32 1.442695, %v9210_v42  ;;  %4817 = vpow2.f32 %v2909_v23  ;;  %v9214_v20 = vsub.f32 %v9177_v3, %v7223_v46  ;;  %v9215_v14 = vsub.f32 %v9179_v9, %v7217_v37  ;;  %v7610_v27 = vpop.eup %4807  ;;  %3611 = vmatpush.msra.mxu0 %v7359_v57 }
 0x40f   : > { %v7588_v6 = vmul.f32 1.442695, %v9212_v5  ;;  %v7593_v59 = vmul.f32 1.442695, %v9213_v4  ;;  %v3279_v43 = vadd.f32 %v4788_v30, %v3278_v1  ;;  %4819 = vpow2.f32 %v2911_v53  ;;  %v7624_v30 = vpop.eup %4809  ;;  %3657 = vmatpush.msra.mxu2 %v7365_v12  ;;  %v3079_v53 = vld [vmem:[#allocation3 + $0x4] sm:$0x3] }
 0x410   : > { %v7602_v33 = vmul.f32 1.442695, %v9214_v20  ;;  %v7607_v16 = vmul.f32 1.442695, %v9215_v14  ;;  %v9216_v0 = vsub.f32 %v7070_v38, %v7223_v46  ;;  %v9217_v3 = vsub.f32 %v9182_v21, %v7217_v37  ;;  %v7628_v38 = vpop.eup %4811  ;;  %3612 = vmatpush.msra.mxu0 %v7349_v58  ;;  %v9229_v1 = vld [vmem:[#allocation45_spill] sm:$0xff]  ;;  %v9230_v4 = vld [vmem:[#allocation64_spill] sm:$0xff] }
 0x411   : > { %v3246_v9 = vadd.f32 %v7442_v10, %v3245_v15  ;;  %4821 = vpow2.f32 %v2913_v34  ;;  %v2945_v50 = vmul.f32 1.442695, %v2499_v24  ;;  %v2947_v56 = vmul.f32 1.442695, %v2500_v17  ;;  %v7638_v10 = vpop.eup %4813  ;;  %3658 = vmatpush.msra.mxu2 %v7355_v52  ;;  %v9231_v20 = vld [vmem:[#allocation89_spill] sm:$0xff]  ;;  %v9257_v5 = vld [vmem:[#allocation30_spill] sm:$0xff] }
 0x412   : > { %v7615_v62 = vmul.f32 1.442695, %v9216_v0  ;;  %v7620_v23 = vmul.f32 1.442695, %v9217_v3  ;;  %v3280_v49 = vadd.f32 %v7504_v54, %v3279_v43  ;;  %4823 = vpow2.f32 %v2915_v8  ;;  %v7648_v34 = vpop.eup %4815  ;;  %3613 = vmatpush.msra.mxu0 %v7335_v25  ;;  %v9225_v25 = vld [vmem:[#allocation51_spill] sm:$0xff]  ;;  %v9232_v0 = vld [vmem:[#allocation74_spill] sm:$0xff] }
 0x413   : > { %v3247_v21 = vadd.f32 %v7424_v28, %v3246_v9  ;;  %v7632_v22 = vperm.slane %v7394_v61, 0  ;;  %v7635_v57 = vperm.slane %v7394_v61, 1  ;;  %4825 = vpow2.f32 %v2917_v2  ;;  %v9233_v9 = vld [vmem:[#allocation75_spill] sm:$0xff]  ;;  %v9255_v3 = vld [vmem:[#allocation26_spill] sm:$0xff]  ;;  %v9270_v61 = vld [vmem:[#allocation53_spill] sm:$0xff] }
 0x414   : > { %v9218_v12 = vsub.f32 %v9184_v35, %v7223_v46  ;;  %v9219_v24 = vsub.f32 %v9190_v19, %v7217_v37  ;;  %v3281_v28 = vadd.f32 %v7488_v63, %v3280_v49  ;;  %4827 = vpow2.f32 %v2921_v47  ;;  %v7658_v19 = vpop.eup %4817  ;;  %v9228_v47 = vld [vmem:[#allocation99_spill] sm:$0xff] }
 0x415   : > { %v9220_v58 = vsub.f32 %v9186_v31, %v7217_v37  ;;  %v9221_v18 = vsub.f32 %v9192_v41, %v7223_v46  ;;  %v3248_v8 = vadd.f32 %v7537_v48, %v3247_v21  ;;  %v9222_v52 = vsub.f32 %v9188_v36, %v7223_v46  ;;  %v9224_v31 = vld [vmem:[#allocation114_spill] sm:$0xff]  ;;  %v7668_v41 = vpop.eup %4819 }
 0x416   : > { %v2935_v54 = vmul.f32 1.442695, %v9218_v12  ;;  %v2941_v17 = vmul.f32 1.442695, %v9219_v24  ;;  %4829 = vpow2.f32 %v2945_v50  ;;  %v7664_v55 = vmul.f32 %v7295_v13, %v3079_v53  ;;  %3659 = vmatpush.msra.mxu2 %v9224_v31  ;;  %v9227_v36 = vld [vmem:[#allocation78_spill] sm:$0xff]  ;;  %v9235_v53 = vld [vmem:[#allocation93_spill] sm:$0xff] }
 0x417   : > { %v2937_v11 = vmul.f32 1.442695, %v9220_v58  ;;  %v2943_v35 = vmul.f32 1.442695, %v9221_v18  ;;  %v2939_v63 = vmul.f32 1.442695, %v9222_v52  ;;  %v3282_v37 = vadd.f32 %v7470_v40, %v3281_v28  ;;  %3614 = vmatpush.msra.mxu0 %v9227_v36  ;;  %v7676_v42 = vpop.eup %4821 }
 0x418   : > { %9223 = vst [vmem:[#allocation49_spill] sm:$0xff] %v7664_v55  ;;  %4831 = vpow2.f32 %v2947_v56  ;;  %v3249_v2 = vadd.f32 %v7554_v44, %v3248_v8  ;;  %3660 = vmatpush.msra.mxu2 %v9231_v20  ;;  %v7684_v14 = vpop.eup %4823  ;;  %v9234_v56 = vld [vmem:[#allocation71_spill] sm:$0xff]  ;;  %v9236_v12 = vld [vmem:[#allocation80_spill] sm:$0xff]  ;;  %v9238_v58 = vld [vmem:[#allocation77_spill] sm:$0xff]  ;;  %v9261_v46 = vsub.f32 %v9225_v25, %v7632_v22 }
 0x419   : > { %4833 = vpow2.f32 %v2941_v17  ;;  %v3283_v40 = vadd.f32 %v9228_v47, %v3282_v37  ;;  %3615 = vmatpush.msra.mxu0 %v9234_v56  ;;  %v7692_v49 = vpop.eup %4825  ;;  %v9237_v17 = vld [vmem:[#allocation81_spill] sm:$0xff]  ;;  %v9239_v8 = vld [vmem:[#allocation84_spill] sm:$0xff]  ;;  %v9251_v52 = vld [vmem:[#allocation98_spill] sm:$0xff] }
 0x41a   : > { %4835 = vpow2.f32 %v2943_v35  ;;  %v3250_v43 = vadd.f32 %v7572_v39, %v3249_v2  ;;  %3661 = vmatpush.msra.mxu2 %v9238_v58  ;;  %v7700_v18 = vpop.eup %4827  ;;  %v9241_v31 = vld [vmem:[#allocation48_spill] sm:$0xff]  ;;  %v2949_v55 = vmul.f32 1.442695, %v9261_v46  ;;  %v9274_v44 = vld [vmem:[#allocation59_spill] sm:$0xff] }
 0x41b   : > { %4837 = vpow2.f32 %v2937_v11  ;;  %v3284_v21 = vadd.f32 %v9235_v53, %v3283_v40  ;;  %v9240_v11 = vld [vmem:[#allocation85_spill] sm:$0xff]  ;;  %3616 = vmatpush.msra.mxu0 %v9241_v31  ;;  %v9242_v47 = vld [vmem:[#allocation92_spill] sm:$0xff] }
 0x41c   : > { %4839 = vpow2.f32 %v2939_v63  ;;  %v3251_v35 = vadd.f32 %v7597_v51, %v3250_v43  ;;  %v7708_v2 = vpop.eup %4829  ;;  %v9243_v63 = vld [vmem:[#allocation113_spill] sm:$0xff]  ;;  %v9246_v58 = vld [vmem:[#allocation112_spill] sm:$0xff] }
 0x41d   : > { %4841 = vpow2.f32 %v7620_v23  ;;  %v3285_v36 = vadd.f32 %v7545_v32, %v3284_v21  ;;  %v9244_v43 = vld [vmem:[#allocation65_spill] sm:$0xff]  ;;  %v9247_v23 = vld [vmem:[#allocation107_spill] sm:$0xff]  ;;  %3624 = vmatpush.msra.mxu1 %v7708_v2  ;;  %v9253_v24 = vld [vmem:[#allocation96_spill] sm:$0xff] }
 0x41e   : > { %3662 = vmatpush.msra.mxu2 %v9244_v43  ;;  %v7717_v56 = vpop.eup %4831  ;;  %4843 = vpow2.f32 %v2935_v54  ;;  %v3252_v53 = vadd.f32 %v7624_v30, %v3251_v35  ;;  %v9248_v43 = vld [vmem:[#allocation102_spill] sm:$0xff]  ;;  %v9249_v54 = vld [vmem:[#allocation103_spill] sm:$0xff] }
 0x41f   : > { %9245 = vst [vmem:[#allocation50_spill] sm:$0xff] %v7717_v56  ;;  %v7725_v21 = vpop.eup %4833  ;;  %4845 = vpow2.f32 %v7607_v16  ;;  %v3286_v20 = vadd.f32 %v7562_v60, %v3285_v36  ;;  %3670 = vmatpush.msra.mxu3 %v7717_v56  ;;  %v9252_v16 = vld [vmem:[#allocation95_spill] sm:$0xff]  ;;  %v9262_v32 = vld [vmem:[#allocation38_spill] sm:$0xff]  ;;  %v7788_v60 = vpop.f32.mrf.mxu0 }
 0x420   : > { %v7734_v31 = vpop.eup %4835  ;;  %4847 = vpow2.f32 %v7615_v62  ;;  %v3253_v37 = vadd.f32 %v7638_v10, %v3252_v53  ;;  %3625 = vmatpush.msra.mxu1 %v7725_v21  ;;  %v9254_v62 = vld [vmem:[#allocation21_spill] sm:$0xff]  ;;  %9264 = vst [vmem:[#allocation58_spill] sm:$0xff] %v7788_v60 }
 0x421   : > { %9250 = vst [vmem:[#allocation57_spill] sm:$0xff] %v7734_v31  ;;  %v7743_v40 = vpop.eup %4837  ;;  %4849 = vpow2.f32 %v7593_v59  ;;  %v3287_v35 = vadd.f32 %v7583_v29, %v3286_v20  ;;  %3671 = vmatpush.msra.mxu3 %v7734_v31  ;;  %v9256_v59 = vld [vmem:[#allocation28_spill] sm:$0xff] }
 0x422   : > { %v7752_v28 = vpop.eup %4839  ;;  %4851 = vpow2.f32 %v7602_v33  ;;  %v3254_v36 = vadd.f32 %v7658_v19, %v3253_v37  ;;  %3626 = vmatpush.msra.mxu1 %v7743_v40  ;;  %v9259_v37 = vld [vmem:[#allocation34_spill] sm:$0xff] }
 0x423   : > { %v7761_v50 = vpop.eup %4841  ;;  %v3288_v53 = vadd.f32 %v7610_v27, %v3287_v35  ;;  %3672 = vmatpush.msra.mxu3 %v7752_v28  ;;  %4853 = vpow2.f32 %v7588_v6  ;;  %v9263_v6 = vsub.f32 %v9226_v26, %v7635_v57  ;;  %v7790_v35 = vpop.f32.mrf.mxu1  ;;  %v9268_v26 = vsub.f32 %v9229_v1, %v7632_v22 }
 0x424   : > { %v7771_v15 = vpop.eup %4843  ;;  %v3255_v20 = vadd.f32 %v7676_v42, %v3254_v36  ;;  %3627 = vmatpush.msra.mxu1 %v7761_v50  ;;  %4855 = vpow2.f32 %v7577_v45  ;;  %9265 = vst [vmem:[#allocation67_spill] sm:$0xff] %v7790_v35 }
 0x425   : > { %v4846_v33 = vpop.eup %4845  ;;  %v3289_v13 = vadd.f32 %v7628_v38, %v3288_v53  ;;  %v2951_v36 = vmul.f32 1.442695, %v9263_v6  ;;  %3673 = vmatpush.msra.mxu3 %v7771_v15  ;;  %v2953_v6 = vmul.f32 1.442695, %v9268_v26  ;;  %v9271_v53 = vsub.f32 %v9230_v4, %v7635_v57  ;;  %v9272_v26 = vld [vmem:[#allocation56_spill] sm:$0xff] }
 0x426   : > { %v7793_v25 = vpop.eup %4847  ;;  %v3256_v46 = vadd.f32 %v7692_v49, %v3255_v20  ;;  %3628 = vmatpush.msra.mxu1 %v4846_v33  ;;  %4857 = vpow2.f32 %v2949_v55  ;;  %v9276_v55 = vld [vmem:[#allocation60_spill] sm:$0xff] }
 0x427   : > { %v4850_v60 = vpop.eup %4849  ;;  %v3290_v35 = vadd.f32 %v7648_v34, %v3289_v13  ;;  %v2955_v45 = vmul.f32 1.442695, %v9271_v53  ;;  %3674 = vmatpush.msra.mxu3 %v7793_v25  ;;  %v9273_v13 = vsub.f32 %v9232_v0, %v7632_v22  ;;  %4859 = vpow2.f32 %v2951_v36 }
 0x428   : > { %v4852_v48 = vpop.eup %4851  ;;  %v3257_v1 = vadd.f32 %v7700_v18, %v3256_v46  ;;  %3629 = vmatpush.msra.mxu1 %v4850_v60  ;;  %v9275_v53 = vsub.f32 %v9233_v9, %v7635_v57  ;;  %4861 = vpow2.f32 %v2953_v6  ;;  %v9277_v0 = vsub.f32 %v9236_v12, %v7632_v22  ;;  %v7838_v6 = vpop.f32.mrf.mxu3 }
 0x429   : > { %v2957_v29 = vmul.f32 1.442695, %v9273_v13  ;;  %v3291_v20 = vadd.f32 %v7668_v41, %v3290_v35  ;;  %3675 = vmatpush.msra.mxu3 %v4852_v48  ;;  %v4854_v46 = vpop.eup %4853  ;;  %4863 = vpow2.f32 %v2955_v45  ;;  %v9283_v9 = vsub.f32 %v9240_v11, %v7635_v57 }
 0x42a   : > { %v2959_v31 = vmul.f32 1.442695, %v9275_v53  ;;  %v3258_v39 = vadd.f32 %v4850_v60, %v3257_v1  ;;  %v2961_v13 = vmul.f32 1.442695, %v9277_v0  ;;  %3630 = vmatpush.msra.mxu1 %v7700_v18  ;;  %v4856_v35 = vpop.eup %4855  ;;  %v9279_v60 = vsub.f32 %v9237_v17, %v7635_v57  ;;  %v7836_v53 = vpop.f32.mrf.mxu2  ;;  %v9280_v0 = vld [vmem:[#allocation66_spill] sm:$0xff]  ;;  %v9282_v17 = vld [vmem:[#allocation79_spill] sm:$0xff] }
 0x42b   : > { %v3292_v36 = vadd.f32 %v7684_v14, %v3291_v20  ;;  %3676 = vmatpush.msra.mxu3 %v4854_v46  ;;  %4865 = vpow2.f32 %v2957_v29  ;;  %v9281_v20 = vsub.f32 %v9239_v8, %v7632_v22  ;;  %v2967_v4 = vmul.f32 1.442695, %v9283_v9  ;;  %v9287_v9 = vld [vmem:[#allocation44_spill] sm:$0xff]  ;;  %v9289_v8 = vld [vmem:[#allocation33_spill] sm:$0xff] }
 0x42c   : > { %v2963_v1 = vmul.f32 1.442695, %v9279_v60  ;;  %v3259_v12 = vadd.f32 %v4846_v33, %v3258_v39  ;;  %3631 = vmatpush.msra.mxu1 %v7692_v49  ;;  %4867 = vpow2.f32 %v2959_v31  ;;  %v7851_v39 = vpop.eup %4857  ;;  %v9285_v33 = vld [vmem:[#allocation82_spill] sm:$0xff]  ;;  %v9286_v49 = vsub.f32 %v9242_v47, %v7632_v22  ;;  %v7861_v31 = vpop.f32.mrf.mxu1 }
 0x42d   : > { %v2965_v56 = vmul.f32 1.442695, %v9281_v20  ;;  %v3293_v45 = vadd.f32 %v4856_v35, %v3292_v36  ;;  %3677 = vmatpush.msra.mxu3 %v4856_v35  ;;  %9284 = vst [vmem:[#allocation63_spill] sm:$0xff] %v7851_v39  ;;  %4869 = vpow2.f32 %v2961_v13  ;;  %v7859_v20 = vpop.f32.mrf.mxu0  ;;  %v7864_v11 = vpop.eup %4859  ;;  %v9288_v13 = vsub.f32 %v9243_v63, %v7635_v57 }
 0x42e   : > { %v3260_v29 = vadd.f32 %v7761_v50, %v3259_v12  ;;  %v2969_v36 = vmul.f32 1.442695, %v9286_v49  ;;  %3632 = vmatpush.msra.mxu1 %v7676_v42  ;;  %4871 = vpow2.f32 %v2963_v1  ;;  %v7872_v47 = vpop.eup %4861 }
 0x42f   : > { %v3294_v35 = vadd.f32 %v4854_v46, %v3293_v45  ;;  %v2971_v12 = vmul.f32 1.442695, %v9288_v13  ;;  %3678 = vmatpush.msra.mxu3 %v7684_v14  ;;  %4873 = vpow2.f32 %v2965_v56  ;;  %v9290_v46 = vsub.f32 %v9246_v58, %v7632_v22  ;;  %v7881_v1 = vpop.eup %4863  ;;  %v9291_v13 = vld [vmem:[#allocation86_spill] sm:$0xff] }
 0x430   : > { %v3261_v49 = vadd.f32 %v7743_v40, %v3260_v29  ;;  %3633 = vmatpush.msra.mxu1 %v7658_v19  ;;  %4875 = vpow2.f32 %v2967_v4  ;;  %v9292_v40 = vsub.f32 %v9247_v23, %v7635_v57  ;;  %v3506_v19 = vpop.f32.mrf.mxu3 }
 0x431   : > { %v2973_v45 = vmul.f32 1.442695, %v9290_v46  ;;  %v3295_v63 = vadd.f32 %v4852_v48, %v3294_v35  ;;  %3679 = vmatpush.msra.mxu3 %v7668_v41  ;;  %v7889_v56 = vpop.eup %4865  ;;  %v9293_v46 = vld [vmem:[#allocation87_spill] sm:$0xff]  ;;  %4877 = vpow2.f32 %v2969_v36  ;;  %v9294_v48 = vsub.f32 %v9248_v43, %v7632_v22 }
 0x432   : > { %v2975_v29 = vmul.f32 1.442695, %v9292_v40  ;;  %v3262_v58 = vadd.f32 %v7725_v21, %v3261_v49  ;;  %3634 = vmatpush.msra.mxu1 %v7638_v10  ;;  %v7898_v4 = vpop.eup %4867  ;;  %4879 = vpow2.f32 %v2971_v12  ;;  %v9295_v41 = vsub.f32 %v9249_v54, %v7635_v57  ;;  %v3483_v36 = vpop.f32.mrf.mxu2 }
 0x433   : > { %v2977_v35 = vmul.f32 1.442695, %v9294_v48  ;;  %v3296_v23 = vadd.f32 %v7793_v25, %v3295_v63  ;;  %v9296_v21 = vsub.f32 %v9251_v52, %v7632_v22  ;;  %3680 = vmatpush.msra.mxu3 %v7648_v34  ;;  %v7908_v43 = vpop.eup %4869  ;;  %4881 = vpow2.f32 %v2973_v45 }
 0x434   : > { %v2979_v40 = vmul.f32 1.442695, %v9295_v41  ;;  %v3263_v10 = vadd.f32 %v7708_v2, %v3262_v58  ;;  %v9297_v25 = vsub.f32 %v9252_v16, %v7635_v57  ;;  %v9298_v54 = vsub.f32 %v9253_v24, %v7632_v22  ;;  %3635 = vmatpush.msra.mxu1 %v7624_v30  ;;  %v7920_v52 = vpop.eup %4871 }
 0x435   : > { %v2981_v49 = vmul.f32 1.442695, %v9296_v21  ;;  %v3297_v34 = vadd.f32 %v7771_v15, %v3296_v23  ;;  %4883 = vpow2.f32 %v2975_v29  ;;  %v9299_v2 = vsub.f32 %v9254_v62, %v7635_v57  ;;  %3681 = vmatpush.msra.mxu3 %v7628_v38  ;;  %v7934_v24 = vpop.eup %4873 }
 0x436   : > { %v7914_v12 = vmul.f32 1.442695, %v9297_v25  ;;  %v2985_v63 = vmul.f32 1.442695, %v9298_v54  ;;  %v9300_v16 = vsub.f32 %v9255_v3, %v7632_v22  ;;  %v3264_v30 = vrot.slane %v3263_v10, 4  ;;  %3636 = vmatpush.msra.mxu1 %v7597_v51  ;;  %v7945_v3 = vpop.eup %4875  ;;  %v3526_v25 = vpop.f32.mrf.mxu0 }
 0x437   : > { %v7926_v45 = vmul.f32 1.442695, %v9299_v2  ;;  %4885 = vpow2.f32 %v2977_v35  ;;  %v9301_v15 = vsub.f32 %v9256_v59, %v7635_v57  ;;  %v9302_v62 = vsub.f32 %v9257_v5, %v7632_v22  ;;  %3682 = vmatpush.msra.mxu3 %v7610_v27  ;;  %v7957_v5 = vpop.eup %4877  ;;  %v3549_v54 = vpop.f32.mrf.mxu1  ;;  %v9308_v2 = vld [vmem:[#allocation57_spill] sm:$0xff] }
 0x438   : > { %v7931_v58 = vmul.f32 1.442695, %v9300_v16  ;;  %v3298_v23 = vadd.f32 %v7752_v28, %v3297_v34  ;;  %4887 = vpow2.f32 %v2979_v40  ;;  %v9303_v38 = vsub.f32 %v9258_v7, %v7635_v57  ;;  %v9307_v34 = vld [vmem:[#allocation40_spill] sm:$0xff]  ;;  %v9309_v16 = vld [vmem:[#allocation35_spill] sm:$0xff] }
 0x439   : > { %v7939_v29 = vmul.f32 1.442695, %v9301_v15  ;;  %v2993_v48 = vmul.f32 1.442695, %v9302_v62  ;;  %v9304_v59 = vsub.f32 %v9262_v32, %v7632_v22  ;;  %v3265_v21 = vadd.f32 %v3264_v30, %v3263_v10  ;;  %3637 = vmatpush.msra.mxu1 %v9307_v34  ;;  %v7966_v32 = vpop.eup %4879  ;;  %v9312_v15 = vld [vmem:[#allocation42_spill] sm:$0xff]  ;;  %v9313_v62 = vld [vmem:[#allocation39_spill] sm:$0xff] }
 0x43a   : > { %v7951_v35 = vmul.f32 1.442695, %v9303_v38  ;;  %4889 = vpow2.f32 %v2981_v49  ;;  %v9305_v51 = vsub.f32 %v9259_v37, %v7632_v22  ;;  %v9306_v40 = vsub.f32 %v9270_v61, %v7632_v22  ;;  %3683 = vmatpush.msra.mxu3 %v9312_v15  ;;  %v7976_v61 = vpop.eup %4881  ;;  %v9322_v15 = vld [vmem:[#allocation67_spill] sm:$0xff] }
 0x43b   : > { %v3001_v41 = vmul.f32 1.442695, %v9304_v59  ;;  %v3299_v27 = vadd.f32 %v9308_v2, %v3298_v23  ;;  %4891 = vpow2.f32 %v2985_v63  ;;  %v9310_v49 = vsub.f32 %v9309_v16, %v7635_v57  ;;  %v9319_v16 = vld [vmem:[#allocation29_spill] sm:$0xff] }
 0x43c   : > { %v2997_v28 = vmul.f32 1.442695, %v9305_v51  ;;  %v3009_v7 = vmul.f32 1.442695, %v9306_v40  ;;  %v9311_v37 = vsub.f32 %v9272_v26, %v7635_v57  ;;  %4893 = vpow2.f32 %v2993_v48  ;;  %v9315_v51 = vld [vmem:[#allocation43_spill] sm:$0xff]  ;;  %v9317_v40 = vld [vmem:[#allocation46_spill] sm:$0xff]  ;;  %3638 = vmatpush.msra.mxu1 %v9319_v16  ;;  %v7988_v26 = vpop.eup %4883 }
 0x43d   : > { %v2999_v10 = vmul.f32 1.442695, %v9310_v49  ;;  %v9314_v38 = vsub.f32 %v9313_v62, %v7635_v57  ;;  %v9316_v63 = vsub.f32 %v9315_v51, %v7632_v22  ;;  %v9318_v34 = vsub.f32 %v9317_v40, %v7635_v57  ;;  %v9320_v49 = vld [vmem:[#allocation50_spill] sm:$0xff]  ;;  %v3595_v51 = vpop.f32.mrf.mxu3  ;;  %v7996_v42 = vpop.eup %4885 }
 0x43e   : > { %v3011_v30 = vmul.f32 1.442695, %v9311_v37  ;;  %v3300_v37 = vadd.f32 %v9320_v49, %v3299_v27  ;;  %4895 = vpow2.f32 %v3001_v41  ;;  %v9321_v48 = vld [vmem:[#allocation58_spill] sm:$0xff]  ;;  %v3504_v62 = vadd.f32 %v7838_v6, %v7836_v53  ;;  %v8001_v41 = vpop.eup %4887  ;;  %v9325_v6 = vld [vmem:[#allocation129_spill] sm:$0xff] }
 0x43f   : > { %v3003_v59 = vmul.f32 1.442695, %v9314_v38  ;;  %v3005_v23 = vmul.f32 1.442695, %v9316_v63  ;;  %v3007_v2 = vmul.f32 1.442695, %v9318_v34  ;;  %v3458_v14 = vadd.f32 %v9322_v15, %v9321_v48  ;;  %v3572_v38 = vpop.f32.mrf.mxu2 }
 0x440   : > { %v9323_v63 = vld [vmem:[#allocation37_spill] sm:$0xff]  ;;  %v3266_v40 = vrot.slane %v3265_v21, 2  ;;  %4897 = vpow2.f32 %v3009_v7  ;;  %v3461_v34 = vadd.f32 %v7861_v31, %v7859_v20  ;;  %v3507_v16 = vadd.f32 %v3506_v19, %v3483_v36  ;;  %v9324_v27 = vld [vmem:[#allocation22_spill] sm:$0xff] }
 0x441   : > { %3684 = vmatpush.msra.mxu3 %v9323_v63  ;;  %3639 = vmatpush.msra.mxu1 %v9324_v27  ;;  %v3301_v49 = vrot.slane %v3300_v37, 4  ;;  %4899 = vpow2.f32 %v3011_v30  ;;  %v3307_v53 = vadd.f32 %v7872_v47, %v7851_v39  ;;  %v3837_v48 = vadd.f32 %v9325_v6, %v3458_v14  ;;  %v9326_v15 = vld [vmem:[#allocation25_spill] sm:$0xff]  ;;  %v8007_v63 = vpop.eup %4889  ;;  %v9329_v7 = vld [vmem:[#allocation130_spill] sm:$0xff] }
 0x442   : > { %4901 = vpow2.f32 %v3005_v23  ;;  %v9327_v20 = vsub.f32 %v9274_v44, %v7632_v22  ;;  %v9328_v19 = vsub.f32 %v9276_v55, %v7635_v57  ;;  %v3838_v30 = vadd.f32 %v9329_v7, %v3504_v62  ;;  %v8020_v27 = vpop.eup %4891  ;;  %v9330_v23 = vld [vmem:[#allocation125_spill] sm:$0xff] }
 0x443   : > { %3685 = vmatpush.msra.mxu3 %v9326_v15  ;;  %v3302_v14 = vadd.f32 %v3301_v49, %v3300_v37  ;;  %4903 = vpow2.f32 %v3007_v2  ;;  %v3308_v15 = vadd.f32 %v7889_v56, %v3307_v53  ;;  %v9331_v50 = vperm.slane %v9330_v23, 0  ;;  %v8025_v44 = vpop.eup %4893 }
 0x444   : > { %v8012_v31 = vmul.f32 1.442695, %v9327_v20  ;;  %v8017_v36 = vmul.f32 1.442695, %v9328_v19  ;;  %4905 = vpow2.f32 %v3003_v59  ;;  %v9332_v20 = vld [vmem:[#allocation61_spill] sm:$0xff]  ;;  %v9334_v18 = vperm.slane %v9330_v23, 1  ;;  %v8035_v37 = vpop.eup %4895 }
 0x445   : > { %v3916_v60 = vmul.f32 %v9331_v50, %v3837_v48  ;;  %v9333_v55 = vsub.f32 %v9332_v20, %v7632_v22  ;;  %v3839_v39 = vadd.f32 %v9325_v6, %v3461_v34  ;;  %v3267_v2 = vadd.f32 %v3266_v40, %v3265_v21  ;;  %v3529_v40 = vpop.f32.mrf.mxu0  ;;  %v3552_v48 = vpop.f32.mrf.mxu1 }
 0x446   : > { %v3917_v62 = vmul.f32 %v9334_v18, %v3838_v30  ;;  %v3303_v49 = vrot.slane %v3302_v14, 2  ;;  %v3309_v53 = vadd.f32 %v7908_v43, %v3308_v15  ;;  %v3840_v50 = vadd.f32 %v9329_v7, %v3507_v16  ;;  %v8043_v59 = vpop.eup %4897 }
 0x447   : > { %v8030_v19 = vmul.f32 1.442695, %v9333_v55  ;;  %3932 = vst [vmem:[%s8039_s24] sm:$0xff] %v3916_v60  ;;  %4907 = vpow2.f32 %v2997_v28  ;;  %v9335_v18 = vperm.slane %v9330_v23, 0  ;;  %v3550_v6 = vadd.f32 %v3549_v54, %v3526_v25  ;;  %v8048_v30 = vpop.eup %4899  ;;  %3693 = vmatpush.msrb.mxu0 %v8043_v59  ;;  %v9337_v25 = vld [vmem:[#allocation131_spill] sm:$0xff] }
 0x448   : > { %3933 = vst [vmem:[%s8039_s24 + $0x8] sm:$0xff] %v3917_v62  ;;  %v3596_v21 = vadd.f32 %v3595_v51, %v3572_v38  ;;  %v3304_v15 = vadd.f32 %v3303_v49, %v3302_v14  ;;  %4909 = vpow2.f32 %v2999_v10  ;;  %v3310_v60 = vadd.f32 %v7934_v24, %v3309_v53  ;;  %v8054_v28 = vpop.eup %4901  ;;  %v9338_v38 = vld [vmem:[#allocation132_spill] sm:$0xff]  ;;  %3739 = vmatpush.msrb.mxu2 %v8048_v30  ;;  %v3575_v62 = vpop.f32.mrf.mxu2 }
 0x449   : > { %v3918_v34 = vmul.f32 %v9335_v18, %v3839_v39  ;;  %v9336_v16 = vperm.slane %v9330_v23, 1  ;;  %4911 = vpow2.f32 %v7951_v35  ;;  %v3344_v39 = vadd.f32 %v7881_v1, %v7864_v11  ;;  %v8063_v10 = vpop.eup %4903  ;;  %v3598_v35 = vpop.f32.mrf.mxu3  ;;  %3694 = vmatpush.msrb.mxu0 %v8054_v28 }
 0x44a   : > { %v3841_v54 = vadd.f32 %v9337_v25, %v3550_v6  ;;  %v3842_v51 = vadd.f32 %v9338_v38, %v3596_v21  ;;  %v3268_v14 = vrot.slane %v3267_v2, 1  ;;  %v3305_v23 = vrot.slane %v3304_v15, 1  ;;  %v8068_v49 = vpop.eup %4905  ;;  %3740 = vmatpush.msrb.mxu2 %v8063_v10 }
 0x44b   : > { %v3919_v7 = vmul.f32 %v9336_v16, %v3840_v50  ;;  %3934 = vst [vmem:[%s8039_s24 + $0x10] sm:$0xff] %v3918_v34  ;;  %v3311_v20 = vadd.f32 %v7957_v5, %v3310_v60  ;;  %v3553_v55 = vadd.f32 %v3552_v48, %v3529_v40  ;;  %4913 = vpow2.f32 %v7931_v58  ;;  %v9339_v50 = vld [vmem:[#allocation126_spill] sm:$0xff]  ;;  %3695 = vmatpush.msrb.mxu0 %v8035_v37 }
 0x44c   : > { %v3345_v53 = vadd.f32 %v7898_v4, %v3344_v39  ;;  %v9340_v18 = vperm.slane %v9339_v50, 0  ;;  %v9341_v6 = vperm.slane %v9339_v50, 1  ;;  %v3306_v40 = vadd.f32 %v3305_v23, %v3304_v15  ;;  %3741 = vmatpush.msrb.mxu2 %v8068_v49  ;;  %v9350_v50 = vld [vmem:[#allocation91_spill] sm:$0xff] }
 0x44d   : > { %3935 = vst [vmem:[%s8039_s24 + $0x18] sm:$0xff] %v3919_v7  ;;  %4915 = vpow2.f32 %v7939_v29  ;;  %v3312_v48 = vadd.f32 %v7976_v61, %v3311_v20  ;;  %v3843_v60 = vadd.f32 %v9337_v25, %v3553_v55  ;;  %v8081_v58 = vpop.eup %4907  ;;  %v9342_v16 = vsub.f32 %v9280_v0, %v7635_v57 }
 0x44e   : > { %v3920_v34 = vmul.f32 %v9340_v18, %v3841_v54  ;;  %v3921_v21 = vmul.f32 %v9341_v6, %v3842_v51  ;;  %4917 = vpow2.f32 %v7926_v45  ;;  %v3346_v39 = vadd.f32 %v7920_v52, %v3345_v53  ;;  %v8090_v29 = vpop.eup %4909  ;;  %3696 = vmatpush.msrb.mxu0 %v8081_v58 }
 0x44f   : > { %v3019_v7 = vmul.f32 1.442695, %v9342_v16  ;;  %v3599_v15 = vadd.f32 %v3598_v35, %v3575_v62  ;;  %v3269_v54 = vadd.f32 %v3268_v14, %v3267_v2  ;;  %v3391_v25 = vrot.slane %v3306_v40, 7  ;;  %v8097_v0 = vpop.eup %4911  ;;  %3742 = vmatpush.msrb.mxu2 %v8090_v29 }
 0x450   : > { %3936 = vst [vmem:[%s8039_s24 + $0x20] sm:$0xff] %v3920_v34  ;;  %v3313_v51 = vadd.f32 %v7996_v42, %v3312_v48  ;;  %v9343_v45 = vmov %v9340_v18  ;;  %4919 = vpow2.f32 %v7914_v12  ;;  %v9344_v20 = vsub.f32 %v9282_v17, %v7632_v22  ;;  %3697 = vmatpush.msrb.mxu0 %v8025_v44  ;;  %v9346_v18 = vld [vmem:[#allocation49_spill] sm:$0xff] }
 0x451   : > { %3937 = vst [vmem:[%s8039_s24 + $0x28] sm:$0xff] %v3921_v21  ;;  %v3922_v23 = vmul.f32 %v9343_v45, %v3843_v60  ;;  %v3347_v2 = vadd.f32 %v7945_v3, %v3346_v39  ;;  %v3844_v14 = vadd.f32 %v9338_v38, %v3599_v15  ;;  %v3395_v62 = vsel %vm2264_vm2, %v3269_v54, %v3391_v25  ;;  %v4914_v17 = vpop.eup %4913 }
 0x452   : > { %v3021_v55 = vmul.f32 1.442695, %v9344_v20  ;;  %4921 = vpow2.f32 %v8012_v31  ;;  %v9345_v35 = vsub.f32 %v9285_v33, %v7635_v57  ;;  %v3314_v12 = vadd.f32 %v8007_v63, %v3313_v51  ;;  %3743 = vmatpush.msrb.mxu2 %v8097_v0  ;;  %v9347_v33 = vld [vmem:[#allocation90_spill] sm:$0xff]  ;;  %3698 = vmatpush.msrb.mxu0 %v4914_v17 }
 0x453   : > { %3938 = vst [vmem:[%s8039_s24 + $0x30] sm:$0xff] %v3922_v23  ;;  %v3403_v34 = vadd.f32 %v3395_v62, %v9346_v18  ;;  %4923 = vpow2.f32 %v8017_v36  ;;  %v3348_v38 = vadd.f32 %v7966_v32, %v3347_v2  ;;  %v3923_v21 = vmul.f32 %v9341_v6, %v3844_v14  ;;  %v4916_v31 = vpop.eup %4915  ;;  %v9354_v2 = vld [vmem:[#allocation105_spill] sm:$0xff] }
 0x454   : > { %v3023_v53 = vmul.f32 1.442695, %v9345_v35  ;;  %v2543_v40 = vsub.f32 %v9347_v33, %v7632_v22  ;;  %4925 = vpow2.f32 %v8030_v19  ;;  %v9348_v48 = vsub.f32 %v9287_v9, %v7632_v22  ;;  %v4918_v16 = vpop.eup %4917  ;;  %3744 = vmatpush.msrb.mxu2 %v4916_v31  ;;  %v9352_v9 = vld [vmem:[#allocation100_spill] sm:$0xff]  ;;  %3699 = vmatpush.msrb.mxu0 %v8020_v27 }
 0x455   : > { %v3315_v36 = vadd.f32 %v8020_v27, %v3314_v12  ;;  %3411 = vst.msk [vmem:[#allocation3 + $0x4] sm:$0x3] %vm5787_vm1, %v3403_v34  ;;  %v2544_v15 = vsub.f32 %v9350_v50, %v7635_v57  ;;  %4927 = vpow2.f32 %v3019_v7  ;;  %v9351_v54 = vsub.f32 %v9289_v8, %v7635_v57 }
 0x456   : > { %v3025_v60 = vmul.f32 1.442695, %v9348_v48  ;;  %v3349_v19 = vadd.f32 %v7988_v26, %v3348_v38  ;;  %v2545_v51 = vsub.f32 %v9352_v9, %v7632_v22  ;;  %4929 = vpow2.f32 %v3021_v55  ;;  %3939 = vst [vmem:[%s8039_s24 + $0x38] sm:$0xff] %v3923_v21  ;;  %v4920_v7 = vpop.eup %4919  ;;  %3745 = vmatpush.msrb.mxu2 %v4918_v16  ;;  %3700 = vmatpush.msrb.mxu0 %v8007_v63  ;;  %v9358_v21 = vld [vmem:[#allocation118_spill] sm:$0xff]  ;;  %v9361_v9 = vld [vmem:[#allocation127_spill] sm:$0xff] }
 0x457   : > { %v3027_v25 = vmul.f32 1.442695, %v9351_v54  ;;  %v9353_v45 = vsub.f32 %v9291_v13, %v7632_v22  ;;  %v3316_v20 = vadd.f32 %v4914_v17, %v3315_v36  ;;  %v2546_v8 = vsub.f32 %v9354_v2, %v7635_v57  ;;  %v9356_v13 = vld [vmem:[#allocation23_spill] sm:$0xff]  ;;  %v9359_v48 = vld [vmem:[#allocation54_spill] sm:$0xff] }
 0x458   : > { %4931 = vpow2.f32 %v3023_v53  ;;  %v9355_v14 = vsub.f32 %v9293_v46, %v7635_v57  ;;  %v3350_v35 = vadd.f32 %v8001_v41, %v3349_v19  ;;  %v8148_v55 = vpop.eup %4921  ;;  %v2547_v12 = vsub.f32 %v9356_v13, %v7632_v22  ;;  %v9357_v53 = vld [vmem:[#allocation69_spill] sm:$0xff]  ;;  %3746 = vmatpush.msrb.mxu2 %v4920_v7  ;;  %3701 = vmatpush.msrb.mxu0 %v7996_v42  ;;  %v9360_v54 = vld [vmem:[#allocation55_spill] sm:$0xff] }
 0x459   : > { %v3029_v23 = vmul.f32 1.442695, %v9353_v45  ;;  %4933 = vpow2.f32 %v3025_v60  ;;  %v3033_v17 = vmul.f32 1.442695, %v2543_v40  ;;  %v3317_v27 = vadd.f32 %v8025_v44, %v3316_v20  ;;  %v8154_v18 = vpop.eup %4923  ;;  %v9363_v2 = vld [vmem:[#allocation123_spill] sm:$0xff] }
 0x45a   : > { %v3031_v62 = vmul.f32 1.442695, %v9355_v14  ;;  %v2549_v46 = vsub.f32 %v9357_v53, %v7632_v22  ;;  %4935 = vpow2.f32 %v3027_v25  ;;  %v3035_v34 = vmul.f32 1.442695, %v2544_v15  ;;  %v8158_v6 = vpop.eup %4925  ;;  %3747 = vmatpush.msrb.mxu2 %v8001_v41  ;;  %3702 = vmatpush.msrb.mxu0 %v7976_v61  ;;  %v9366_v53 = vld [vmem:[#allocation88_spill] sm:$0xff] }
 0x45b   : > { %v3351_v38 = vadd.f32 %v4920_v7, %v3350_v35  ;;  %v2551_v33 = vsub.f32 %v9358_v21, %v7632_v22  ;;  %4937 = vpow2.f32 %v3029_v23  ;;  %v3037_v40 = vmul.f32 1.442695, %v2545_v51  ;;  %v8164_v63 = vpop.eup %4927  ;;  %v9362_v23 = vld [vmem:[#allocation128_spill] sm:$0xff] }
 0x45c   : > { %v3318_v44 = vadd.f32 %v8081_v58, %v3317_v27  ;;  %v2563_v60 = vsub.f32 %v9359_v48, %v7632_v22  ;;  %4939 = vpow2.f32 %v3031_v62  ;;  %v3039_v36 = vmul.f32 1.442695, %v2546_v8  ;;  %v8169_v15 = vpop.eup %4929  ;;  %3748 = vmatpush.msrb.mxu2 %v7988_v26  ;;  %3703 = vmatpush.msrb.mxu0 %v7957_v5  ;;  %v9364_v62 = vld [vmem:[#allocation124_spill] sm:$0xff]  ;;  %v9368_v48 = vld [vmem:[#allocation27_spill] sm:$0xff] }
 0x45d   : > { %v3352_v50 = vadd.f32 %v4918_v16, %v3351_v38  ;;  %v2564_v25 = vsub.f32 %v9360_v54, %v7635_v57  ;;  %4941 = vpow2.f32 %v3033_v17  ;;  %v3041_v19 = vmul.f32 1.442695, %v2547_v12  ;;  %v9365_v12 = vld [vmem:[#allocation32_spill] sm:$0xff]  ;;  %v9369_v54 = vld [vmem:[#allocation106_spill] sm:$0xff] }
 0x45e   : > { %v3319_v58 = vadd.f32 %v8035_v37, %v3318_v44  ;;  %v8175_v42 = vpop.eup %4931  ;;  %v2561_v51 = vsub.f32 %v9361_v9, %v7632_v22  ;;  %4943 = vpow2.f32 %v3035_v34  ;;  %v3045_v16 = vmul.f32 1.442695, %v2549_v46  ;;  %3749 = vmatpush.msrb.mxu2 %v7966_v32  ;;  %3704 = vmatpush.msrb.mxu0 %v7934_v24  ;;  %v9367_v38 = vld [vmem:[#allocation120_spill] sm:$0xff] }
 0x45f   : > { %v3353_v45 = vadd.f32 %v4916_v31, %v3352_v50  ;;  %v8180_v41 = vpop.eup %4933  ;;  %v2562_v20 = vsub.f32 %v9362_v23, %v7635_v57  ;;  %4945 = vpow2.f32 %v3037_v40  ;;  %v3049_v7 = vmul.f32 1.442695, %v2551_v33  ;;  %v400_v40 = vld [vmem:[%s6936_s18 + $0x48] sm:$0xff] }
 0x460   : > { %v3320_v37 = vadd.f32 %v8054_v28, %v3319_v58  ;;  %v8186_v61 = vpop.eup %4935  ;;  %v2559_v8 = vsub.f32 %v9363_v2, %v7632_v22  ;;  %4947 = vpow2.f32 %v3039_v36  ;;  %v3073_v31 = vmul.f32 1.442695, %v2563_v60  ;;  %3750 = vmatpush.msrb.mxu2 %v7945_v3  ;;  %3705 = vmatpush.msrb.mxu0 %v7908_v43  ;;  %v9370_v58 = vld [vmem:[#allocation119_spill] sm:$0xff] }
 0x461   : > { %v3354_v26 = vadd.f32 %v8097_v0, %v3353_v45  ;;  %v8192_v14 = vpop.eup %4937  ;;  %v2560_v35 = vsub.f32 %v9364_v62, %v7635_v57  ;;  %4949 = vpow2.f32 %v3041_v19  ;;  %v3075_v28 = vmul.f32 1.442695, %v2564_v25  ;;  %3640 = vmatmul.f32.vlgmr.msra.gmra.mxu1 %v400_v40  ;;  %3686 = vmatmul.f32.vlgmr.msra.gmra.mxu3 %v400_v40  ;;  %v9371_v45 = vld [vmem:[#allocation24_spill] sm:$0xff]  ;;  %v9373_v62 = vld [vmem:[#allocation70_spill] sm:$0xff] }
 0x462   : > { %v3321_v5 = vadd.f32 %v8043_v59, %v3320_v37  ;;  %v8198_v13 = vpop.eup %4939  ;;  %v2557_v17 = vsub.f32 %v9365_v12, %v7632_v22  ;;  %4951 = vpow2.f32 %v3045_v16  ;;  %v3069_v32 = vmul.f32 1.442695, %v2561_v51  ;;  %3751 = vmatpush.msrb.mxu2 %v7920_v52  ;;  %3706 = vmatpush.msrb.mxu0 %v7889_v56  ;;  %v9372_v37 = vld [vmem:[#allocation115_spill] sm:$0xff] }
 0x463   : > { %v3355_v0 = vadd.f32 %v8090_v29, %v3354_v26  ;;  %v8204_v27 = vpop.eup %4941  ;;  %v2558_v59 = vsub.f32 %v9366_v53, %v7635_v57  ;;  %4953 = vpow2.f32 %v3049_v7  ;;  %v3071_v24 = vmul.f32 1.442695, %v2562_v20  ;;  %v399_v29 = vld [vmem:[%s6936_s18 + $0x40] sm:$0xff] }
 0x464   : > { %v3322_v46 = vadd.f32 %v8148_v55, %v3321_v5  ;;  %v8210_v34 = vpop.eup %4943  ;;  %v2555_v21 = vsub.f32 %v9367_v38, %v7632_v22  ;;  %v3065_v33 = vmul.f32 1.442695, %v2559_v8  ;;  %4955 = vpow2.f32 %v3073_v31  ;;  %3617 = vmatmul.f32.vlgmr.msra.gmra.mxu0 %v399_v29  ;;  %3663 = vmatmul.f32.vlgmr.msra.gmra.mxu2 %v399_v29 }
 0x465   : > { %v3356_v3 = vadd.f32 %v8068_v49, %v3355_v0  ;;  %v8218_v44 = vpop.eup %4945  ;;  %v2556_v60 = vsub.f32 %v9368_v48, %v7635_v57  ;;  %v3067_v36 = vmul.f32 1.442695, %v2560_v35  ;;  %4957 = vpow2.f32 %v3075_v28  ;;  %3752 = vmatpush.msrb.mxu2 %v7898_v4  ;;  %3707 = vmatpush.msrb.mxu0 %v7872_v47  ;;  %v9374_v47 = vld [vmem:[#allocation63_spill] sm:$0xff]  ;;  %v402_v0 = vld [vmem:[%s6936_s18 + $0x58] sm:$0xff] }
 0x466   : > { %v3323_v43 = vadd.f32 %v8158_v6, %v3322_v46  ;;  %v8223_v50 = vpop.eup %4947  ;;  %v2553_v49 = vsub.f32 %v9369_v54, %v7632_v22  ;;  %v3061_v25 = vmul.f32 1.442695, %v2557_v17  ;;  %4959 = vpow2.f32 %v3069_v32  ;;  %v401_v32 = vld [vmem:[%s6936_s18 + $0x50] sm:$0xff] }
 0x467   : > { %v3357_v52 = vadd.f32 %v8063_v10, %v3356_v3  ;;  %v8228_v19 = vpop.eup %4949  ;;  %v2554_v9 = vsub.f32 %v9370_v58, %v7635_v57  ;;  %v3063_v51 = vmul.f32 1.442695, %v2558_v59  ;;  %4961 = vpow2.f32 %v3071_v24  ;;  %3753 = vmatpush.msrb.mxu2 %v7881_v1  ;;  %3708 = vmatpush.msrb.mxu0 %v9374_v47  ;;  %v406_v47 = vld [vmem:[%s6936_s18 + $0x78] sm:$0xff] }
 0x468   : > { %v3324_v16 = vadd.f32 %v8169_v15, %v3323_v43  ;;  %v8235_v22 = vpop.eup %4951  ;;  %v2548_v10 = vsub.f32 %v9371_v45, %v7635_v57  ;;  %v3057_v23 = vmul.f32 1.442695, %v2555_v21  ;;  %4963 = vpow2.f32 %v3065_v33 }
 0x469   : > { %v3358_v20 = vadd.f32 %v8048_v30, %v3357_v52  ;;  %v8240_v7 = vpop.eup %4953  ;;  %v2552_v2 = vsub.f32 %v9372_v37, %v7635_v57  ;;  %v3059_v8 = vmul.f32 1.442695, %v2556_v60  ;;  %4965 = vpow2.f32 %v3067_v36  ;;  %3754 = vmatpush.msrb.mxu2 %v7864_v11  ;;  %3643 = vmatmul.f32.gmra.mxu1 %v402_v0 }
 0x46a   : > { %v3325_v56 = vadd.f32 %v8180_v41, %v3324_v16  ;;  %v8247_v4 = vpop.eup %4955  ;;  %v3053_v31 = vmul.f32 1.442695, %v2553_v49  ;;  %4967 = vpow2.f32 %v3061_v25  ;;  %v2550_v35 = vsub.f32 %v9373_v62, %v7635_v57  ;;  %3689 = vmatmul.f32.gmra.mxu3 %v402_v0 }
 0x46b   : > { %v3359_v30 = vadd.f32 %v8154_v18, %v3358_v20  ;;  %v8250_v26 = vpop.eup %4957  ;;  %v3055_v28 = vmul.f32 1.442695, %v2554_v9  ;;  %4969 = vpow2.f32 %v3063_v51  ;;  %3716 = vmatpush.msrb.mxu1 %v8247_v4  ;;  %v3043_v12 = vmul.f32 1.442695, %v2548_v10 }
 0x46c   : > { %v3326_v5 = vadd.f32 %v8192_v14, %v3325_v56  ;;  %v8257_v1 = vpop.eup %4959  ;;  %4971 = vpow2.f32 %v3057_v23  ;;  %3762 = vmatpush.msrb.mxu3 %v8250_v26  ;;  %v3051_v53 = vmul.f32 1.442695, %v2552_v2  ;;  %3620 = vmatmul.f32.gmra.mxu0 %v401_v32  ;;  %v3047_v21 = vmul.f32 1.442695, %v2550_v35  ;;  %v403_v2 = vld [vmem:[%s6936_s18 + $0x60] sm:$0xff] }
 0x46d   : > { %v3360_v17 = vadd.f32 %v8164_v63, %v3359_v30  ;;  %v8264_v57 = vpop.eup %4961  ;;  %4973 = vpow2.f32 %v3059_v8  ;;  %3717 = vmatpush.msrb.mxu1 %v8257_v1  ;;  %3666 = vmatmul.f32.gmra.mxu2 %v401_v32  ;;  %v405_v30 = vld [vmem:[%s6936_s18 + $0x70] sm:$0xff] }
 0x46e   : > { %v3327_v59 = vadd.f32 %v8204_v27, %v3326_v5  ;;  %v4964_v24 = vpop.eup %4963  ;;  %4975 = vpow2.f32 %v3053_v31  ;;  %3763 = vmatpush.msrb.mxu3 %v8264_v57 }
 0x46f   : > { %v3361_v46 = vadd.f32 %v8175_v42, %v3360_v17  ;;  %v8270_v38 = vpop.eup %4965  ;;  %4977 = vpow2.f32 %v3055_v28  ;;  %3718 = vmatpush.msrb.mxu1 %v4964_v24 }
 0x470   : > { %v3328_v11 = vadd.f32 %v8218_v44, %v3327_v59  ;;  %v4968_v33 = vpop.eup %4967  ;;  %4979 = vpow2.f32 %v3043_v12  ;;  %3764 = vmatpush.msrb.mxu3 %v8270_v38  ;;  %v3080_v12 = vld [vmem:[#allocation3 + $0x6] sm:$0x3]  ;;  %v3874_v59 = vld [vmem:[#allocation3 + $0x4] sm:$0x3] }
 0x471   : > { %v3362_v3 = vadd.f32 %v8186_v61, %v3361_v46  ;;  %v4970_v29 = vpop.eup %4969  ;;  %4981 = vpow2.f32 %v3051_v53  ;;  %3719 = vmatpush.msrb.mxu1 %v4968_v33 }
 0x472   : > { %v3329_v40 = vadd.f32 %v8228_v19, %v3328_v11  ;;  %v4972_v48 = vpop.eup %4971  ;;  %3765 = vmatpush.msrb.mxu3 %v4970_v29  ;;  %4983 = vpow2.f32 %v3047_v21 }
 0x473   : > { %v3363_v60 = vadd.f32 %v8198_v13, %v3362_v3  ;;  %v4974_v36 = vpop.eup %4973  ;;  %3720 = vmatpush.msrb.mxu1 %v4972_v48 }
 0x474   : > { %v3330_v43 = vadd.f32 %v8235_v22, %v3329_v40  ;;  %v4976_v54 = vpop.eup %4975  ;;  %3766 = vmatpush.msrb.mxu3 %v4974_v36  ;;  %3709 = vmatmul.f32.vlgmr.msrb.gmra.mxu0 %v403_v2 }
 0x475   : > { %v3364_v49 = vadd.f32 %v8210_v34, %v3363_v60  ;;  %v4978_v25 = vpop.eup %4977  ;;  %3721 = vmatpush.msrb.mxu1 %v4976_v54  ;;  %3755 = vmatmul.f32.vlgmr.msrb.gmra.mxu2 %v403_v2 }
 0x476   : > { %v3331_v52 = vadd.f32 %v8240_v7, %v3330_v43  ;;  %v4980_v58 = vpop.eup %4979  ;;  %3767 = vmatpush.msrb.mxu3 %v4978_v25 }
 0x477   : > { %v3365_v9 = vadd.f32 %v8223_v50, %v3364_v49  ;;  %v4982_v51 = vpop.eup %4981  ;;  %3722 = vmatpush.msrb.mxu1 %v8240_v7 }
 0x478   : > { %v3332_v16 = vadd.f32 %v4976_v54, %v3331_v52  ;;  %3768 = vmatpush.msrb.mxu3 %v4982_v51  ;;  %v4984_v10 = vpop.eup %4983 }
 0x479   : > { %v3366_v45 = vadd.f32 %v4980_v58, %v3365_v9  ;;  %3723 = vmatpush.msrb.mxu1 %v8235_v22 }
 0x47a   : > { %v3333_v23 = vadd.f32 %v4972_v48, %v3332_v16  ;;  %3769 = vmatpush.msrb.mxu3 %v4984_v10 }
 0x47b   : > { %v3367_v20 = vadd.f32 %v4984_v10, %v3366_v45  ;;  %3724 = vmatpush.msrb.mxu1 %v8228_v19 }
 0x47c   : > { %v3334_v37 = vadd.f32 %v4968_v33, %v3333_v23  ;;  %3770 = vmatpush.msrb.mxu3 %v4980_v58  ;;  %3712 = vmatmul.f32.gmra.mxu0 %v405_v30 }
 0x47d   : > { %v3368_v8 = vadd.f32 %v4982_v51, %v3367_v20  ;;  %3725 = vmatpush.msrb.mxu1 %v8218_v44  ;;  %3758 = vmatmul.f32.gmra.mxu2 %v405_v30 }
 0x47e   : > { %v3335_v56 = vadd.f32 %v4964_v24, %v3334_v37  ;;  %3771 = vmatpush.msrb.mxu3 %v8223_v50  ;;  %v9378_v24 = vld [vmem:[#allocation41_spill] sm:$0xff] }
 0x47f   : > { %v3369_v7 = vadd.f32 %v4978_v25, %v3368_v8  ;;  %3726 = vmatpush.msrb.mxu1 %v8204_v27  ;;  %v3809_v46 = vperm.slane %v9378_v24, 0  ;;  %v3810_v48 = vperm.slane %v9378_v24, 1 }
 0x480   : > { %v3336_v31 = vadd.f32 %v8257_v1, %v3335_v56  ;;  %3772 = vmatpush.msrb.mxu3 %v8210_v34 }
 0x481   : > { %v3370_v22 = vadd.f32 %v4974_v36, %v3369_v7  ;;  %3727 = vmatpush.msrb.mxu1 %v8192_v14  ;;  %v404_v14 = vld [vmem:[%s6936_s18 + $0x68] sm:$0xff]  ;;  %v3829_v3 = vmul.f32 0.0, %v3809_v46  ;;  %v3830_v54 = vmul.f32 0.0, %v3810_v48 }
 0x482   : > { %v3337_v19 = vadd.f32 %v8247_v4, %v3336_v31  ;;  %3773 = vmatpush.msrb.mxu3 %v8198_v13 }
 0x483   : > { %v3371_v62 = vadd.f32 %v4970_v29, %v3370_v22  ;;  %3728 = vmatpush.msrb.mxu1 %v8180_v41  ;;  %v9375_v41 = vld [vmem:[#allocation111_spill] sm:$0xff] }
 0x484   : > { %v3338_v44 = vrot.slane %v3337_v19, 4  ;;  %3774 = vmatpush.msrb.mxu3 %v8186_v61  ;;  %v9376_v61 = vld [vmem:[#allocation108_spill] sm:$0xff] }
 0x485   : > { %v3372_v50 = vadd.f32 %v8270_v38, %v3371_v62  ;;  %3729 = vmatpush.msrb.mxu1 %v8169_v15  ;;  %v9377_v4 = vsub.f32 %v9375_v41, %v9376_v61 }
 0x486   : > { %v3339_v27 = vadd.f32 %v3338_v44, %v3337_v19  ;;  %3775 = vmatpush.msrb.mxu3 %v8175_v42 }
 0x487   : > { %v3373_v34 = vadd.f32 %v8264_v57, %v3372_v50  ;;  %3730 = vmatpush.msrb.mxu1 %v8158_v6  ;;  %v2287_v15 = vmul.f32 1.442695, %v9377_v4 }
 0x488   : > { %3776 = vmatpush.msrb.mxu3 %v8164_v63  ;;  %v3340_v35 = vrot.slane %v3339_v27, 2 }
 0x489   : > { %v3374_v13 = vadd.f32 %v8250_v26, %v3373_v34  ;;  %3731 = vmatpush.msrb.mxu1 %v8148_v55  ;;  %4985 = vpow2.f32 %v2287_v15 }
 0x48a   : > { %3777 = vmatpush.msrb.mxu3 %v8154_v18  ;;  %3732 = vmatmul.f32.vlgmr.msrb.gmra.mxu1 %v404_v14  ;;  %v3341_v6 = vadd.f32 %v3340_v35, %v3339_v27  ;;  %4987 = vrcp.f32 %v3874_v59 }
 0x48b   : > { %v3375_v28 = vrot.slane %v3374_v13, 4  ;;  %3778 = vmatmul.f32.vlgmr.msrb.gmra.mxu3 %v404_v14 }
 0x48c   : > { %v3342_v1 = vrot.slane %v3341_v6, 1 }
 0x48d   : > { %v3376_v42 = vadd.f32 %v3375_v28, %v3374_v13 }
 0x48e   : > { %v3343_v32 = vadd.f32 %v3342_v1, %v3341_v6 }
 0x48f   : > { %v3377_v5 = vrot.slane %v3376_v42, 2  ;;  %v4986_v55 = vpop.eup %4985 }
 0x490   : > { %v3084_v57 = vmul.f32 %v4986_v55, %v3080_v12  ;;  %v4988_v38 = vpop.eup %4987  ;;  %v3811_v7 = vperm.slane %v4986_v55, 0  ;;  %v3812_v27 = vperm.slane %v4986_v55, 1 }
 0x491   : > { %v3378_v26 = vadd.f32 %v3377_v5, %v3376_v42  ;;  %v3904_v40 = vperm.slane %v4988_v38, 0  ;;  %v3905_v58 = vperm.slane %v4988_v38, 1 }
 0x492   : > { %3735 = vmatmul.f32.gmra.mxu1 %v406_v47  ;;  %v3833_v30 = vmul.f32 0.0, %v3811_v7  ;;  %v3834_v61 = vmul.f32 0.0, %v3812_v27 }
 0x493   : > { %v3379_v63 = vrot.slane %v3378_v26, 1  ;;  %3781 = vmatmul.f32.gmra.mxu3 %v406_v47 }
 0x495   : > { %v3380_v17 = vadd.f32 %v3379_v63, %v3378_v26 }
 0x497   : > { %v3392_v0 = vrot.slane %v3380_v17, 7 }
 0x499   : > { %v3396_v18 = vsel %vm2264_vm2, %v3343_v32, %v3392_v0 }
 0x49a   : > { %v3404_v53 = vadd.f32 %v3396_v18, %v3084_v57 }
 0x49c   : > { %3412 = vst.msk [vmem:[#allocation3 + $0x6] sm:$0x3] %vm5787_vm1, %v3404_v53 }
 0x4a3   : > { %v3875_v8 = vld [vmem:[#allocation3 + $0x6] sm:$0x3] }
 0x4a4   : > { %4989 = vrcp.f32 %v3875_v8 }
 0x4aa   : > { %v4990_v31 = vpop.eup %4989 }
 0x4ab   : > { %v3906_v44 = vperm.slane %v4990_v31, 0  ;;  %v3907_v28 = vperm.slane %v4990_v31, 1 }
 0x4de   : > { %v3641_v11 = vpop.f32.mrf.mxu1 }
 0x4e1   : > { %v3618_v21 = vpop.f32.mrf.mxu0 }
 0x4e2   : > { %v3642_v33 = vadd.f32 %v3641_v11, %v3618_v21 }
 0x4e4   : > { %v3845_v29 = vadd.f32 %v3829_v3, %v3642_v33  ;;  %v3687_v39 = vpop.f32.mrf.mxu3 }
 0x4e6   : > { %v3924_v60 = vmul.f32 %v3904_v40, %v3845_v29  ;;  %v3644_v25 = vpop.f32.mrf.mxu1 }
 0x4e7   : > { %v3664_v36 = vpop.f32.mrf.mxu2 }
 0x4e8   : > { %3940 = vst [vmem:[%s8039_s24 + $0x40] sm:$0xff] %v3924_v60  ;;  %v3688_v43 = vadd.f32 %v3687_v39, %v3664_v36 }
 0x4e9   : > { %v3621_v49 = vpop.f32.mrf.mxu0 }
 0x4ea   : > { %v3846_v52 = vadd.f32 %v3830_v54, %v3688_v43  ;;  %v3645_v9 = vadd.f32 %v3644_v25, %v3621_v49 }
 0x4ec   : > { %v3925_v51 = vmul.f32 %v3905_v58, %v3846_v52  ;;  %v3847_v16 = vadd.f32 %v3829_v3, %v3645_v9 }
 0x4ed   : > { %v3690_v23 = vpop.f32.mrf.mxu3 }
 0x4ee   : > { %3941 = vst [vmem:[%s8039_s24 + $0x48] sm:$0xff] %v3925_v51  ;;  %v3926_v45 = vmul.f32 %v3904_v40, %v3847_v16 }
 0x4f0   : > { %3942 = vst [vmem:[%s8039_s24 + $0x50] sm:$0xff] %v3926_v45  ;;  %v3667_v10 = vpop.f32.mrf.mxu2 }
 0x4f1   : > { %v3691_v20 = vadd.f32 %v3690_v23, %v3667_v10  ;;  %v3710_v56 = vpop.f32.mrf.mxu0 }
 0x4f3   : > { %v3848_v37 = vadd.f32 %v3830_v54, %v3691_v20 }
 0x4f5   : > { %v3927_v2 = vmul.f32 %v3905_v58, %v3848_v37 }
 0x4f7   : > { %3943 = vst [vmem:[%s8039_s24 + $0x58] sm:$0xff] %v3927_v2 }
 0x4f8   : > { %v3756_v50 = vpop.f32.mrf.mxu2 }
 0x4f9   : > { %v3713_v14 = vpop.f32.mrf.mxu0 }
 0x500   : > { %v3759_v47 = vpop.f32.mrf.mxu2 }
 0x507   : > { %v3733_v22 = vpop.f32.mrf.mxu1 }
 0x508   : > { %v3734_v19 = vadd.f32 %v3733_v22, %v3710_v56 }
 0x50a   : > { %v3849_v62 = vadd.f32 %v3833_v30, %v3734_v19 }
 0x50c   : > { %v3928_v34 = vmul.f32 %v3906_v44, %v3849_v62 }
 0x50e   : > { %3944 = vst [vmem:[%s8039_s24 + $0x60] sm:$0xff] %v3928_v34  ;;  %v3779_v13 = vpop.f32.mrf.mxu3 }
 0x50f   : > { %v3780_v41 = vadd.f32 %v3779_v13, %v3756_v50  ;;  %v3736_v4 = vpop.f32.mrf.mxu1 }
 0x510   : > { %v3737_v15 = vadd.f32 %v3736_v4, %v3713_v14 }
 0x511   : > { %v3850_v35 = vadd.f32 %v3834_v61, %v3780_v41 }
 0x512   : > { %v3851_v42 = vadd.f32 %v3833_v30, %v3737_v15 }
 0x513   : > { %v3929_v6 = vmul.f32 %v3907_v28, %v3850_v35 }
 0x514   : > { %v3930_v5 = vmul.f32 %v3906_v44, %v3851_v42 }
 0x515   : > { %3945 = vst [vmem:[%s8039_s24 + $0x68] sm:$0xff] %v3929_v6 }
 0x516   : > { %3946 = vst [vmem:[%s8039_s24 + $0x70] sm:$0xff] %v3930_v5  ;;  %v3782_v26 = vpop.f32.mrf.mxu3 }
 0x517   : > { %v3783_v1 = vadd.f32 %v3782_v26, %v3759_v47 }
 0x519   : > { %v3852_v63 = vadd.f32 %v3834_v61, %v3783_v1 }
 0x51b   : > { %v3931_v55 = vmul.f32 %v3907_v28, %v3852_v63 }
 0x51d   : > { %3947 = vst [vmem:[%s8039_s24 + $0x78] sm:$0xff] %v3931_v55 }
 0x51e   : > { %5108 = shalt.err (!%p5105_p13)
}
 0x51f   : > { %s5173_s11 = smov 256   ;;  %s5174_s19 = smov 16  }
 0x520   : > { %4391 = dma.vmem_to_hbm [thread:$0]  (%p5250_p9), %s3964_s21, 2048, %s3966_s22, %s3949_s15, %s5173_s11, %s5173_s11, %s5174_s19  }
 0x521 PF: > { %s9380_s1 = sld [smem:[#allocation17_spill]]  ;;  %s3980_s16 = sand.u32 1, %s5147_s12  }
 0x522   : > { %p4404_p0 = pnand %p4110_p12, %p5257_p11  ;;  %s3981_s20 = scalar_lea.sflag [#allocation7], %s3980_s16 }
 0x524   : > { %p4405_p1 = pneg %p4404_p0 }
 0x526   : > { %5142 = dma.done.wait (%p4405_p1), %s3981_s20, 2048  }
 0x527   : > { %5144 = vsyncadd (%p4405_p1), %s3981_s20, 4294965248  ;;  %s22_s17 = sadd.s32 1, %s9380_s1   ;;  %s9381_s14 = sld [smem:[#allocation15_spill]] }
 0x528   : > { %p19_p2 = scmp.ge.s32.totalorder %s22_s17, 4   ;;  %s9382_s26 = sld [smem:[#allocation19_spill]] }
 0x529   : > { %s9383_s15 = sld [smem:[#allocation16_spill]]  ;;  %s9385_s12 = smov %s5151_s13 }
 0x52a   : > { %s9384_s16 = sld [smem:[#allocation18_spill]]  ;;  %21 = sbr.rel (!%p19_p2) target bundleno = 10 (0xa), region = 109 }
 0x52d   : > { %s9386_s13 = smov %s9381_s14 }
 0x52e   : > { %s9387_s14 = smov %s9382_s26 }
 0x52f   :  { %3987 = vsyncpa [#allocation6], 1 }
 0x530   :  { %3989 = vsyncpa [#allocation6 + $0x1], 1 }
 0x531   :  { %3990 = vsyncpa [#allocation9], 1 }
 0x532   :  { %3992 = vsyncpa [#allocation9 + $0x1], 1 }
 0x533   :  { %3993 = vsyncpa [#allocation7], 1 }
 0x534   :  { %3995 = vsyncpa [#allocation7 + $0x1], 1 }

</bundles_post_ra>
